<compile_context>
chip_gen: v7x
topology: tpu7x:2x2x1
jax: 0.10.0
libtpu: 0.0.40
codegen_flags: <defaults>
</compile_context>

<pallas_src>
import functools

import jax
import jax.numpy as jnp
from jax import lax
from jax.experimental import pallas as pl
from jax.experimental.pallas import tpu as pltpu


# --------------------------------------------------------------------------- #
# Kernel
# --------------------------------------------------------------------------- #
def _cross_attn_kernel(xc_ref, xt_ref, wc_ref, wt_ref, bc_ref, bt_ref, out_ref,
                       *, dim, tb, n):
    D = dim
    f32 = jnp.float32
    bf16 = jnp.bfloat16

    # Inputs arrive as f32 (no wrapper-side cast); flatten the (tb, n, D) block
    # into a (tb*n, D) slab (leading-dim collapse, no relayout) and cast to bf16
    # on the VPU right before the MXU.
    xc = xc_ref[...].reshape(tb * n, D).astype(bf16)
    xt = xt_ref[...].reshape(tb * n, D).astype(bf16)

    def proj(x, w_ref, b_ref, i):
        # (tb*n, D) @ (D, D) on the MXU with f32 accumulation + f32 bias add.
        # First-axis static index into the (3, D, D) stack -> no lane slicing.
        y = jnp.dot(x, w_ref[i], preferred_element_type=f32) + b_ref[i]
        return y.reshape(tb, n, D)

    def softmax(s):
        m = jnp.max(s, axis=-1, keepdims=True)
        e = jnp.exp(s - m)
        # Exact reciprocal (approx EUP saving negligible here; tighter parity).
        return e * pl.reciprocal(jnp.sum(e, axis=-1, keepdims=True), approx=False)

    # Batched Q @ K^T without materializing a transpose: contract the last dims.
    dn = (((2,), (2,)), ((0,), (0,)))

    # ---- branch 1: Q from conv (pre-scaled), K from trans, V from conv -------
    q_c = proj(xc, wc_ref, bc_ref, 0)
    k_t = proj(xt, wt_ref, bt_ref, 0)
    s1 = lax.dot_general(q_c.astype(bf16), k_t.astype(bf16),
                         dimension_numbers=dn, preferred_element_type=f32)
    # V_conv produced right before its elementwise use (short live range).
    acc = softmax(s1) * proj(xc, wc_ref, bc_ref, 1)

    # ---- branch 2: Q from trans (pre-scaled), K from conv, V from trans ------
    q_t = proj(xt, wt_ref, bt_ref, 1)
    k_c = proj(xc, wc_ref, bc_ref, 2)
    s2 = lax.dot_general(q_t.astype(bf16), k_c.astype(bf16),
                         dimension_numbers=dn, preferred_element_type=f32)
    acc = acc + softmax(s2) * proj(xt, wt_ref, bt_ref, 2)

    out_ref[...] = acc.astype(out_ref.dtype)


# --------------------------------------------------------------------------- #
# Generation-aware sizing helpers
# --------------------------------------------------------------------------- #
def _vmem_capacity_bytes():
    """Per-core VMEM capacity; conservative v7x default if the query fails."""
    try:
        cap = getattr(pltpu.get_tpu_info(), "vmem_capacity_bytes", None)
        if cap:
            return int(cap)
    except Exception:
        pass
    return 64 * 1024 * 1024


def _num_tensorcores_per_device():
    """2 TensorCores on v7x / v4 / v5p style parts, else 1."""
    try:
        kind = jax.devices()[0].device_kind.lower()
    except Exception:
        return 1
    return 2 if any(tag in kind for tag in ("v7", "v4", "v5p")) else 1


def _vmem_footprint_bytes(tb, n, d, out_itemsize):
    """Rough per-step VMEM footprint for a (tb, n, d) batch block."""
    act = tb * n * d
    blocks = 2 * 2 * act * 4            # two f32 input blocks, double-buffered
    blocks += 2 * act * out_itemsize    # output block, double-buffered
    weights = 2 * 3 * d * d * 2 + 2 * 3 * d * 4   # resident bf16 stacks + f32 biases
    temps = 8 * act * 4                 # live f32/bf16 temporaries (n == d => scores too)
    return blocks + weights + temps


def _pick_batch_block(B, n, d, out_itemsize, block_budget, num_tc):
    """Largest divisor of B whose footprint fits; prefer grid counts divisible
    by the number of TensorCores (keeps both v7x cores busy)."""
    divisors = [t for t in range(1, B + 1) if B % t == 0]
    fitting = [t for t in divisors
               if _vmem_footprint_bytes(t, n, d, out_itemsize) <= block_budget]
    if not fitting:
        fitting = [1]
    even = [t for t in fitting if (B // t) % num_tc == 0]
    return max(even) if even else max(fitting)


# --------------------------------------------------------------------------- #
# Wrapper
# --------------------------------------------------------------------------- #
def cross_attention_fusion(x_conv, x_trans, wc, wt, bc, bt, *,
                           batch_block=None, out_dtype=jnp.float32):
    """wc/wt: (3, D, D) bf16 stacks (pre-transposed, scale folded into Q);
    bc/bt: (3, 1, D) f32 bias stacks (scale folded into Q bias as well)."""
    B, N, D = x_conv.shape
    assert N == D, "reference module requires seq_len == dim"
    assert wc.shape == (3, D, D) and wt.shape == (3, D, D)
    assert bc.shape == (3, 1, D) and bt.shape == (3, 1, D)

    out_itemsize = jnp.dtype(out_dtype).itemsize
    vmem_cap = _vmem_capacity_bytes()
    num_tc = _num_tensorcores_per_device()
    block_budget = min(vmem_cap // 2, 64 * 1024 * 1024)

    tb = batch_block if batch_block is not None else _pick_batch_block(
        B, N, D, out_itemsize, block_budget, num_tc)
    assert B % tb == 0
    grid_b = B // tb

    footprint = _vmem_footprint_bytes(tb, N, D, out_itemsize)
    vmem_limit = int(min(max(32 * 1024 * 1024, 2 * footprint),
                         (3 * vmem_cap) // 4, 96 * 1024 * 1024))

    flops = B * (12 * N * D * D + 4 * N * N * D)   # 6 projections + 2 QK^T
    transcendentals = 2 * B * N * N                # exps
    bytes_accessed = (2 * B * N * D * 4            # f32 activations in
                      + B * N * D * out_itemsize   # output
                      + 2 * 3 * D * D * 2          # bf16 weight stacks
                      + 2 * 3 * D * 4)             # f32 biases

    kernel = functools.partial(_cross_attn_kernel, dim=D, tb=tb, n=N)
    # Constant weights/biases stay whole-array resident in VMEM (no re-blocking).
    param_spec = pl.BlockSpec(memory_space=pltpu.MemorySpace.VMEM)

    return pl.pallas_call(
        kernel,
        out_shape=jax.ShapeDtypeStruct((B, N, D), out_dtype),
        grid_spec=pltpu.PrefetchScalarGridSpec(
            num_scalar_prefetch=0,
            grid=(grid_b,),
            in_specs=[
                pl.BlockSpec((tb, N, D), lambda b: (b, 0, 0)),   # X_conv block (f32)
                pl.BlockSpec((tb, N, D), lambda b: (b, 0, 0)),   # X_trans block (f32)
                param_spec,                                      # wc (3, D, D) bf16
                param_spec,                                      # wt (3, D, D) bf16
                param_spec,                                      # bc (3, 1, D) f32
                param_spec,                                      # bt (3, 1, D) f32
            ],
            out_specs=pl.BlockSpec((tb, N, D), lambda b: (b, 0, 0)),
        ),
        compiler_params=pltpu.CompilerParams(
            dimension_semantics=("parallel",),
            vmem_limit_bytes=vmem_limit,
        ),
        cost_estimate=pl.CostEstimate(
            flops=flops,
            transcendentals=transcendentals,
            bytes_accessed=bytes_accessed,
        ),
    )(x_conv, x_trans, wc, wt, bc, bt)


def pack_params(Ws, bs, dim):
    """Fold 1/sqrt(D) into the Q weights AND biases and stack per input side.

    Order (torch module): 0 WQ_conv, 1 WK_conv, 2 WV_conv,
                          3 WQ_trans, 4 WK_trans, 5 WV_trans
    conv-side stack  : [WQ_conv*scale, WV_conv, WK_trans]   (applied to X_conv)
    trans-side stack : [WK_conv, WQ_trans*scale, WV_trans]  (applied to X_trans)
    NOTE: the scale MUST be applied to both the Q weight and the Q bias —
    softmax((xW^T + b) * s @ K^T) == softmax((x W^T + b) @ K^T * s).
    """
    scale = 1.0 / (dim ** 0.5)
    wc = jnp.stack([Ws[0].T * scale, Ws[2].T, Ws[4].T]).astype(jnp.bfloat16)
    wt = jnp.stack([Ws[1].T, Ws[3].T * scale, Ws[5].T]).astype(jnp.bfloat16)
    bc = jnp.stack([bs[0] * scale, bs[2], bs[4]])[:, None, :].astype(jnp.float32)
    bt = jnp.stack([bs[1], bs[3] * scale, bs[5]])[:, None, :].astype(jnp.float32)
    return wc, wt, bc, bt


# --------------------------------------------------------------------------- #
# Example + reference check
# --------------------------------------------------------------------------- #
if __name__ == "__main__":
    B, N, D = 8, 32, 32
    key = jax.random.PRNGKey(0)
    keys = jax.random.split(key, 14)

    x_conv = jax.random.normal(keys[0], (B, N, D), jnp.float32)
    x_trans = jax.random.normal(keys[1], (B, N, D), jnp.float32)

    # torch.nn.Linear convention: y = x @ W.T + b
    Ws = [0.1 * jax.random.normal(keys[2 + i], (D, D), jnp.float32) for i in range(6)]
    bs = [0.1 * jax.random.normal(keys[8 + i], (D,), jnp.float32) for i in range(6)]
    scale = 1.0 / (D ** 0.5)

    wc, wt, bc, bt = pack_params(Ws, bs, D)

    out = jax.block_until_ready(
        cross_attention_fusion(x_conv, x_trans, wc, wt, bc, bt))

    # Pure-JAX f32 reference matching the PyTorch forward exactly.
    def lin(x, i):
        return x @ Ws[i].T + bs[i]

    def sm(s):
        s = s - s.max(axis=-1, keepdims=True)
        e = jnp.exp(s)
        return e / e.sum(axis=-1, keepdims=True)

    a1 = sm(jnp.matmul(lin(x_conv, 0), jnp.swapaxes(lin(x_trans, 1), -1, -2)) * scale)
    x1_ref = a1 * lin(x_conv, 2)
    a2 = sm(jnp.matmul(lin(x_trans, 3), jnp.swapaxes(lin(x_conv, 4), -1, -2)) * scale)
    x2_ref = a2 * lin(x_trans, 5)
    ref = x1_ref + x2_ref

    assert out.shape == (B, N, D)
    # bf16 MXU operands -> looser tolerance than a pure-f32 path.
    assert jnp.allclose(out, ref, atol=1e-2, rtol=1e-2), "kernel mismatch vs reference"
    print("KERNEL_OK")
</pallas_src>

<mosaic_0001>
module attributes {stable_mosaic.version = 11 : i64} {
  func.func @_cross_attn_kernel(%arg0: i32, %arg1: memref<8x32x32xf32, #tpu.memory_space<vmem>>, %arg2: memref<8x32x32xf32, #tpu.memory_space<vmem>>, %arg3: memref<3x32x32xbf16, #tpu.memory_space<vmem>>, %arg4: memref<3x32x32xbf16, #tpu.memory_space<vmem>>, %arg5: memref<3x1x32xf32, #tpu.memory_space<vmem>>, %arg6: memref<3x1x32xf32, #tpu.memory_space<vmem>>, %arg7: memref<8x32x32xf32, #tpu.memory_space<vmem>>) attributes {dimension_semantics = [#tpu.dimension_semantics<parallel>], iteration_bounds = array<i64: 1>, scalar_prefetch = 0 : i64, scratch_operands = 0 : i64, tpu.core_type = #tpu.core_type<tc>, window_params = [{transform_indices = @transform_0, window_bounds = array<i64: 8, 32, 32>}, {transform_indices = @transform_1, window_bounds = array<i64: 8, 32, 32>}, {pipeline_mode = #tpu.pipeline_mode<synchronous>, transform_indices = @transform_2, window_bounds = array<i64: 3, 32, 32>}, {pipeline_mode = #tpu.pipeline_mode<synchronous>, transform_indices = @transform_3, window_bounds = array<i64: 3, 32, 32>}, {pipeline_mode = #tpu.pipeline_mode<synchronous>, transform_indices = @transform_4, window_bounds = array<i64: 3, 1, 32>}, {pipeline_mode = #tpu.pipeline_mode<synchronous>, transform_indices = @transform_5, window_bounds = array<i64: 3, 1, 32>}, {transform_indices = @transform_6, window_bounds = array<i64: 8, 32, 32>}]} {
    %c0 = arith.constant 0 : index
    %c0_0 = arith.constant 0 : index
    %c0_1 = arith.constant 0 : index
    %0 = vector.load %arg1[%c0, %c0_0, %c0_1] : memref<8x32x32xf32, #tpu.memory_space<vmem>>, vector<8x32x32xf32>
    %1 = vector.shape_cast %0 : vector<8x32x32xf32> to vector<256x32xf32>
    %2 = arith.truncf %1 : vector<256x32xf32> to vector<256x32xbf16>
    %c0_2 = arith.constant 0 : index
    %c0_3 = arith.constant 0 : index
    %c0_4 = arith.constant 0 : index
    %3 = vector.load %arg2[%c0_2, %c0_3, %c0_4] : memref<8x32x32xf32, #tpu.memory_space<vmem>>, vector<8x32x32xf32>
    %4 = vector.shape_cast %3 : vector<8x32x32xf32> to vector<256x32xf32>
    %5 = arith.truncf %4 : vector<256x32xf32> to vector<256x32xbf16>
    %c0_5 = arith.constant 0 : index
    %c0_6 = arith.constant 0 : index
    %c0_7 = arith.constant 0 : index
    %6 = vector.load %arg3[%c0_5, %c0_6, %c0_7] : memref<3x32x32xbf16, #tpu.memory_space<vmem>>, vector<1x32x32xbf16>
    %7 = vector.shape_cast %6 : vector<1x32x32xbf16> to vector<32x32xbf16>
    %cst = arith.constant dense<0.000000e+00> : vector<256x32xf32>
    %8 = tpu.matmul %2, %7, %cst {dimension_numbers = #tpu.dot_dimension_numbers<[1], [0], [0], [1], [0, 0, 1, 1], [], []>} : vector<256x32xbf16>, vector<32x32xbf16>, vector<256x32xf32> -> vector<256x32xf32>
    %c0_8 = arith.constant 0 : index
    %c0_9 = arith.constant 0 : index
    %c0_10 = arith.constant 0 : index
    %9 = vector.load %arg5[%c0_8, %c0_9, %c0_10] : memref<3x1x32xf32, #tpu.memory_space<vmem>>, vector<1x1x32xf32>
    %10 = vector.shape_cast %9 : vector<1x1x32xf32> to vector<1x32xf32>
    %11 = vector.broadcast %10 : vector<1x32xf32> to vector<256x32xf32>
    %12 = arith.addf %8, %11 : vector<256x32xf32>
    %13 = vector.shape_cast %12 : vector<256x32xf32> to vector<8x32x32xf32>
    %c0_11 = arith.constant 0 : index
    %c0_12 = arith.constant 0 : index
    %c0_13 = arith.constant 0 : index
    %14 = vector.load %arg4[%c0_11, %c0_12, %c0_13] : memref<3x32x32xbf16, #tpu.memory_space<vmem>>, vector<1x32x32xbf16>
    %15 = vector.shape_cast %14 : vector<1x32x32xbf16> to vector<32x32xbf16>
    %cst_14 = arith.constant dense<0.000000e+00> : vector<256x32xf32>
    %16 = tpu.matmul %5, %15, %cst_14 {dimension_numbers = #tpu.dot_dimension_numbers<[1], [0], [0], [1], [0, 0, 1, 1], [], []>} : vector<256x32xbf16>, vector<32x32xbf16>, vector<256x32xf32> -> vector<256x32xf32>
    %c0_15 = arith.constant 0 : index
    %c0_16 = arith.constant 0 : index
    %c0_17 = arith.constant 0 : index
    %17 = vector.load %arg6[%c0_15, %c0_16, %c0_17] : memref<3x1x32xf32, #tpu.memory_space<vmem>>, vector<1x1x32xf32>
    %18 = vector.shape_cast %17 : vector<1x1x32xf32> to vector<1x32xf32>
    %19 = vector.broadcast %18 : vector<1x32xf32> to vector<256x32xf32>
    %20 = arith.addf %16, %19 : vector<256x32xf32>
    %21 = vector.shape_cast %20 : vector<256x32xf32> to vector<8x32x32xf32>
    %22 = arith.truncf %13 : vector<8x32x32xf32> to vector<8x32x32xbf16>
    %23 = arith.truncf %21 : vector<8x32x32xf32> to vector<8x32x32xbf16>
    %cst_18 = arith.constant dense<0.000000e+00> : vector<8x32x32xf32>
    %24 = tpu.matmul %22, %23, %cst_18 {dimension_numbers = #tpu.dot_dimension_numbers<[2], [2], [1], [1], [0, 0, 0, 1, 1, 1], [0], [0]>} : vector<8x32x32xbf16>, vector<8x32x32xbf16>, vector<8x32x32xf32> -> vector<8x32x32xf32>
    %cst_19 = arith.constant dense<0xFF800000> : vector<8x32xf32>
    %25 = vector.multi_reduction <maximumf>, %24, %cst_19 [2] : vector<8x32x32xf32> to vector<8x32xf32>
    %26 = vector.shape_cast %25 : vector<8x32xf32> to vector<8x32x1xf32>
    %27 = vector.broadcast %26 : vector<8x32x1xf32> to vector<8x32x32xf32>
    %28 = arith.subf %24, %27 : vector<8x32x32xf32>
    %29 = math.exp %28 : vector<8x32x32xf32>
    %cst_20 = arith.constant dense<0.000000e+00> : vector<8x32xf32>
    %30 = vector.multi_reduction <add>, %29, %cst_20 [2] : vector<8x32x32xf32> to vector<8x32xf32>
    %31 = vector.shape_cast %30 : vector<8x32xf32> to vector<8x32x1xf32>
    %32 = tpu.reciprocal %31 : vector<8x32x1xf32> -> vector<8x32x1xf32>
    %33 = vector.broadcast %32 : vector<8x32x1xf32> to vector<8x32x32xf32>
    %34 = arith.mulf %29, %33 : vector<8x32x32xf32>
    %c1 = arith.constant 1 : index
    %c0_21 = arith.constant 0 : index
    %c0_22 = arith.constant 0 : index
    %35 = vector.load %arg3[%c1, %c0_21, %c0_22] : memref<3x32x32xbf16, #tpu.memory_space<vmem>>, vector<1x32x32xbf16>
    %36 = vector.shape_cast %35 : vector<1x32x32xbf16> to vector<32x32xbf16>
    %cst_23 = arith.constant dense<0.000000e+00> : vector<256x32xf32>
    %37 = tpu.matmul %2, %36, %cst_23 {dimension_numbers = #tpu.dot_dimension_numbers<[1], [0], [0], [1], [0, 0, 1, 1], [], []>} : vector<256x32xbf16>, vector<32x32xbf16>, vector<256x32xf32> -> vector<256x32xf32>
    %c1_24 = arith.constant 1 : index
    %c0_25 = arith.constant 0 : index
    %c0_26 = arith.constant 0 : index
    %38 = vector.load %arg5[%c1_24, %c0_25, %c0_26] : memref<3x1x32xf32, #tpu.memory_space<vmem>>, vector<1x1x32xf32>
    %39 = vector.shape_cast %38 : vector<1x1x32xf32> to vector<1x32xf32>
    %40 = vector.broadcast %39 : vector<1x32xf32> to vector<256x32xf32>
    %41 = arith.addf %37, %40 : vector<256x32xf32>
    %42 = vector.shape_cast %41 : vector<256x32xf32> to vector<8x32x32xf32>
    %43 = arith.mulf %34, %42 : vector<8x32x32xf32>
    %c1_27 = arith.constant 1 : index
    %c0_28 = arith.constant 0 : index
    %c0_29 = arith.constant 0 : index
    %44 = vector.load %arg4[%c1_27, %c0_28, %c0_29] : memref<3x32x32xbf16, #tpu.memory_space<vmem>>, vector<1x32x32xbf16>
    %45 = vector.shape_cast %44 : vector<1x32x32xbf16> to vector<32x32xbf16>
    %cst_30 = arith.constant dense<0.000000e+00> : vector<256x32xf32>
    %46 = tpu.matmul %5, %45, %cst_30 {dimension_numbers = #tpu.dot_dimension_numbers<[1], [0], [0], [1], [0, 0, 1, 1], [], []>} : vector<256x32xbf16>, vector<32x32xbf16>, vector<256x32xf32> -> vector<256x32xf32>
    %c1_31 = arith.constant 1 : index
    %c0_32 = arith.constant 0 : index
    %c0_33 = arith.constant 0 : index
    %47 = vector.load %arg6[%c1_31, %c0_32, %c0_33] : memref<3x1x32xf32, #tpu.memory_space<vmem>>, vector<1x1x32xf32>
    %48 = vector.shape_cast %47 : vector<1x1x32xf32> to vector<1x32xf32>
    %49 = vector.broadcast %48 : vector<1x32xf32> to vector<256x32xf32>
    %50 = arith.addf %46, %49 : vector<256x32xf32>
    %51 = vector.shape_cast %50 : vector<256x32xf32> to vector<8x32x32xf32>
    %c2 = arith.constant 2 : index
    %c0_34 = arith.constant 0 : index
    %c0_35 = arith.constant 0 : index
    %52 = vector.load %arg3[%c2, %c0_34, %c0_35] : memref<3x32x32xbf16, #tpu.memory_space<vmem>>, vector<1x32x32xbf16>
    %53 = vector.shape_cast %52 : vector<1x32x32xbf16> to vector<32x32xbf16>
    %cst_36 = arith.constant dense<0.000000e+00> : vector<256x32xf32>
    %54 = tpu.matmul %2, %53, %cst_36 {dimension_numbers = #tpu.dot_dimension_numbers<[1], [0], [0], [1], [0, 0, 1, 1], [], []>} : vector<256x32xbf16>, vector<32x32xbf16>, vector<256x32xf32> -> vector<256x32xf32>
    %c2_37 = arith.constant 2 : index
    %c0_38 = arith.constant 0 : index
    %c0_39 = arith.constant 0 : index
    %55 = vector.load %arg5[%c2_37, %c0_38, %c0_39] : memref<3x1x32xf32, #tpu.memory_space<vmem>>, vector<1x1x32xf32>
    %56 = vector.shape_cast %55 : vector<1x1x32xf32> to vector<1x32xf32>
    %57 = vector.broadcast %56 : vector<1x32xf32> to vector<256x32xf32>
    %58 = arith.addf %54, %57 : vector<256x32xf32>
    %59 = vector.shape_cast %58 : vector<256x32xf32> to vector<8x32x32xf32>
    %60 = arith.truncf %51 : vector<8x32x32xf32> to vector<8x32x32xbf16>
    %61 = arith.truncf %59 : vector<8x32x32xf32> to vector<8x32x32xbf16>
    %cst_40 = arith.constant dense<0.000000e+00> : vector<8x32x32xf32>
    %62 = tpu.matmul %60, %61, %cst_40 {dimension_numbers = #tpu.dot_dimension_numbers<[2], [2], [1], [1], [0, 0, 0, 1, 1, 1], [0], [0]>} : vector<8x32x32xbf16>, vector<8x32x32xbf16>, vector<8x32x32xf32> -> vector<8x32x32xf32>
    %cst_41 = arith.constant dense<0xFF800000> : vector<8x32xf32>
    %63 = vector.multi_reduction <maximumf>, %62, %cst_41 [2] : vector<8x32x32xf32> to vector<8x32xf32>
    %64 = vector.shape_cast %63 : vector<8x32xf32> to vector<8x32x1xf32>
    %65 = vector.broadcast %64 : vector<8x32x1xf32> to vector<8x32x32xf32>
    %66 = arith.subf %62, %65 : vector<8x32x32xf32>
    %67 = math.exp %66 : vector<8x32x32xf32>
    %cst_42 = arith.constant dense<0.000000e+00> : vector<8x32xf32>
    %68 = vector.multi_reduction <add>, %67, %cst_42 [2] : vector<8x32x32xf32> to vector<8x32xf32>
    %69 = vector.shape_cast %68 : vector<8x32xf32> to vector<8x32x1xf32>
    %70 = tpu.reciprocal %69 : vector<8x32x1xf32> -> vector<8x32x1xf32>
    %71 = vector.broadcast %70 : vector<8x32x1xf32> to vector<8x32x32xf32>
    %72 = arith.mulf %67, %71 : vector<8x32x32xf32>
    %c2_43 = arith.constant 2 : index
    %c0_44 = arith.constant 0 : index
    %c0_45 = arith.constant 0 : index
    %73 = vector.load %arg4[%c2_43, %c0_44, %c0_45] : memref<3x32x32xbf16, #tpu.memory_space<vmem>>, vector<1x32x32xbf16>
    %74 = vector.shape_cast %73 : vector<1x32x32xbf16> to vector<32x32xbf16>
    %cst_46 = arith.constant dense<0.000000e+00> : vector<256x32xf32>
    %75 = tpu.matmul %5, %74, %cst_46 {dimension_numbers = #tpu.dot_dimension_numbers<[1], [0], [0], [1], [0, 0, 1, 1], [], []>} : vector<256x32xbf16>, vector<32x32xbf16>, vector<256x32xf32> -> vector<256x32xf32>
    %c2_47 = arith.constant 2 : index
    %c0_48 = arith.constant 0 : index
    %c0_49 = arith.constant 0 : index
    %76 = vector.load %arg6[%c2_47, %c0_48, %c0_49] : memref<3x1x32xf32, #tpu.memory_space<vmem>>, vector<1x1x32xf32>
    %77 = vector.shape_cast %76 : vector<1x1x32xf32> to vector<1x32xf32>
    %78 = vector.broadcast %77 : vector<1x32xf32> to vector<256x32xf32>
    %79 = arith.addf %75, %78 : vector<256x32xf32>
    %80 = vector.shape_cast %79 : vector<256x32xf32> to vector<8x32x32xf32>
    %81 = arith.mulf %72, %80 : vector<8x32x32xf32>
    %82 = arith.addf %43, %81 : vector<8x32x32xf32>
    %c0_50 = arith.constant 0 : index
    %c0_51 = arith.constant 0 : index
    %c0_52 = arith.constant 0 : index
    %83 = vector.load %arg7[%c0_50, %c0_51, %c0_52] : memref<8x32x32xf32, #tpu.memory_space<vmem>>, vector<8x32x32xf32>
    tpu.vector_store %arg7[%c0_50, %c0_51, %c0_52], %82 {strides = array<i32>} : memref<8x32x32xf32, #tpu.memory_space<vmem>>, vector<8x32x32xf32>,
    return
  }
  func.func @transform_0(%arg0: i32) -> (i32, i32, i32) {
    %c0_i32 = arith.constant 0 : i32
    %c0_i32_0 = arith.constant 0 : i32
    %c0_i32_1 = arith.constant 0 : i32
    return %arg0, %c0_i32, %c0_i32_0 : i32, i32, i32
  }
  func.func @transform_1(%arg0: i32) -> (i32, i32, i32) {
    %c0_i32 = arith.constant 0 : i32
    %c0_i32_0 = arith.constant 0 : i32
    %c0_i32_1 = arith.constant 0 : i32
    return %arg0, %c0_i32, %c0_i32_0 : i32, i32, i32
  }
  func.func @transform_2(%arg0: i32) -> (i32, i32, i32) {
    %c0_i32 = arith.constant 0 : i32
    %c0_i32_0 = arith.constant 0 : i32
    %c0_i32_1 = arith.constant 0 : i32
    %c0_i32_2 = arith.constant 0 : i32
    return %c0_i32, %c0_i32_0, %c0_i32_1 : i32, i32, i32
  }
  func.func @transform_3(%arg0: i32) -> (i32, i32, i32) {
    %c0_i32 = arith.constant 0 : i32
    %c0_i32_0 = arith.constant 0 : i32
    %c0_i32_1 = arith.constant 0 : i32
    %c0_i32_2 = arith.constant 0 : i32
    return %c0_i32, %c0_i32_0, %c0_i32_1 : i32, i32, i32
  }
  func.func @transform_4(%arg0: i32) -> (i32, i32, i32) {
    %c0_i32 = arith.constant 0 : i32
    %c0_i32_0 = arith.constant 0 : i32
    %c0_i32_1 = arith.constant 0 : i32
    %c0_i32_2 = arith.constant 0 : i32
    return %c0_i32, %c0_i32_0, %c0_i32_1 : i32, i32, i32
  }
  func.func @transform_5(%arg0: i32) -> (i32, i32, i32) {
    %c0_i32 = arith.constant 0 : i32
    %c0_i32_0 = arith.constant 0 : i32
    %c0_i32_1 = arith.constant 0 : i32
    %c0_i32_2 = arith.constant 0 : i32
    return %c0_i32, %c0_i32_0, %c0_i32_1 : i32, i32, i32
  }
  func.func @transform_6(%arg0: i32) -> (i32, i32, i32) {
    %c0_i32 = arith.constant 0 : i32
    %c0_i32_0 = arith.constant 0 : i32
    %c0_i32_1 = arith.constant 0 : i32
    return %arg0, %c0_i32, %c0_i32_0 : i32, i32, i32
  }
}

</mosaic_0001>

<bundles_post_ra>
// kernel: tpu_custom_call.1
= control target key start
LH: loop header
LB: loop body
LE: loop exit
PB: predicated region body
PF: predicated region fallthrough
CT: control target
= control target key end

     0   :  { %11 = vsyncpa [#allocation3], 0  ;;  %s6346_s0 = inlined_call_operand.hbm [shape: f32[8,32,32], index: 0, kind: input, shape index: {}]   ;;  %s6347_s1 = inlined_call_operand.hbm [shape: f32[8,32,32], index: 1, kind: input, shape index: {}]   ;;  %s6348_s2 = inlined_call_operand.hbm [shape: bf16[3,32,32], index: 2, kind: input, shape index: {}]   ;;  %s6349_s3 = inlined_call_operand.hbm [shape: bf16[3,32,32], index: 3, kind: input, shape index: {}]   ;;  %s6350_s4 = inlined_call_operand.vmem [shape: f32[3,1,32], index: 4, kind: input, shape index: {}]   ;;  %s6351_s5 = inlined_call_operand.vmem [shape: f32[3,1,32], index: 5, kind: input, shape index: {}]   ;;  %s6352_s6 = inlined_call_operand.hbm [shape: f32[8,32,32], index: 6, kind: output, shape index: {}]  }
   0x1   :  { %12 = vsyncpa [#allocation6], 0 }
   0x2   :  { %13 = vsyncpa [#allocation9], 0 }
   0x3   :  { %14 = vsyncpa [#allocation4], 0  ;;  %s4374_s21 = smov [#allocation5]   ;;  %s4375_s23 = smov [#allocation2]  }
   0x4   :  { %s32_s22 = sshll.u32 %s4374_s21, 4  ;;  %s20_s24 = sshll.u32 %s4375_s23, 4  ;;  %s33_s22 = int_to_ptr.vmem [resolvable:$true] %s32_s22  ;;  %s4418_s24 = int_to_ptr.vmem [resolvable:$true] %s20_s24 }
   0x5   :  { %s4256_s27 = scalar_lea.hbm %s6347_s1, 4096 }
   0x6   :  { %p4257_p0 = scmp.ne.s32.totalorder %s6347_s1, %s4256_s27  ;;  %p4260_p1 = scmp.lt.u32.totalorder %s4256_s27, %s6347_s1 }
   0x8   :  { %p4262_p2 = pnand %p4260_p1, %p4257_p0 }
   0xa   :  { %4265 = shalt.err (!%p4262_p2)
}
   0xb   :  { %s4266_s8 = scalar_lea.vmem %s33_s22, 4096  ;;  %p4271_p4 = scmp.lt.s32.totalorder %s33_s22, %s33_s22 }
   0xc   :  { %p4267_p3 = scmp.ne.s32.totalorder %s33_s22, %s4266_s8  ;;  %p4272_p5 = scmp.lt.s32.totalorder %s4266_s8, %s4266_s8 }
   0xe   :  { %p4273_p6 = por %p4272_p5, %p4271_p4 }
  0x10   :  { %p4274_p7 = pnand %p4273_p6, %p4267_p3 }
  0x12   :  { %4277 = shalt.err (!%p4274_p7)
}
  0x13   :  { %s4376_s9 = smov 128   ;;  %s4377_s10 = smov 8  }
  0x14   :  { %38 = dma.hbm_to_vmem [thread:$0]  %s6347_s1, 4096, %s33_s22, [#allocation6], %s4376_s9, %s4376_s9, %s4377_s10  }
  0x15   :  { %s4278_s15 = scalar_lea.hbm %s6346_s0, 4096 }
  0x16   :  { %p4279_p8 = scmp.ne.s32.totalorder %s6346_s0, %s4278_s15  ;;  %p4282_p9 = scmp.lt.u32.totalorder %s4278_s15, %s6346_s0 }
  0x18   :  { %p4284_p10 = pnand %p4282_p9, %p4279_p8 }
  0x1a   :  { %4287 = shalt.err (!%p4284_p10)
}
  0x1b   :  { %s4288_s20 = scalar_lea.vmem %s4418_s24, 4096  ;;  %p4293_p12 = scmp.lt.s32.totalorder %s4418_s24, %s4418_s24 }
  0x1c   :  { %p4289_p11 = scmp.ne.s32.totalorder %s4418_s24, %s4288_s20  ;;  %p4294_p13 = scmp.lt.s32.totalorder %s4288_s20, %s4288_s20 }
  0x1e   :  { %p4295_p0 = por %p4294_p13, %p4293_p12 }
  0x20   :  { %p4296_p1 = pnand %p4295_p0, %p4289_p11 }
  0x22   :  { %4299 = shalt.err (!%p4296_p1)
}
  0x23   :  { %26 = dma.hbm_to_vmem [thread:$0]  %s6346_s0, 4096, %s4418_s24, [#allocation3], %s4376_s9, %s4376_s9, %s4377_s10  }
  0x24   :  { %s4378_s22 = smov [#allocation7]   ;;  %s4300_s27 = scalar_lea.hbm %s6348_s2, 768 }
  0x25   :  { %s44_s23 = sshll.u32 %s4378_s22, 4  ;;  %p4301_p2 = scmp.ne.s32.totalorder %s6348_s2, %s4300_s27  ;;  %s45_s23 = int_to_ptr.vmem [resolvable:$true] %s44_s23 }
  0x26   :  { %p4304_p3 = scmp.lt.u32.totalorder %s4300_s27, %s6348_s2 }
  0x28   :  { %p4306_p4 = pnand %p4304_p3, %p4301_p2 }
  0x2a   :  { %4309 = shalt.err (!%p4306_p4)
}
  0x2b   :  { %s4310_s8 = scalar_lea.vmem %s45_s23, 768  ;;  %p4315_p6 = scmp.lt.s32.totalorder %s45_s23, %s45_s23 }
  0x2c   :  { %p4311_p5 = scmp.ne.s32.totalorder %s45_s23, %s4310_s8  ;;  %p4316_p7 = scmp.lt.s32.totalorder %s4310_s8, %s4310_s8 }
  0x2e   :  { %p4317_p8 = por %p4316_p7, %p4315_p6 }
  0x30   :  { %p4318_p9 = pnand %p4317_p8, %p4311_p5 }
  0x32   :  { %4321 = shalt.err (!%p4318_p9)
}
  0x33   :  { %s4379_s0 = smov 64   ;;  %s4380_s24 = smov 4  }
  0x34   :  { %50 = dma.hbm_to_vmem [thread:$0]  %s6348_s2, 768, %s45_s23, [#allocation6], %s4379_s0, %s4379_s0, %s4380_s24  }
  0x35   :  { %s4381_s13 = smov [#allocation8]   ;;  %s4322_s17 = scalar_lea.hbm %s6349_s3, 768 }
  0x36   :  { %s56_s14 = sshll.u32 %s4381_s13, 4  ;;  %p4323_p10 = scmp.ne.s32.totalorder %s6349_s3, %s4322_s17  ;;  %s57_s14 = int_to_ptr.vmem [resolvable:$true] %s56_s14 }
  0x37   :  { %p4326_p11 = scmp.lt.u32.totalorder %s4322_s17, %s6349_s3 }
  0x39   :  { %p4328_p12 = pnand %p4326_p11, %p4323_p10 }
  0x3b   :  { %4331 = shalt.err (!%p4328_p12)
}
  0x3c   :  { %s4332_s21 = scalar_lea.vmem %s57_s14, 768  ;;  %p4337_p0 = scmp.lt.s32.totalorder %s57_s14, %s57_s14 }
  0x3d   :  { %p4333_p13 = scmp.ne.s32.totalorder %s57_s14, %s4332_s21  ;;  %p4338_p1 = scmp.lt.s32.totalorder %s4332_s21, %s4332_s21 }
  0x3f   :  { %p4339_p2 = por %p4338_p1, %p4337_p0 }
  0x41   :  { %p4340_p3 = pnand %p4339_p2, %p4333_p13 }
  0x43   :  { %4343 = shalt.err (!%p4340_p3)
}
  0x44   :  { %62 = dma.hbm_to_vmem [thread:$0]  %s6349_s3, 768, %s57_s14, [#allocation9], %s4379_s0, %s4379_s0, %s4380_s24  }
  0x45   :  { %4366 = dma.done.wait [#allocation3], 4096  }
  0x46   :  { %4367 = vsyncadd [#allocation3], 4294963200 }
  0x47   :  { %4368 = dma.done.wait [#allocation6], 4864  }
  0x48   :  { %4369 = vsyncadd [#allocation6], 4294962432 }
  0x49   :  { %4370 = dma.done.wait [#allocation9], 768  }
  0x4a   :  { %4371 = vsyncadd [#allocation9], 4294966528  ;;  %v3987_v0 = vld [vmem:[#allocation7] sm:$0xff]   ;;  %v3988_v1 = vld [vmem:[#allocation7 + $0x8] sm:$0xff]   ;;  %vm199_vm0 = vcmask 261120  }
  0x4b   :  { %3942 = vmatprep.subr.bf16.mxu1 %v3987_v0  ;;  %v96_v2 = vld [vmem:[#allocation2 + $0x80] sm:$0xff]  ;;  %v97_v3 = vld [vmem:[#allocation2 + $0x88] sm:$0xff]  ;;  %3598 = vmatprep.subr.bf16.mxu0 %v3987_v0  ;;  %v98_v5 = vld [vmem:[#allocation2 + $0x90] sm:$0xff] }
  0x4c   :  { %3944 = vmatpush3.bf16.msra.mxu1 %v3987_v0  ;;  %v4479_v4 = vpack.c.bf16 %v97_v3, %v96_v2  ;;  %v99_v6 = vld [vmem:[#allocation2 + $0x98] sm:$0xff]  ;;  %3599 = vmatpush3.bf16.msra.mxu0 %v3987_v0  ;;  %v100_v7 = vld [vmem:[#allocation2 + $0xa0] sm:$0xff]  ;;  %v101_v8 = vld [vmem:[#allocation2 + $0xa8] sm:$0xff] }
  0x4d   :  { %3943 = vmatprep.subr.bf16.mxu1 %v3988_v1  ;;  %3600 = vmatprep.subr.bf16.mxu0 %v3988_v1  ;;  %v4483_v9 = vpack.c.bf16 %v99_v6, %v98_v5  ;;  %v4485_v10 = vpack.c.bf16 %v101_v8, %v100_v7  ;;  %v3989_v11 = vld [vmem:[#allocation8] sm:$0xff]   ;;  %v3990_v12 = vld [vmem:[#allocation8 + $0x8] sm:$0xff]   ;;  %v104_v15 = vld [vmem:[#allocation2 + $0xc0] sm:$0xff] }
  0x4e   :  { %3618 = vmatprep.mubr.msk.bf16.mxu1 %vm199_vm0, %v4479_v4  ;;  %v102_v13 = vld [vmem:[#allocation2 + $0xb0] sm:$0xff]  ;;  %v103_v14 = vld [vmem:[#allocation2 + $0xb8] sm:$0xff]  ;;  %v105_v16 = vld [vmem:[#allocation2 + $0xc8] sm:$0xff] }
  0x4f   :  { %v80_v17 = vld [vmem:[#allocation2] sm:$0xff]  ;;  %v81_v18 = vld [vmem:[#allocation2 + $0x8] sm:$0xff]  ;;  %v82_v19 = vld [vmem:[#allocation2 + $0x10] sm:$0xff]  ;;  %v4493_v22 = vpack.c.bf16 %v103_v14, %v102_v13  ;;  %v4497_v25 = vpack.c.bf16 %v105_v16, %v104_v15 }
  0x50   :  { %3945 = vmatpush3.bf16.msra.mxu1 %v3988_v1  ;;  %3601 = vmatpush3.bf16.msra.mxu0 %v3988_v1  ;;  %v4491_v20 = vpack.c.bf16 %v81_v18, %v80_v17  ;;  %v83_v21 = vld [vmem:[#allocation2 + $0x18] sm:$0xff]  ;;  %v84_v24 = vld [vmem:[#allocation2 + $0x20] sm:$0xff]  ;;  %v85_v26 = vld [vmem:[#allocation2 + $0x28] sm:$0xff] }
  0x51   :  { %3634 = vmatprep.subr.bf16.mxu1 %v3989_v11  ;;  %6422 = vst [vmem:[#allocation15_spill] sm:$0xff] %v4493_v22  ;;  %v4495_v23 = vpack.c.bf16 %v83_v21, %v82_v19  ;;  %6423 = vst [vmem:[#allocation16_spill] sm:$0xff] %v4497_v25  ;;  %v4503_v27 = vpack.c.bf16 %v85_v26, %v84_v24  ;;  %v86_v28 = vld [vmem:[#allocation2 + $0x30] sm:$0xff]  ;;  %v87_v29 = vld [vmem:[#allocation2 + $0x38] sm:$0xff] }
  0x52   :  { %3602 = vmatprep.mubr.msk.bf16.mxu0 %vm199_vm0, %v4491_v20  ;;  %v88_v30 = vld [vmem:[#allocation2 + $0x40] sm:$0xff]  ;;  %v89_v31 = vld [vmem:[#allocation2 + $0x48] sm:$0xff]  ;;  %v106_v32 = vld [vmem:[#allocation2 + $0xd0] sm:$0xff]  ;;  %v4511_v36 = vpack.c.bf16 %v87_v29, %v86_v28 }
  0x53   :  { %3619 = vmatmul.mubr.msk.bf16.vlgmr.msra.gmra.mrb[0].mxu1 %vm199_vm0, %v4483_v9  ;;  %3603 = vmatmul.mubr.msk.bf16.vlgmr.msra.gmra.mrb[0].mxu0 %vm199_vm0, %v4495_v23  ;;  %v107_v33 = vld [vmem:[#allocation2 + $0xd8] sm:$0xff]  ;;  %v108_v34 = vld [vmem:[#allocation2 + $0xe0] sm:$0xff]  ;;  %v109_v35 = vld [vmem:[#allocation2 + $0xe8] sm:$0xff]  ;;  %v4513_v37 = vpack.c.bf16 %v89_v31, %v88_v30 }
  0x54   :  { %3622 = vmatprep.mubr.msk.bf16.mxu1 %vm199_vm0, %v4485_v10  ;;  %3635 = vmatpush3.bf16.msra.mxu1 %v3989_v11  ;;  %v4515_v38 = vpack.c.bf16 %v107_v33, %v106_v32  ;;  %v4517_v39 = vpack.c.bf16 %v109_v35, %v108_v34  ;;  %v90_v40 = vld [vmem:[#allocation2 + $0x50] sm:$0xff]  ;;  %v91_v41 = vld [vmem:[#allocation2 + $0x58] sm:$0xff]  ;;  %v92_v44 = vld [vmem:[#allocation2 + $0x60] sm:$0xff] }
  0x55   :  { %3636 = vmatprep.subr.bf16.mxu1 %v3990_v12  ;;  %3606 = vmatprep.mubr.msk.bf16.mxu0 %vm199_vm0, %v4503_v27  ;;  %v110_v42 = vld [vmem:[#allocation2 + $0xf0] sm:$0xff]  ;;  %v111_v43 = vld [vmem:[#allocation2 + $0xf8] sm:$0xff]  ;;  %v93_v45 = vld [vmem:[#allocation2 + $0x68] sm:$0xff]  ;;  %v4527_v48 = vpack.c.bf16 %v91_v41, %v90_v40 }
  0x56   :  { %6424 = vst [vmem:[#allocation17_spill] sm:$0xff] %v4515_v38  ;;  %6425 = vst [vmem:[#allocation18_spill] sm:$0xff] %v4517_v39  ;;  %v128_v46 = vld [vmem:[#allocation5] sm:$0xff]  ;;  %v129_v47 = vld [vmem:[#allocation5 + $0x8] sm:$0xff]  ;;  %v4529_v49 = vpack.c.bf16 %v93_v45, %v92_v44  ;;  %v4531_v50 = vpack.c.bf16 %v111_v43, %v110_v42 }
  0x57   :  { %v4533_v51 = vpack.c.bf16 %v129_v47, %v128_v46  ;;  %v94_v52 = vld [vmem:[#allocation2 + $0x70] sm:$0xff]  ;;  %v95_v53 = vld [vmem:[#allocation2 + $0x78] sm:$0xff]  ;;  %v132_v56 = vld [vmem:[#allocation5 + $0x20] sm:$0xff] }
  0x58   :  { %3637 = vmatpush3.bf16.msra.mxu1 %v3990_v12  ;;  %6426 = vst [vmem:[#allocation19_spill] sm:$0xff] %v4531_v50  ;;  %v130_v54 = vld [vmem:[#allocation5 + $0x10] sm:$0xff]  ;;  %v131_v55 = vld [vmem:[#allocation5 + $0x18] sm:$0xff]  ;;  %v133_v57 = vld [vmem:[#allocation5 + $0x28] sm:$0xff]  ;;  %v4543_v58 = vpack.c.bf16 %v95_v53, %v94_v52 }
  0x59   :  { %v4545_v59 = vpack.c.bf16 %v131_v55, %v130_v54  ;;  %v4547_v60 = vpack.c.bf16 %v133_v57, %v132_v56  ;;  %v134_v61 = vld [vmem:[#allocation5 + $0x30] sm:$0xff]  ;;  %v135_v62 = vld [vmem:[#allocation5 + $0x38] sm:$0xff]  ;;  %v136_v63 = vld [vmem:[#allocation5 + $0x40] sm:$0xff] }
  0x5a   :  { %v137_v0 = vld [vmem:[#allocation5 + $0x48] sm:$0xff]  ;;  %v4555_v1 = vpack.c.bf16 %v135_v62, %v134_v61  ;;  %v138_v3 = vld [vmem:[#allocation5 + $0x50] sm:$0xff]  ;;  %v139_v5 = vld [vmem:[#allocation5 + $0x58] sm:$0xff] }
  0x5b   :  { %3623 = vmatmul.mubr.msk.bf16.gmra.mrb[4].mxu1 %vm199_vm0, %v4493_v22  ;;  %3607 = vmatmul.mubr.msk.bf16.gmra.mrb[4].mxu0 %vm199_vm0, %v4511_v36  ;;  %6427 = vst [vmem:[#allocation20_spill] sm:$0xff] %v4545_v59  ;;  %6428 = vst [vmem:[#allocation21_spill] sm:$0xff] %v4547_v60  ;;  %v4557_v2 = vpack.c.bf16 %v137_v0, %v136_v63  ;;  %v140_v6 = vld [vmem:[#allocation5 + $0x60] sm:$0xff]  ;;  %v141_v7 = vld [vmem:[#allocation5 + $0x68] sm:$0xff]  ;;  %v4563_v8 = vpack.c.bf16 %v139_v5, %v138_v3 }
  0x5c   :  { %3626 = vmatprep.mubr.msk.bf16.mxu1 %vm199_vm0, %v4497_v25  ;;  %3610 = vmatprep.mubr.msk.bf16.mxu0 %vm199_vm0, %v4513_v37  ;;  %6429 = vst [vmem:[#allocation22_spill] sm:$0xff] %v4555_v1  ;;  %v4565_v11 = vpack.c.bf16 %v141_v7, %v140_v6  ;;  %v142_v12 = vld [vmem:[#allocation5 + $0x70] sm:$0xff]  ;;  %v143_v13 = vld [vmem:[#allocation5 + $0x78] sm:$0xff]  ;;  %v144_v14 = vld [vmem:[#allocation5 + $0x80] sm:$0xff] }
  0x5d   :  { %6430 = vst [vmem:[#allocation23_spill] sm:$0xff] %v4557_v2  ;;  %6431 = vst [vmem:[#allocation24_spill] sm:$0xff] %v4563_v8  ;;  %v145_v15 = vld [vmem:[#allocation5 + $0x88] sm:$0xff]  ;;  %v4571_v16 = vpack.c.bf16 %v143_v13, %v142_v12  ;;  %v146_v18 = vld [vmem:[#allocation5 + $0x90] sm:$0xff] }
  0x5e   :  { %6432 = vst [vmem:[#allocation25_spill] sm:$0xff] %v4565_v11  ;;  %v4573_v17 = vpack.c.bf16 %v145_v15, %v144_v14  ;;  %v147_v19 = vld [vmem:[#allocation5 + $0x98] sm:$0xff]  ;;  %v148_v21 = vld [vmem:[#allocation5 + $0xa0] sm:$0xff]  ;;  %v149_v24 = vld [vmem:[#allocation5 + $0xa8] sm:$0xff] }
  0x5f   :  { %6433 = vst [vmem:[#allocation26_spill] sm:$0xff] %v4571_v16  ;;  %v4579_v26 = vpack.c.bf16 %v147_v19, %v146_v18  ;;  %v4581_v28 = vpack.c.bf16 %v149_v24, %v148_v21  ;;  %v150_v29 = vld [vmem:[#allocation5 + $0xb0] sm:$0xff]  ;;  %v151_v30 = vld [vmem:[#allocation5 + $0xb8] sm:$0xff]  ;;  %v152_v31 = vld [vmem:[#allocation5 + $0xc0] sm:$0xff] }
  0x60   :  { %6434 = vst [vmem:[#allocation27_spill] sm:$0xff] %v4573_v17  ;;  %v153_v32 = vld [vmem:[#allocation5 + $0xc8] sm:$0xff]  ;;  %v4587_v33 = vpack.c.bf16 %v151_v30, %v150_v29  ;;  %v154_v35 = vld [vmem:[#allocation5 + $0xd0] sm:$0xff]  ;;  %v155_v40 = vld [vmem:[#allocation5 + $0xd8] sm:$0xff] }
  0x61   :  { %6435 = vst [vmem:[#allocation28_spill] sm:$0xff] %v4579_v26  ;;  %6436 = vst [vmem:[#allocation29_spill] sm:$0xff] %v4581_v28  ;;  %v4589_v34 = vpack.c.bf16 %v153_v32, %v152_v31  ;;  %v156_v41 = vld [vmem:[#allocation5 + $0xe0] sm:$0xff]  ;;  %v157_v42 = vld [vmem:[#allocation5 + $0xe8] sm:$0xff]  ;;  %v4595_v43 = vpack.c.bf16 %v155_v40, %v154_v35 }
  0x62   :  { %6437 = vst [vmem:[#allocation30_spill] sm:$0xff] %v4587_v33  ;;  %v4597_v44 = vpack.c.bf16 %v157_v42, %v156_v41  ;;  %v158_v45 = vld [vmem:[#allocation5 + $0xf0] sm:$0xff]  ;;  %v159_v46 = vld [vmem:[#allocation5 + $0xf8] sm:$0xff]  ;;  %v4610_v52 = vld [vmem:[%s6350_s4] ss:$0 sm:$0xff] }
  0x63   :  { %3627 = vmatmul.mubr.msk.bf16.gmra.mrb[8].mxu1 %vm199_vm0, %v4515_v38  ;;  %3611 = vmatmul.mubr.msk.bf16.gmra.mrb[8].mxu0 %vm199_vm0, %v4527_v48  ;;  %6438 = vst [vmem:[#allocation31_spill] sm:$0xff] %v4589_v34  ;;  %6439 = vst [vmem:[#allocation32_spill] sm:$0xff] %v4595_v43  ;;  %v4603_v47 = vpack.c.bf16 %v159_v46, %v158_v45 }
  0x64   :  { %3630 = vmatprep.mubr.msk.bf16.mxu1 %vm199_vm0, %v4517_v39  ;;  %3614 = vmatprep.mubr.msk.bf16.mxu0 %vm199_vm0, %v4529_v49  ;;  %6440 = vst [vmem:[#allocation33_spill] sm:$0xff] %v4597_v44 }
  0x65   :  { %6441 = vst [vmem:[#allocation34_spill] sm:$0xff] %v4603_v47 }
  0x6b   :  { %3631 = vmatmul.mubr.msk.bf16.gmra.mrb[12].mxu1 %vm199_vm0, %v4531_v50  ;;  %3615 = vmatmul.mubr.msk.bf16.gmra.mrb[12].mxu0 %vm199_vm0, %v4543_v58 }
  0x6c   :  { %3638 = vmatprep.mubr.msk.bf16.mxu1 %vm199_vm0, %v4533_v51 }
  0x73   :  { %3639 = vmatmul.mubr.msk.bf16.vlgmr.msra.gmra.mrb[16].mxu1 %vm199_vm0, %v4545_v59 }
  0x74   :  { %3642 = vmatprep.mubr.msk.bf16.mxu1 %vm199_vm0, %v4547_v60 }
  0x7b   :  { %3643 = vmatmul.mubr.msk.bf16.gmra.mrb[20].mxu1 %vm199_vm0, %v4555_v1 }
  0x7c   :  { %3646 = vmatprep.mubr.msk.bf16.mxu1 %vm199_vm0, %v4557_v2 }
  0x83   :  { %3647 = vmatmul.mubr.msk.bf16.gmra.mrb[24].mxu1 %vm199_vm0, %v4563_v8 }
  0x84   :  { %3650 = vmatprep.mubr.msk.bf16.mxu1 %vm199_vm0, %v4565_v11 }
  0x8b   :  { %3651 = vmatmul.mubr.msk.bf16.gmra.mrb[28].mxu1 %vm199_vm0, %v4571_v16 }
  0x8c   :  { %3654 = vmatprep.mubr.msk.bf16.mxu1 %vm199_vm0, %v4573_v17 }
  0x93   :  { %3655 = vmatmul.mubr.msk.bf16.gmra.mrb[32].mxu1 %vm199_vm0, %v4579_v26 }
  0x94   :  { %3658 = vmatprep.mubr.msk.bf16.mxu1 %vm199_vm0, %v4581_v28 }
  0x9b   :  { %3659 = vmatmul.mubr.msk.bf16.gmra.mrb[36].mxu1 %vm199_vm0, %v4587_v33 }
  0x9c   :  { %3662 = vmatprep.mubr.msk.bf16.mxu1 %vm199_vm0, %v4589_v34 }
  0xa3   :  { %3663 = vmatmul.mubr.msk.bf16.gmra.mrb[40].mxu1 %vm199_vm0, %v4595_v43 }
  0xa4   :  { %3666 = vmatprep.mubr.msk.bf16.mxu1 %vm199_vm0, %v4597_v44 }
  0xab   :  { %3667 = vmatmul.mubr.msk.bf16.gmra.mrb[44].mxu1 %vm199_vm0, %v4603_v47 }
 0x126   :  { %v3620_v53 = vpop.f32.mrb[0].mxu1  ;;  %v3604_v5 = vpop.f32.mrb[0].mxu0 }
 0x127   :  { %v4613_v54 = vadd.f32 %v3620_v53, %v4610_v52  ;;  %v346_v55 = vpop.f32.mrb[1].mxu1  ;;  %v4629_v6 = vadd.f32 %v3604_v5, %v4610_v52  ;;  %v282_v7 = vpop.f32.mrb[1].mxu0 }
 0x128   :  { %v3621_v56 = vpop.f32.mrb[2].mxu1  ;;  %v4619_v62 = vadd.f32 %v4610_v52, %v346_v55  ;;  %v283_v13 = vadd.f32 %v4610_v52, %v282_v7  ;;  %v3605_v14 = vpop.f32.mrb[2].mxu0 }
 0x129   :  { %v4616_v57 = vadd.f32 %v3621_v56, %v4610_v52  ;;  %v349_v61 = vpop.f32.mrb[3].mxu1  ;;  %v4636_v19 = vadd.f32 %v3605_v14, %v4610_v52  ;;  %v285_v21 = vpop.f32.mrb[3].mxu0 }
 0x12a   :  { %v4622_v63 = vadd.f32 %v4610_v52, %v349_v61  ;;  %v286_v30 = vadd.f32 %v4610_v52, %v285_v21 }
 0x12c   :  { %v641_v41 = vpack.c.bf16 %v286_v30, %v283_v13 }
 0x12e   :  { %v3624_v12 = vpop.f32.mrb[4].mxu1  ;;  %v3608_v46 = vpop.f32.mrb[4].mxu0  ;;  %3674 = vmatprep.mubr.msk.bf16.mxu0 %vm199_vm0, %v641_v41 }
 0x12f   :  { %v4633_v15 = vadd.f32 %v3624_v12, %v4610_v52  ;;  %v362_v18 = vpop.f32.mrb[5].mxu1  ;;  %v4656_v53 = vadd.f32 %v3608_v46, %v4610_v52  ;;  %v298_v55 = vpop.f32.mrb[5].mxu0 }
 0x130   :  { %v4639_v24 = vadd.f32 %v4610_v52, %v362_v18  ;;  %v3625_v29 = vpop.f32.mrb[6].mxu1  ;;  %v299_v61 = vadd.f32 %v4610_v52, %v298_v55  ;;  %v3609_v5 = vpop.f32.mrb[6].mxu0 }
 0x131   :  { %v4643_v31 = vadd.f32 %v3625_v29, %v4610_v52  ;;  %v365_v32 = vpop.f32.mrb[7].mxu1  ;;  %v4663_v13 = vadd.f32 %v3609_v5, %v4610_v52  ;;  %v301_v14 = vpop.f32.mrb[7].mxu0 }
 0x132   :  { %v4648_v40 = vadd.f32 %v4610_v52, %v365_v32  ;;  %v302_v29 = vadd.f32 %v4610_v52, %v301_v14 }
 0x134   :  { %v643_v55 = vpack.c.bf16 %v302_v29, %v299_v61 }
 0x136   :  { %v3628_v56 = vpop.f32.mrb[8].mxu1  ;;  %3682 = vmatprep.mubr.msk.bf16.mxu1 %vm199_vm0, %v643_v55 }
 0x137   :  { %v4660_v7 = vadd.f32 %v3628_v56, %v4610_v52  ;;  %v378_v12 = vpop.f32.mrb[9].mxu1 }
 0x138   :  { %v4666_v18 = vadd.f32 %v4610_v52, %v378_v12  ;;  %v3629_v21 = vpop.f32.mrb[10].mxu1  ;;  %v3612_v12 = vpop.f32.mrb[8].mxu0 }
 0x139   :  { %v4670_v30 = vadd.f32 %v3629_v21, %v4610_v52  ;;  %v381_v32 = vpop.f32.mrb[11].mxu1  ;;  %v4683_v14 = vadd.f32 %v3612_v12, %v4610_v52  ;;  %v314_v21 = vpop.f32.mrb[9].mxu0 }
 0x13a   :  { %v4675_v46 = vadd.f32 %v4610_v52, %v381_v32  ;;  %v4686_v0 = vadd.f32 %v4610_v52, %v314_v21  ;;  %v3613_v32 = vpop.f32.mrb[10].mxu0 }
 0x13b   :  { %v4692_v56 = vadd.f32 %v3613_v32, %v4610_v52  ;;  %v317_v5 = vpop.f32.mrb[11].mxu0 }
 0x13c   :  { %v4698_v12 = vadd.f32 %v4610_v52, %v317_v5 }
 0x13e   :  { %v3632_v42 = vpop.f32.mrb[12].mxu1  ;;  %v3616_v35 = vpop.f32.mrb[12].mxu0 }
 0x13f   :  { %v4689_v61 = vadd.f32 %v3632_v42, %v4610_v52  ;;  %v394_v29 = vpop.f32.mrb[13].mxu1  ;;  %v330_v47 = vpop.f32.mrb[13].mxu0 }
 0x140   :  { %v4695_v45 = vadd.f32 %v4610_v52, %v394_v29  ;;  %v3633_v55 = vpop.f32.mrb[14].mxu1  ;;  %v4723_v42 = vadd.f32 %v4610_v52, %v330_v47  ;;  %v3617_v32 = vpop.f32.mrb[14].mxu0 }
 0x141   :  { %v4701_v3 = vadd.f32 %v3633_v55, %v4610_v52  ;;  %v397_v21 = vpop.f32.mrb[15].mxu1  ;;  %v4715_v55 = vadd.f32 %v3616_v35, %v4610_v52  ;;  %v4726_v29 = vadd.f32 %v3617_v32, %v4610_v52  ;;  %v333_v5 = vpop.f32.mrb[15].mxu0 }
 0x142   :  { %v4706_v41 = vadd.f32 %v4610_v52, %v397_v21  ;;  %v4720_v21 = vld [vmem:[%s6351_s5] ss:$0 sm:$0xff]  ;;  %v4729_v35 = vadd.f32 %v4610_v52, %v333_v5 }
 0x144   :  { %v647_v32 = vpack.c.bf16 %v4729_v35, %v4723_v42 }
 0x146   :  { %v3640_v44 = vpop.f32.mrb[16].mxu1 }
 0x147   :  { %v514_v43 = vpop.f32.mrb[17].mxu1  ;;  %v523_v34 = vadd.f32 %v3640_v44, %v4720_v21 }
 0x148   :  { %v3641_v50 = vpop.f32.mrb[18].mxu1  ;;  %v515_v47 = vadd.f32 %v4720_v21, %v514_v43 }
 0x149   :  { %v526_v33 = vadd.f32 %v3641_v50, %v4720_v21  ;;  %v517_v39 = vpop.f32.mrb[19].mxu1 }
 0x14a   :  { %v518_v28 = vadd.f32 %v4720_v21, %v517_v39 }
 0x14b   :  { %v658_v26 = vpack.c.bf16 %v526_v33, %v523_v34 }
 0x14c   :  { %v657_v25 = vpack.c.bf16 %v518_v28, %v515_v47 }
 0x14e   :  { %v3644_v22 = vpop.f32.mrb[20].mxu1  ;;  %3946 = vmatprep.subr.msk.bf16.mxu0 %vm199_vm0, %v657_v25  ;;  %v680_v44 = vsel %vm199_vm0, %v657_v25, 0  ;;  %v683_v25 = vsel %vm199_vm0, %v658_v26, 0 }
 0x14f   :  { %v530_v52 = vpop.f32.mrb[21].mxu1  ;;  %3671 = vmatpush3.bf16.xpose.msra.mxu0 %v680_v44  ;;  %v539_v5 = vadd.f32 %v3644_v22, %v4720_v21 }
 0x150   :  { %v3645_v50 = vpop.f32.mrb[22].mxu1  ;;  %3947 = vmatprep.subr.msk.bf16.mxu0 %vm199_vm0, %v658_v26  ;;  %v531_v38 = vadd.f32 %v4720_v21, %v530_v52 }
 0x151   :  { %v542_v43 = vadd.f32 %v3645_v50, %v4720_v21  ;;  %v533_v39 = vpop.f32.mrb[23].mxu1 }
 0x152   :  { %v534_v33 = vadd.f32 %v4720_v21, %v533_v39 }
 0x153   :  { %v660_v28 = vpack.c.bf16 %v542_v43, %v539_v5 }
 0x154   :  { %v659_v34 = vpack.c.bf16 %v534_v33, %v531_v38  ;;  %v6442_v33 = vpack.c.bf16 %v4636_v19, %v4629_v6 }
 0x156   :  { %v3648_v42 = vpop.f32.mrb[24].mxu1  ;;  %3948 = vmatprep.subr.msk.bf16.mxu1 %vm199_vm0, %v659_v34  ;;  %v741_v35 = vsel %vm199_vm0, %v659_v34, 0  ;;  %v744_v34 = vsel %vm199_vm0, %v660_v28, 0 }
 0x157   :  { %v546_v47 = vpop.f32.mrb[25].mxu1  ;;  %3673 = vmatpush3.bf16.xpose.msra.mxu0 %v683_v25  ;;  %3679 = vmatpush3.bf16.xpose.msra.mxu1 %v741_v35  ;;  %v555_v44 = vadd.f32 %v3648_v42, %v4720_v21 }
 0x158   :  { %v3649_v22 = vpop.f32.mrb[26].mxu1  ;;  %3949 = vmatprep.subr.msk.bf16.mxu1 %vm199_vm0, %v660_v28  ;;  %v547_v38 = vadd.f32 %v4720_v21, %v546_v47  ;;  %v6443_v47 = vpack.c.bf16 %v4698_v12, %v4686_v0 }
 0x159   :  { %v558_v52 = vadd.f32 %v3649_v22, %v4720_v21  ;;  %v549_v50 = vpop.f32.mrb[27].mxu1 }
 0x15a   :  { %v550_v5 = vadd.f32 %v4720_v21, %v549_v50 }
 0x15b   :  { %v662_v43 = vpack.c.bf16 %v558_v52, %v555_v44 }
 0x15c   :  { %v661_v39 = vpack.c.bf16 %v550_v5, %v547_v38  ;;  %v6444_v5 = vpack.c.bf16 %v4663_v13, %v4656_v53 }
 0x15d   :  { %v805_v0 = vsel %vm199_vm0, %v662_v43, 0 }
 0x15e   :  { %v3652_v26 = vpop.f32.mrb[28].mxu1  ;;  %3675 = vmatmul.mubr.msk.bf16.vlgmr.msra.gmra.mrb[16].mxu0 %vm199_vm0, %v6442_v33  ;;  %3950 = vmatprep.subr.msk.bf16.mxu0 %vm199_vm0, %v661_v39  ;;  %v802_v42 = vsel %vm199_vm0, %v661_v39, 0 }
 0x15f   :  { %v562_v25 = vpop.f32.mrb[29].mxu1  ;;  %3681 = vmatpush3.bf16.xpose.msra.mxu1 %v744_v34  ;;  %3687 = vmatpush3.bf16.xpose.msra.mxu0 %v802_v42  ;;  %v571_v6 = vadd.f32 %v3652_v26, %v4720_v21 }
 0x160   :  { %v3653_v35 = vpop.f32.mrb[30].mxu1  ;;  %3951 = vmatprep.subr.msk.bf16.mxu0 %vm199_vm0, %v662_v43  ;;  %3690 = vmatprep.mubr.msk.bf16.mxu0 %vm199_vm0, %v6443_v47  ;;  %v563_v28 = vadd.f32 %v4720_v21, %v562_v25  ;;  %v6445_v47 = vpack.c.bf16 %v4692_v56, %v4683_v14 }
 0x161   :  { %v574_v19 = vadd.f32 %v3653_v35, %v4720_v21  ;;  %v565_v22 = vpop.f32.mrb[31].mxu1 }
 0x162   :  { %v566_v44 = vadd.f32 %v4720_v21, %v565_v22  ;;  %v6446_v22 = vpack.c.bf16 %v4622_v63, %v4619_v62  ;;  %v6447_v62 = vpack.c.bf16 %v4726_v29, %v4715_v55 }
 0x163   :  { %v664_v52 = vpack.c.bf16 %v574_v19, %v571_v6 }
 0x164   :  { %v663_v50 = vpack.c.bf16 %v566_v44, %v563_v28 }
 0x166   :  { %v3656_v38 = vpop.f32.mrb[32].mxu1  ;;  %3683 = vmatmul.mubr.msk.bf16.vlgmr.msra.gmra.mrb[48].mxu1 %vm199_vm0, %v6444_v5  ;;  %3952 = vmatprep.subr.msk.bf16.mxu1 %vm199_vm0, %v663_v50  ;;  %v863_v12 = vsel %vm199_vm0, %v663_v50, 0 }
 0x167   :  { %v578_v39 = vpop.f32.mrb[33].mxu1  ;;  %3689 = vmatpush3.bf16.xpose.msra.mxu0 %v805_v0  ;;  %3695 = vmatpush3.bf16.xpose.msra.mxu1 %v863_v12  ;;  %v587_v33 = vadd.f32 %v3656_v38, %v4720_v21 }
 0x168   :  { %v3657_v26 = vpop.f32.mrb[34].mxu1  ;;  %3953 = vmatprep.subr.msk.bf16.mxu1 %vm199_vm0, %v664_v52  ;;  %3698 = vmatprep.mubr.msk.bf16.mxu1 %vm199_vm0, %v647_v32  ;;  %v579_v34 = vadd.f32 %v4720_v21, %v578_v39  ;;  %v866_v32 = vsel %vm199_vm0, %v664_v52, 0 }
 0x169   :  { %v590_v53 = vadd.f32 %v3657_v26, %v4720_v21  ;;  %v581_v13 = vpop.f32.mrb[35].mxu1  ;;  %v6448_v26 = vpack.c.bf16 %v4648_v40, %v4639_v24  ;;  %v6449_v24 = vpack.c.bf16 %v4616_v57, %v4613_v54 }
 0x16a   :  { %v582_v42 = vadd.f32 %v4720_v21, %v581_v13 }
 0x16b   :  { %v666_v43 = vpack.c.bf16 %v590_v53, %v587_v33 }
 0x16c   :  { %v665_v25 = vpack.c.bf16 %v582_v42, %v579_v34 }
 0x16d   :  { %v927_v63 = vsel %vm199_vm0, %v666_v43, 0 }
 0x16e   :  { %v3660_v35 = vpop.f32.mrb[36].mxu1  ;;  %3691 = vmatmul.mubr.msk.bf16.vlgmr.msra.gmra.mrb[20].mxu0 %vm199_vm0, %v6445_v47  ;;  %3954 = vmatprep.subr.msk.bf16.mxu0 %vm199_vm0, %v665_v25  ;;  %v924_v6 = vsel %vm199_vm0, %v665_v25, 0 }
 0x16f   :  { %v594_v19 = vpop.f32.mrb[37].mxu1  ;;  %3697 = vmatpush3.bf16.xpose.msra.mxu1 %v866_v32  ;;  %3703 = vmatpush3.bf16.xpose.msra.mxu0 %v924_v6  ;;  %v603_v56 = vadd.f32 %v3660_v35, %v4720_v21 }
 0x170   :  { %3706 = vmatprep.mubr.msk.bf16.mxu0 %vm199_vm0, %v6446_v22  ;;  %v3661_v28 = vpop.f32.mrb[38].mxu1  ;;  %3955 = vmatprep.subr.msk.bf16.mxu0 %vm199_vm0, %v666_v43  ;;  %v595_v52 = vadd.f32 %v4720_v21, %v594_v19  ;;  %v6450_v19 = vpack.c.bf16 %v4675_v46, %v4666_v18 }
 0x171   :  { %v606_v14 = vadd.f32 %v3661_v28, %v4720_v21  ;;  %v597_v44 = vpop.f32.mrb[39].mxu1 }
 0x172   :  { %v598_v50 = vadd.f32 %v4720_v21, %v597_v44  ;;  %v3991_v44 = vld [vmem:[#allocation7 + $0x10] sm:$0xff]  }
 0x173   :  { %v668_v38 = vpack.c.bf16 %v606_v14, %v603_v56 }
 0x174   :  { %v667_v5 = vpack.c.bf16 %v598_v50, %v595_v52  ;;  %v6451_v52 = vpack.c.bf16 %v4643_v31, %v4633_v15  ;;  %v6452_v50 = vpack.c.bf16 %v4706_v41, %v4695_v45  ;;  %v3992_v31 = vld [vmem:[#allocation7 + $0x18] sm:$0xff]   ;;  %v3993_v45 = vld [vmem:[#allocation7 + $0x20] sm:$0xff]   ;;  %v3994_v41 = vld [vmem:[#allocation7 + $0x28] sm:$0xff]  }
 0x175   :  { %v988_v40 = vsel %vm199_vm0, %v668_v38, 0 }
 0x176   :  { %v3664_v0 = vpop.f32.mrb[40].mxu1  ;;  %3699 = vmatmul.mubr.msk.bf16.vlgmr.msra.gmra.mrb[52].mxu1 %vm199_vm0, %v6447_v62  ;;  %3956 = vmatprep.subr.msk.bf16.mxu1 %vm199_vm0, %v667_v5  ;;  %v985_v12 = vsel %vm199_vm0, %v667_v5, 0  ;;  %v3996_v5 = vld [vmem:[#allocation8 + $0x18] sm:$0xff]   ;;  %v6459_v62 = vld [vmem:[#allocation17_spill] sm:$0xff] }
 0x177   :  { %v610_v39 = vpop.f32.mrb[41].mxu1  ;;  %3705 = vmatpush3.bf16.xpose.msra.mxu0 %v927_v63  ;;  %3711 = vmatpush3.bf16.xpose.msra.mxu1 %v985_v12  ;;  %v619_v29 = vadd.f32 %v3664_v0, %v4720_v21  ;;  %v6454_v0 = vpack.c.bf16 %v4701_v3, %v4689_v61  ;;  %v6455_v3 = vld [vmem:[#allocation15_spill] sm:$0xff]  ;;  %v6458_v61 = vld [vmem:[#allocation29_spill] sm:$0xff]  ;;  %v6460_v63 = vld [vmem:[#allocation18_spill] sm:$0xff] }
 0x178   :  { %3714 = vmatprep.mubr.msk.bf16.mxu1 %vm199_vm0, %v6448_v26  ;;  %v3665_v33 = vpop.f32.mrb[42].mxu1  ;;  %3957 = vmatprep.subr.msk.bf16.mxu1 %vm199_vm0, %v668_v38  ;;  %v611_v13 = vadd.f32 %v4720_v21, %v610_v39  ;;  %v6453_v38 = vpack.c.bf16 %v4670_v30, %v4660_v7  ;;  %v6456_v7 = vld [vmem:[#allocation16_spill] sm:$0xff]  ;;  %v6461_v12 = vld [vmem:[#allocation30_spill] sm:$0xff]  ;;  %v6462_v39 = vld [vmem:[#allocation31_spill] sm:$0xff] }
 0x179   :  { %v622_v55 = vadd.f32 %v3665_v33, %v4720_v21  ;;  %v613_v53 = vpop.f32.mrb[43].mxu1  ;;  %v6457_v30 = vld [vmem:[#allocation28_spill] sm:$0xff]  ;;  %v6463_v26 = vld [vmem:[#allocation19_spill] sm:$0xff] }
 0x17a   :  { %v614_v34 = vadd.f32 %v4720_v21, %v613_v53  ;;  %v6464_v33 = vld [vmem:[#allocation32_spill] sm:$0xff] }
 0x17b   :  { %v670_v42 = vpack.c.bf16 %v622_v55, %v619_v29  ;;  %v6465_v29 = vld [vmem:[#allocation33_spill] sm:$0xff]  ;;  %v6466_v55 = vld [vmem:[#allocation34_spill] sm:$0xff] }
 0x17c   :  { %v669_v43 = vpack.c.bf16 %v614_v34, %v611_v13 }
 0x17d   :  { %v1049_v18 = vsel %vm199_vm0, %v670_v42, 0 }
 0x17e   :  { %v3668_v25 = vpop.f32.mrb[44].mxu1  ;;  %3707 = vmatmul.mubr.msk.bf16.vlgmr.msra.gmra.mrb[24].mxu0 %vm199_vm0, %v6449_v24  ;;  %3958 = vmatprep.subr.msk.bf16.mxu0 %vm199_vm0, %v669_v43  ;;  %v1046_v35 = vsel %vm199_vm0, %v669_v43, 0 }
 0x17f   :  { %v635_v47 = vadd.f32 %v3668_v25, %v4720_v21  ;;  %v626_v32 = vpop.f32.mrb[45].mxu1  ;;  %3713 = vmatpush3.bf16.xpose.msra.mxu1 %v988_v40  ;;  %3719 = vmatpush3.bf16.xpose.msra.mxu0 %v1046_v35 }
 0x180   :  { %v627_v6 = vadd.f32 %v4720_v21, %v626_v32  ;;  %3722 = vmatprep.mubr.msk.bf16.mxu0 %vm199_vm0, %v6450_v19  ;;  %v3669_v54 = vpop.f32.mrb[46].mxu1  ;;  %3959 = vmatprep.subr.msk.bf16.mxu0 %vm199_vm0, %v670_v42 }
 0x181   :  { %v638_v57 = vadd.f32 %v3669_v54, %v4720_v21  ;;  %v629_v22 = vpop.f32.mrb[47].mxu1 }
 0x182   :  { %v630_v28 = vadd.f32 %v4720_v21, %v629_v22  ;;  %v3995_v21 = vld [vmem:[#allocation8 + $0x10] sm:$0xff]  }
 0x183   :  { %v672_v56 = vpack.c.bf16 %v638_v57, %v635_v47 }
 0x184   :  { %v671_v14 = vpack.c.bf16 %v630_v28, %v627_v6 }
 0x185   :  { %v1110_v15 = vsel %vm199_vm0, %v672_v56, 0 }
 0x186   :  { %3715 = vmatmul.mubr.msk.bf16.vlgmr.msra.gmra.mrb[56].mxu1 %vm199_vm0, %v6451_v52  ;;  %3960 = vmatprep.subr.msk.bf16.mxu1 %vm199_vm0, %v671_v14  ;;  %v1107_v46 = vsel %vm199_vm0, %v671_v14, 0 }
 0x187   :  { %3721 = vmatpush3.bf16.xpose.msra.mxu0 %v1049_v18  ;;  %3727 = vmatpush3.bf16.xpose.msra.mxu1 %v1107_v46 }
 0x188   :  { %3730 = vmatprep.mubr.msk.bf16.mxu1 %vm199_vm0, %v6452_v50  ;;  %3961 = vmatprep.subr.msk.bf16.mxu1 %vm199_vm0, %v672_v56 }
 0x189   :  { %3734 = vmatprep.subr.bf16.mxu0 %v3991_v44 }
 0x18e   :  { %3723 = vmatmul.mubr.msk.bf16.vlgmr.msra.gmra.mrb[28].mxu0 %vm199_vm0, %v6453_v38 }
 0x18f   :  { %3729 = vmatpush3.bf16.xpose.msra.mxu1 %v1110_v15  ;;  %3735 = vmatpush3.bf16.msra.mxu0 %v3991_v44 }
 0x190   :  { %3736 = vmatprep.subr.bf16.mxu0 %v3992_v31  ;;  %3738 = vmatprep.mubr.msk.bf16.mxu0 %vm199_vm0, %v4491_v20 }
 0x191   :  { %3770 = vmatprep.subr.bf16.mxu1 %v3995_v21 }
 0x193   :  { %3737 = vmatpush3.bf16.msra.mxu0 %v3992_v31 }
 0x194   :  { %3806 = vmatprep.subr.bf16.mxu0 %v3993_v45 }
 0x196   :  { %3731 = vmatmul.mubr.msk.bf16.vlgmr.msra.gmra.mrb[60].mxu1 %vm199_vm0, %v6454_v0  ;;  %3739 = vmatmul.mubr.msk.bf16.vlgmr.msra.gmra.mrb[32].mxu0 %vm199_vm0, %v4495_v23 }
 0x197   :  { %3742 = vmatprep.mubr.msk.bf16.mxu0 %vm199_vm0, %v4503_v27  ;;  %3807 = vmatpush3.bf16.msra.mxu0 %v3993_v45 }
 0x198   :  { %3808 = vmatprep.subr.bf16.mxu0 %v3994_v41  ;;  %3771 = vmatpush3.bf16.msra.mxu1 %v3995_v21 }
 0x199   :  { %3772 = vmatprep.subr.bf16.mxu1 %v3996_v5  ;;  %3774 = vmatprep.mubr.msk.bf16.mxu1 %vm199_vm0, %v4533_v51 }
 0x19b   :  { %3809 = vmatpush3.bf16.msra.mxu0 %v3994_v41 }
 0x19c   :  { %3773 = vmatpush3.bf16.msra.mxu1 %v3996_v5 }
 0x19e   :  { %3743 = vmatmul.mubr.msk.bf16.gmra.mrb[36].mxu0 %vm199_vm0, %v4511_v36 }
 0x19f   :  { %3746 = vmatprep.mubr.msk.bf16.mxu0 %vm199_vm0, %v4513_v37  ;;  %3775 = vmatmul.mubr.msk.bf16.vlgmr.msra.gmra.mrb[64].mxu1 %vm199_vm0, %v4545_v59 }
 0x1a0   :  { %3778 = vmatprep.mubr.msk.bf16.mxu1 %vm199_vm0, %v4547_v60 }
 0x1a6   :  { %3747 = vmatmul.mubr.msk.bf16.gmra.mrb[40].mxu0 %vm199_vm0, %v4527_v48 }
 0x1a7   :  { %3750 = vmatprep.mubr.msk.bf16.mxu0 %vm199_vm0, %v4529_v49  ;;  %3779 = vmatmul.mubr.msk.bf16.gmra.mrb[68].mxu1 %vm199_vm0, %v4555_v1 }
 0x1a8   :  { %3782 = vmatprep.mubr.msk.bf16.mxu1 %vm199_vm0, %v4557_v2 }
 0x1ae   :  { %3751 = vmatmul.mubr.msk.bf16.gmra.mrb[44].mxu0 %vm199_vm0, %v4543_v58 }
 0x1af   :  { %3754 = vmatprep.mubr.msk.bf16.mxu0 %vm199_vm0, %v4479_v4  ;;  %3783 = vmatmul.mubr.msk.bf16.gmra.mrb[72].mxu1 %vm199_vm0, %v4563_v8 }
 0x1b0   :  { %3786 = vmatprep.mubr.msk.bf16.mxu1 %vm199_vm0, %v4565_v11 }
 0x1b6   :  { %3755 = vmatmul.mubr.msk.bf16.gmra.mrb[48].mxu0 %vm199_vm0, %v4483_v9 }
 0x1b7   :  { %3758 = vmatprep.mubr.msk.bf16.mxu0 %vm199_vm0, %v4485_v10  ;;  %3787 = vmatmul.mubr.msk.bf16.gmra.mrb[76].mxu1 %vm199_vm0, %v4571_v16 }
 0x1b8   :  { %3790 = vmatprep.mubr.msk.bf16.mxu1 %vm199_vm0, %v4573_v17 }
 0x1be   :  { %3759 = vmatmul.mubr.msk.bf16.gmra.mrb[52].mxu0 %vm199_vm0, %v6455_v3 }
 0x1bf   :  { %3762 = vmatprep.mubr.msk.bf16.mxu0 %vm199_vm0, %v6456_v7  ;;  %3791 = vmatmul.mubr.msk.bf16.gmra.mrb[80].mxu1 %vm199_vm0, %v6457_v30 }
 0x1c0   :  { %3794 = vmatprep.mubr.msk.bf16.mxu1 %vm199_vm0, %v6458_v61 }
 0x1c6   :  { %3763 = vmatmul.mubr.msk.bf16.gmra.mrb[56].mxu0 %vm199_vm0, %v6459_v62 }
 0x1c7   :  { %3766 = vmatprep.mubr.msk.bf16.mxu0 %vm199_vm0, %v6460_v63  ;;  %3795 = vmatmul.mubr.msk.bf16.gmra.mrb[84].mxu1 %vm199_vm0, %v6461_v12 }
 0x1c8   :  { %3798 = vmatprep.mubr.msk.bf16.mxu1 %vm199_vm0, %v6462_v39 }
 0x1ce   :  { %3767 = vmatmul.mubr.msk.bf16.gmra.mrb[60].mxu0 %vm199_vm0, %v6463_v26 }
 0x1cf   :  { %3810 = vmatprep.mubr.msk.bf16.mxu0 %vm199_vm0, %v4491_v20  ;;  %3799 = vmatmul.mubr.msk.bf16.gmra.mrb[88].mxu1 %vm199_vm0, %v6464_v33 }
 0x1d0   :  { %3802 = vmatprep.mubr.msk.bf16.mxu1 %vm199_vm0, %v6465_v29 }
 0x1d6   :  { %3811 = vmatmul.mubr.msk.bf16.vlgmr.msra.gmra.mrb[64].mxu0 %vm199_vm0, %v4495_v23 }
 0x1d7   :  { %3814 = vmatprep.mubr.msk.bf16.mxu0 %vm199_vm0, %v4503_v27  ;;  %3803 = vmatmul.mubr.msk.bf16.gmra.mrb[92].mxu1 %vm199_vm0, %v6466_v55 }
 0x1de   :  { %3815 = vmatmul.mubr.msk.bf16.gmra.mrb[68].mxu0 %vm199_vm0, %v4511_v36 }
 0x1df   :  { %3818 = vmatprep.mubr.msk.bf16.mxu0 %vm199_vm0, %v4513_v37 }
 0x1e6   :  { %3819 = vmatmul.mubr.msk.bf16.gmra.mrb[72].mxu0 %vm199_vm0, %v4527_v48 }
 0x1e7   :  { %3822 = vmatprep.mubr.msk.bf16.mxu0 %vm199_vm0, %v4529_v49 }
 0x1ee   :  { %3823 = vmatmul.mubr.msk.bf16.gmra.mrb[76].mxu0 %vm199_vm0, %v4543_v58 }
 0x1ef   :  { %3826 = vmatprep.mubr.msk.bf16.mxu0 %vm199_vm0, %v4479_v4 }
 0x1f6   :  { %3827 = vmatmul.mubr.msk.bf16.gmra.mrb[80].mxu0 %vm199_vm0, %v4483_v9 }
 0x1f7   :  { %3830 = vmatprep.mubr.msk.bf16.mxu0 %vm199_vm0, %v4485_v10 }
 0x1fe   :  { %3831 = vmatmul.mubr.msk.bf16.gmra.mrb[84].mxu0 %vm199_vm0, %v6455_v3 }
 0x1ff   :  { %3834 = vmatprep.mubr.msk.bf16.mxu0 %vm199_vm0, %v6456_v7 }
 0x206   :  { %3835 = vmatmul.mubr.msk.bf16.gmra.mrb[88].mxu0 %vm199_vm0, %v6459_v62 }
 0x207   :  { %3838 = vmatprep.mubr.msk.bf16.mxu0 %vm199_vm0, %v6460_v63 }
 0x20e   :  { %3839 = vmatmul.mubr.msk.bf16.gmra.mrb[92].mxu0 %vm199_vm0, %v6463_v26 }
 0x231   :  { %v4948_v4 = vpop.f32.mrb[16].mxu0 }
 0x232   :  { %v4950_v9 = vpop.f32.mrb[17].mxu0  ;;  %v1167_v10 = vsel %vm199_vm0, %v4948_v4, -inf }
 0x233   :  { %1168 = vmax.xlane.f32.xlu1 %v1167_v10  ;;  %v4954_v20 = vpop.f32.mrb[18].mxu0  ;;  %v1161_v23 = vsel %vm199_vm0, %v4950_v9, -inf }
 0x234   :  { %1162 = vmax.xlane.f32.xlu0 %v1161_v23  ;;  %v4958_v27 = vpop.f32.mrb[19].mxu0  ;;  %v1170_v36 = vsel %vm199_vm0, %v4954_v20, -inf }
 0x235   :  { %v1164_v37 = vsel %vm199_vm0, %v4958_v27, -inf }
 0x237   :  { %1171 = vmax.xlane.f32.xlu1 %v1170_v36 }
 0x238   :  { %1165 = vmax.xlane.f32.xlu0 %v1164_v37 }
 0x239   :  { %v4964_v48 = vpop.f32.mrb[48].mxu1 }
 0x23a   :  { %v4966_v49 = vpop.f32.mrb[49].mxu1  ;;  %v1179_v58 = vsel %vm199_vm0, %v4964_v48, -inf }
 0x23b   :  { %v4970_v53 = vpop.f32.mrb[50].mxu1  ;;  %v1173_v42 = vsel %vm199_vm0, %v4966_v49, -inf }
 0x23c   :  { %v4972_v13 = vpop.f32.mrb[51].mxu1  ;;  %1180 = vmax.xlane.f32.xlu0 %v1179_v58  ;;  %v1182_v34 = vsel %vm199_vm0, %v4970_v53, -inf }
 0x23d   :  { %1183 = vmax.xlane.f32.xlu1 %v1182_v34  ;;  %v1176_v43 = vsel %vm199_vm0, %v4972_v13, -inf }
 0x240   :  { %1174 = vmax.xlane.f32.xlu0 %v1173_v42 }
 0x241   :  { %1177 = vmax.xlane.f32.xlu1 %v1176_v43  ;;  %v4980_v25 = vpop.f32.mrb[20].mxu0 }
 0x242   :  { %v4982_v24 = vpop.f32.mrb[21].mxu0  ;;  %v1191_v40 = vsel %vm199_vm0, %v4980_v25, -inf }
 0x243   :  { %v4986_v35 = vpop.f32.mrb[22].mxu0  ;;  %v1185_v6 = vsel %vm199_vm0, %v4982_v24, -inf }
 0x244   :  { %1192 = vmax.xlane.f32.xlu0 %v1191_v40  ;;  %v4988_v47 = vpop.f32.mrb[23].mxu0  ;;  %v1194_v32 = vsel %vm199_vm0, %v4986_v35, -inf }
 0x245   :  { %1195 = vmax.xlane.f32.xlu1 %v1194_v32  ;;  %v1188_v19 = vsel %vm199_vm0, %v4988_v47, -inf }
 0x248   :  { %1186 = vmax.xlane.f32.xlu0 %v1185_v6 }
 0x249   :  { %v4996_v54 = vpop.f32.mrb[52].mxu1  ;;  %1189 = vmax.xlane.f32.xlu1 %v1188_v19 }
 0x24a   :  { %v4998_v57 = vpop.f32.mrb[53].mxu1  ;;  %v1203_v22 = vsel %vm199_vm0, %v4996_v54, -inf }
 0x24b   :  { %v5002_v28 = vpop.f32.mrb[54].mxu1  ;;  %v1197_v44 = vsel %vm199_vm0, %v4998_v57, -inf }
 0x24c   :  { %1204 = vmax.xlane.f32.xlu0 %v1203_v22  ;;  %v1206_v56 = vsel %vm199_vm0, %v5002_v28, -inf  ;;  %v5006_v14 = vpop.f32.mrb[55].mxu1 }
 0x24d   :  { %1207 = vmax.xlane.f32.xlu1 %v1206_v56  ;;  %v1200_v52 = vsel %vm199_vm0, %v5006_v14, -inf }
 0x250   :  { %1198 = vmax.xlane.f32.xlu0 %v1197_v44 }
 0x251   :  { %1201 = vmax.xlane.f32.xlu1 %v1200_v52  ;;  %v5012_v18 = vpop.f32.mrb[24].mxu0 }
 0x252   :  { %v5014_v46 = vpop.f32.mrb[25].mxu0  ;;  %v1215_v50 = vsel %vm199_vm0, %v5012_v18, -inf }
 0x253   :  { %v5018_v15 = vpop.f32.mrb[26].mxu0  ;;  %v1209_v38 = vsel %vm199_vm0, %v5014_v46, -inf }
 0x254   :  { %1216 = vmax.xlane.f32.xlu0 %v1215_v50  ;;  %v5020_v31 = vpop.f32.mrb[27].mxu0  ;;  %v1218_v21 = vsel %vm199_vm0, %v5018_v15, -inf }
 0x255   :  { %1219 = vmax.xlane.f32.xlu1 %v1218_v21  ;;  %v1212_v45 = vsel %vm199_vm0, %v5020_v31, -inf }
 0x258   :  { %1210 = vmax.xlane.f32.xlu0 %v1209_v38 }
 0x259   :  { %v5028_v41 = vpop.f32.mrb[56].mxu1  ;;  %1213 = vmax.xlane.f32.xlu1 %v1212_v45 }
 0x25a   :  { %6467 = vst [vmem:[#allocation15_spill] sm:$0xff] %v5028_v41  ;;  %v5030_v5 = vpop.f32.mrb[57].mxu1  ;;  %v1227_v0 = vsel %vm199_vm0, %v5028_v41, -inf }
 0x25b   :  { %6468 = vst [vmem:[#allocation16_spill] sm:$0xff] %v5030_v5  ;;  %v5034_v3 = vpop.f32.mrb[58].mxu1  ;;  %v1221_v63 = vsel %vm199_vm0, %v5030_v5, -inf }
 0x25c   :  { %6469 = vst [vmem:[#allocation17_spill] sm:$0xff] %v5034_v3  ;;  %v5036_v7 = vpop.f32.mrb[59].mxu1  ;;  %1228 = vmax.xlane.f32.xlu0 %v1227_v0  ;;  %v1230_v62 = vsel %vm199_vm0, %v5034_v3, -inf  ;;  %v5087_v0 = vld [vmem:[%s6351_s5 + $0x1] ss:$0 sm:$0xff] }
 0x25d   :  { %6470 = vst [vmem:[#allocation18_spill] sm:$0xff] %v5036_v7  ;;  %1231 = vmax.xlane.f32.xlu1 %v1230_v62  ;;  %v1224_v26 = vsel %vm199_vm0, %v5036_v7, -inf }
 0x260   :  { %1222 = vmax.xlane.f32.xlu0 %v1221_v63 }
 0x261   :  { %1225 = vmax.xlane.f32.xlu1 %v1224_v26  ;;  %v5044_v10 = vpop.f32.mrb[28].mxu0 }
 0x262   :  { %6471 = vst [vmem:[#allocation19_spill] sm:$0xff] %v5044_v10  ;;  %v5046_v23 = vpop.f32.mrb[29].mxu0  ;;  %v1239_v36 = vsel %vm199_vm0, %v5044_v10, -inf }
 0x263   :  { %6472 = vst [vmem:[#allocation35_spill] sm:$0xff] %v5046_v23  ;;  %v5050_v37 = vpop.f32.mrb[30].mxu0  ;;  %v1233_v42 = vsel %vm199_vm0, %v5046_v23, -inf }
 0x264   :  { %6473 = vst [vmem:[#allocation36_spill] sm:$0xff] %v5050_v37  ;;  %1240 = vmax.xlane.f32.xlu0 %v1239_v36  ;;  %v5052_v58 = vpop.f32.mrb[31].mxu0  ;;  %v1242_v34 = vsel %vm199_vm0, %v5050_v37, -inf }
 0x265   :  { %6474 = vst [vmem:[#allocation37_spill] sm:$0xff] %v5052_v58  ;;  %1243 = vmax.xlane.f32.xlu1 %v1242_v34  ;;  %v1236_v43 = vsel %vm199_vm0, %v5052_v58, -inf }
 0x268   :  { %1234 = vmax.xlane.f32.xlu0 %v1233_v42 }
 0x269   :  { %v5060_v40 = vpop.f32.mrb[60].mxu1  ;;  %v5062_v32 = vpop.f32.mrb[32].mxu0  ;;  %1237 = vmax.xlane.f32.xlu1 %v1236_v43 }
 0x26a   :  { %6475 = vst [vmem:[#allocation38_spill] sm:$0xff] %v5060_v40  ;;  %6476 = vst [vmem:[#allocation39_spill] sm:$0xff] %v5062_v32  ;;  %v5064_v6 = vpop.f32.mrb[61].mxu1  ;;  %v5066_v19 = vpop.f32.mrb[33].mxu0  ;;  %v1251_v22 = vsel %vm199_vm0, %v5060_v40, -inf }
 0x26b   :  { %6477 = vst [vmem:[#allocation40_spill] sm:$0xff] %v5064_v6  ;;  %6478 = vst [vmem:[#allocation41_spill] sm:$0xff] %v5066_v19  ;;  %v5070_v56 = vpop.f32.mrb[62].mxu1  ;;  %v5072_v44 = vpop.f32.mrb[34].mxu0  ;;  %v1245_v38 = vsel %vm199_vm0, %v5064_v6, -inf }
 0x26c   :  { %6479 = vst [vmem:[#allocation42_spill] sm:$0xff] %v5070_v56  ;;  %6480 = vst [vmem:[#allocation43_spill] sm:$0xff] %v5072_v44  ;;  %v5074_v52 = vpop.f32.mrb[63].mxu1  ;;  %1252 = vmax.xlane.f32.xlu0 %v1251_v22  ;;  %v5076_v50 = vpop.f32.mrb[35].mxu0  ;;  %v1254_v21 = vsel %vm199_vm0, %v5070_v56, -inf }
 0x26d   :  { %6481 = vst [vmem:[#allocation44_spill] sm:$0xff] %v5074_v52  ;;  %6482 = vst [vmem:[#allocation45_spill] sm:$0xff] %v5076_v50  ;;  %1255 = vmax.xlane.f32.xlu1 %v1254_v21  ;;  %v1248_v45 = vsel %vm199_vm0, %v5074_v52, -inf }
 0x270   :  { %1246 = vmax.xlane.f32.xlu0 %v1245_v38 }
 0x271   :  { %v5089_v62 = vpop.f32.mrb[36].mxu0  ;;  %1249 = vmax.xlane.f32.xlu1 %v1248_v45 }
 0x272   :  { %6483 = vst [vmem:[#allocation46_spill] sm:$0xff] %v5089_v62  ;;  %v5091_v63 = vpop.f32.mrb[37].mxu0  ;;  %v3776_v26 = vpop.f32.mrb[64].mxu1 }
 0x273   :  { %6484 = vst [vmem:[#allocation47_spill] sm:$0xff] %v5091_v63  ;;  %v5093_v36 = vpop.f32.mrb[38].mxu0  ;;  %v5096_v34 = vadd.f32 %v3776_v26, %v5087_v0  ;;  %v1790_v42 = vpop.f32.mrb[65].mxu1 }
 0x274   :  { %6485 = vst [vmem:[#allocation48_spill] sm:$0xff] %v5093_v36  ;;  %v5098_v43 = vpop.f32.mrb[39].mxu0  ;;  %v1791_v22 = vadd.f32 %v5087_v0, %v1790_v42  ;;  %v3777_v21 = vpop.f32.mrb[66].mxu1 }
 0x275   :  { %6486 = vst [vmem:[#allocation49_spill] sm:$0xff] %v5098_v43  ;;  %v5102_v38 = vadd.f32 %v3777_v21, %v5087_v0  ;;  %v1793_v40 = vpop.f32.mrb[67].mxu1 }
 0x276   :  { %v1794_v45 = vadd.f32 %v5087_v0, %v1793_v40 }
 0x278   :  { %v2103_v6 = vpack.c.bf16 %v1794_v45, %v1791_v22 }
 0x279   :  { %v5107_v52 = vpop.f32.mrb[40].mxu0 }
 0x27a   :  { %6487 = vst [vmem:[#allocation50_spill] sm:$0xff] %v5107_v52  ;;  %v5109_v26 = vpop.f32.mrb[41].mxu0  ;;  %3846 = vmatprep.mubr.msk.bf16.mxu1 %vm199_vm0, %v2103_v6  ;;  %v3780_v10 = vpop.f32.mrb[68].mxu1 }
 0x27b   :  { %6488 = vst [vmem:[#allocation51_spill] sm:$0xff] %v5109_v26  ;;  %v5112_v37 = vpop.f32.mrb[42].mxu0  ;;  %v5115_v42 = vadd.f32 %v3780_v10, %v5087_v0  ;;  %v1806_v21 = vpop.f32.mrb[69].mxu1 }
 0x27c   :  { %6489 = vst [vmem:[#allocation52_spill] sm:$0xff] %v5112_v37  ;;  %v5117_v23 = vpop.f32.mrb[43].mxu0  ;;  %v5120_v40 = vadd.f32 %v5087_v0, %v1806_v21  ;;  %v3781_v56 = vpop.f32.mrb[70].mxu1 }
 0x27d   :  { %6490 = vst [vmem:[#allocation53_spill] sm:$0xff] %v5117_v23  ;;  %v5123_v22 = vadd.f32 %v3781_v56, %v5087_v0  ;;  %v1809_v45 = vpop.f32.mrb[71].mxu1 }
 0x27e   :  { %v5126_v58 = vadd.f32 %v5087_v0, %v1809_v45 }
 0x281   :  { %v5132_v41 = vpop.f32.mrb[44].mxu0 }
 0x282   :  { %6491 = vst [vmem:[#allocation54_spill] sm:$0xff] %v5132_v41  ;;  %v5134_v3 = vpop.f32.mrb[45].mxu0  ;;  %v3784_v21 = vpop.f32.mrb[72].mxu1 }
 0x283   :  { %6492 = vst [vmem:[#allocation55_spill] sm:$0xff] %v5134_v3  ;;  %v5136_v5 = vpop.f32.mrb[46].mxu0  ;;  %v5139_v56 = vadd.f32 %v3784_v21, %v5087_v0  ;;  %v1822_v7 = vpop.f32.mrb[73].mxu1 }
 0x284   :  { %6493 = vst [vmem:[#allocation56_spill] sm:$0xff] %v5136_v5  ;;  %v5141_v55 = vpop.f32.mrb[47].mxu0  ;;  %v5144_v45 = vadd.f32 %v5087_v0, %v1822_v7  ;;  %v3785_v6 = vpop.f32.mrb[74].mxu1 }
 0x285   :  { %6494 = vst [vmem:[#allocation57_spill] sm:$0xff] %v5141_v55  ;;  %v5147_v29 = vadd.f32 %v3785_v6, %v5087_v0  ;;  %v1825_v10 = vpop.f32.mrb[75].mxu1 }
 0x286   :  { %v5150_v33 = vadd.f32 %v5087_v0, %v1825_v10 }
 0x289   :  { %v5156_v12 = vpop.f32.mrb[48].mxu0 }
 0x28a   :  { %6495 = vst [vmem:[#allocation58_spill] sm:$0xff] %v5156_v12  ;;  %v5158_v61 = vpop.f32.mrb[49].mxu0  ;;  %v3788_v7 = vpop.f32.mrb[76].mxu1 }
 0x28b   :  { %6496 = vst [vmem:[#allocation59_spill] sm:$0xff] %v5158_v61  ;;  %v5160_v30 = vpop.f32.mrb[50].mxu0  ;;  %v5163_v6 = vadd.f32 %v3788_v7, %v5087_v0  ;;  %v1838_v17 = vpop.f32.mrb[77].mxu1 }
 0x28c   :  { %6497 = vst [vmem:[#allocation60_spill] sm:$0xff] %v5160_v30  ;;  %v5165_v16 = vpop.f32.mrb[51].mxu0  ;;  %v5168_v10 = vadd.f32 %v5087_v0, %v1838_v17  ;;  %v3789_v39 = vpop.f32.mrb[78].mxu1 }
 0x28d   :  { %6498 = vst [vmem:[#allocation61_spill] sm:$0xff] %v5165_v16  ;;  %v5171_v11 = vadd.f32 %v3789_v39, %v5087_v0  ;;  %v1841_v21 = vpop.f32.mrb[79].mxu1  ;;  %v5183_v16 = vld [vmem:[%s6350_s4 + $0x1] ss:$0 sm:$0xff] }
 0x28e   :  { %v5174_v12 = vadd.f32 %v5087_v0, %v1841_v21  ;;  %6499 = vst [vmem:[#allocation62_spill] sm:$0xff] %v5183_v16 }
 0x291   :  { %v3760_v17 = vpop.f32.mrb[52].mxu0 }
 0x292   :  { %v5186_v30 = vadd.f32 %v3760_v17, %v5183_v16  ;;  %v1652_v39 = vpop.f32.mrb[53].mxu0  ;;  %v3792_v8 = vpop.f32.mrb[80].mxu1 }
 0x293   :  { %v5189_v21 = vadd.f32 %v5183_v16, %v1652_v39  ;;  %v3761_v55 = vpop.f32.mrb[54].mxu0  ;;  %v5192_v61 = vadd.f32 %v3792_v8, %v5087_v0  ;;  %v1854_v3 = vpop.f32.mrb[81].mxu1 }
 0x294   :  { %6500 = vst [vmem:[#allocation63_spill] sm:$0xff] %v5186_v30  ;;  %v5195_v7 = vadd.f32 %v3761_v55, %v5183_v16  ;;  %v1655_v5 = vpop.f32.mrb[55].mxu0  ;;  %v1855_v2 = vadd.f32 %v5087_v0, %v1854_v3  ;;  %v3793_v41 = vpop.f32.mrb[82].mxu1 }
 0x295   :  { %6501 = vst [vmem:[#allocation64_spill] sm:$0xff] %v5189_v21  ;;  %v5199_v17 = vadd.f32 %v5183_v16, %v1655_v5  ;;  %v5202_v30 = vadd.f32 %v3793_v41, %v5087_v0  ;;  %v1857_v39 = vpop.f32.mrb[83].mxu1 }
 0x296   :  { %6502 = vst [vmem:[#allocation65_spill] sm:$0xff] %v5195_v7  ;;  %v1858_v21 = vadd.f32 %v5087_v0, %v1857_v39 }
 0x297   :  { %6503 = vst [vmem:[#allocation66_spill] sm:$0xff] %v5199_v17 }
 0x298   :  { %v2111_v1 = vpack.c.bf16 %v1858_v21, %v1855_v2 }
 0x299   :  { %v5207_v23 = vpop.f32.mrb[56].mxu0 }
 0x29a   :  { %6504 = vst [vmem:[#allocation67_spill] sm:$0xff] %v5207_v23  ;;  %v5209_v55 = vpop.f32.mrb[57].mxu0  ;;  %3878 = vmatprep.mubr.msk.bf16.mxu0 %vm199_vm0, %v2111_v1  ;;  %v3796_v3 = vpop.f32.mrb[84].mxu1 }
 0x29b   :  { %6505 = vst [vmem:[#allocation68_spill] sm:$0xff] %v5209_v55  ;;  %v5212_v7 = vpop.f32.mrb[58].mxu0  ;;  %v5215_v5 = vadd.f32 %v3796_v3, %v5087_v0  ;;  %v1870_v41 = vpop.f32.mrb[85].mxu1 }
 0x29c   :  { %6506 = vst [vmem:[#allocation69_spill] sm:$0xff] %v5212_v7  ;;  %v5217_v17 = vpop.f32.mrb[59].mxu0  ;;  %v5220_v39 = vadd.f32 %v5087_v0, %v1870_v41  ;;  %v3797_v8 = vpop.f32.mrb[86].mxu1 }
 0x29d   :  { %6507 = vst [vmem:[#allocation70_spill] sm:$0xff] %v5217_v17  ;;  %v5223_v2 = vadd.f32 %v3797_v8, %v5087_v0  ;;  %v1873_v21 = vpop.f32.mrb[87].mxu1 }
 0x29e   :  { %v5226_v23 = vadd.f32 %v5087_v0, %v1873_v21 }
 0x2a1   :  { %v3768_v7 = vpop.f32.mrb[60].mxu0 }
 0x2a2   :  { %v5233_v55 = vadd.f32 %v3768_v7, %v5183_v16  ;;  %v1684_v41 = vpop.f32.mrb[61].mxu0  ;;  %v3800_v17 = vpop.f32.mrb[88].mxu1 }
 0x2a3   :  { %v5236_v26 = vadd.f32 %v5183_v16, %v1684_v41  ;;  %v3769_v8 = vpop.f32.mrb[62].mxu0  ;;  %v5239_v37 = vadd.f32 %v3800_v17, %v5087_v0  ;;  %v1886_v21 = vpop.f32.mrb[89].mxu1 }
 0x2a4   :  { %6508 = vst [vmem:[#allocation71_spill] sm:$0xff] %v5233_v55  ;;  %v5242_v60 = vadd.f32 %v3769_v8, %v5183_v16  ;;  %v1687_v1 = vpop.f32.mrb[63].mxu0  ;;  %v5245_v3 = vadd.f32 %v5087_v0, %v1886_v21  ;;  %v3801_v52 = vpop.f32.mrb[90].mxu1  ;;  %v5263_v21 = vld [vmem:[%s6350_s4 + $0x2] ss:$0 sm:$0xff] }
 0x2a5   :  { %6509 = vst [vmem:[#allocation72_spill] sm:$0xff] %v5236_v26  ;;  %v5248_v7 = vadd.f32 %v5183_v16, %v1687_v1  ;;  %v5251_v55 = vadd.f32 %v3801_v52, %v5087_v0  ;;  %v1889_v41 = vpop.f32.mrb[91].mxu1 }
 0x2a6   :  { %6510 = vst [vmem:[#allocation73_spill] sm:$0xff] %v5242_v60  ;;  %v5254_v26 = vadd.f32 %v5087_v0, %v1889_v41 }
 0x2a7   :  { %6511 = vst [vmem:[#allocation74_spill] sm:$0xff] %v5248_v7 }
 0x2a9   :  { %v3812_v60 = vpop.f32.mrb[64].mxu0 }
 0x2aa   :  { %v1976_v1 = vpop.f32.mrb[65].mxu0  ;;  %v3804_v7 = vpop.f32.mrb[92].mxu1  ;;  %v1985_v43 = vadd.f32 %v3812_v60, %v5263_v21 }
 0x2ab   :  { %v3813_v52 = vpop.f32.mrb[66].mxu0  ;;  %v5266_v59 = vadd.f32 %v3804_v7, %v5087_v0  ;;  %v1902_v41 = vpop.f32.mrb[93].mxu1  ;;  %v1977_v62 = vadd.f32 %v5263_v21, %v1976_v1 }
 0x2ac   :  { %v1988_v17 = vadd.f32 %v3813_v52, %v5263_v21  ;;  %v1979_v63 = vpop.f32.mrb[67].mxu0  ;;  %v5271_v8 = vadd.f32 %v5087_v0, %v1902_v41  ;;  %v3805_v36 = vpop.f32.mrb[94].mxu1 }
 0x2ad   :  { %6512 = vst [vmem:[#allocation75_spill] sm:$0xff] %v5266_v59  ;;  %v1980_v50 = vadd.f32 %v5263_v21, %v1979_v63  ;;  %v5276_v44 = vadd.f32 %v3805_v36, %v5087_v0  ;;  %v1905_v19 = vpop.f32.mrb[95].mxu1 }
 0x2ae   :  { %6513 = vst [vmem:[#allocation76_spill] sm:$0xff] %v5271_v8  ;;  %v2120_v7 = vpack.c.bf16 %v1988_v17, %v1985_v43  ;;  %v5279_v32 = vadd.f32 %v5087_v0, %v1905_v19 }
 0x2af   :  { %6514 = vst [vmem:[#allocation77_spill] sm:$0xff] %v5276_v44  ;;  %v2119_v60 = vpack.c.bf16 %v1980_v50, %v1977_v62 }
 0x2b0   :  { %v2145_v41 = vsel %vm199_vm0, %v2120_v7, 0 }
 0x2b1   :  { %3962 = vmatprep.subr.msk.bf16.mxu1 %vm199_vm0, %v2119_v60  ;;  %v2142_v1 = vsel %vm199_vm0, %v2119_v60, 0  ;;  %v3816_v63 = vpop.f32.mrb[68].mxu0 }
 0x2b2   :  { %3843 = vmatpush3.bf16.xpose.msra.mxu1 %v2142_v1  ;;  %v2001_v36 = vadd.f32 %v3816_v63, %v5263_v21  ;;  %v1992_v16 = vpop.f32.mrb[69].mxu0 }
 0x2b3   :  { %3963 = vmatprep.subr.msk.bf16.mxu1 %vm199_vm0, %v2120_v7  ;;  %v1993_v19 = vadd.f32 %v5263_v21, %v1992_v16  ;;  %v3817_v50 = vpop.f32.mrb[70].mxu0 }
 0x2b4   :  { %v2004_v0 = vadd.f32 %v3817_v50, %v5263_v21  ;;  %v1995_v62 = vpop.f32.mrb[71].mxu0 }
 0x2b5   :  { %v1996_v43 = vadd.f32 %v5263_v21, %v1995_v62 }
 0x2b6   :  { %v2122_v17 = vpack.c.bf16 %v2004_v0, %v2001_v36  ;;  %v6515_v0 = vpack.c.bf16 %v5102_v38, %v5096_v34 }
 0x2b7   :  { %v2121_v52 = vpack.c.bf16 %v1996_v43, %v1993_v19 }
 0x2b9   :  { %v3820_v60 = vpop.f32.mrb[72].mxu0  ;;  %v2203_v43 = vsel %vm199_vm0, %v2121_v52, 0 }
 0x2ba   :  { %3845 = vmatpush3.bf16.xpose.msra.mxu1 %v2145_v41  ;;  %v2017_v1 = vadd.f32 %v3820_v60, %v5263_v21  ;;  %v2008_v63 = vpop.f32.mrb[73].mxu0 }
 0x2bb   :  { %3964 = vmatprep.subr.msk.bf16.mxu1 %vm199_vm0, %v2121_v52  ;;  %v2009_v59 = vadd.f32 %v5263_v21, %v2008_v63  ;;  %v3821_v16 = vpop.f32.mrb[74].mxu0 }
 0x2bc   :  { %v2020_v44 = vadd.f32 %v3821_v16, %v5263_v21  ;;  %v2011_v50 = vpop.f32.mrb[75].mxu0 }
 0x2bd   :  { %v2012_v8 = vadd.f32 %v5263_v21, %v2011_v50 }
 0x2be   :  { %v5298_v62 = vpack.c.bf16 %v2020_v44, %v2017_v1 }
 0x2bf   :  { %v5300_v36 = vpack.c.bf16 %v2012_v8, %v2009_v59  ;;  %v6516_v59 = vpack.c.bf16 %v5126_v58, %v5120_v40 }
 0x2c0   :  { %v1169_v7 = vpop.xlane.xlu1 %1168 }
 0x2c1   :  { %v1259_v41 = vsub.f32 %v4948_v4, %v1169_v7  ;;  %v1163_v19 = vpop.xlane.xlu0 %1162  ;;  %3847 = vmatmul.mubr.msk.bf16.vlgmr.msra.gmra.mrb[96].mxu1 %vm199_vm0, %v6515_v0  ;;  %v3824_v60 = vpop.f32.mrb[76].mxu0 }
 0x2c2   :  { %v1257_v63 = vsub.f32 %v4950_v9, %v1163_v19  ;;  %3851 = vmatpush3.bf16.xpose.msra.mxu1 %v2203_v43  ;;  %v2033_v44 = vadd.f32 %v3824_v60, %v5263_v21  ;;  %v2024_v1 = vpop.f32.mrb[77].mxu0  ;;  %3854 = vmatprep.mubr.msk.bf16.mxu1 %vm199_vm0, %v6516_v59 }
 0x2c3   :  { %v1293_v4 = vmul.f32 1.442695, %v1259_v41  ;;  %3965 = vmatprep.subr.msk.bf16.mxu1 %vm199_vm0, %v2122_v17  ;;  %v2025_v34 = vadd.f32 %v5263_v21, %v2024_v1  ;;  %v3825_v38 = vpop.f32.mrb[78].mxu0  ;;  %v2206_v1 = vsel %vm199_vm0, %v2122_v17, 0 }
 0x2c4   :  { %v1289_v8 = vmul.f32 1.442695, %v1257_v63  ;;  %v1172_v52 = vpop.xlane.xlu1 %1171  ;;  %v2036_v16 = vadd.f32 %v3825_v38, %v5263_v21  ;;  %v2027_v9 = vpop.f32.mrb[79].mxu0 }
 0x2c5   :  { %3999 = vpow2.f32 %v1293_v4  ;;  %v1260_v50 = vsub.f32 %v4954_v20, %v1172_v52  ;;  %v1166_v7 = vpop.xlane.xlu0 %1165  ;;  %v2028_v19 = vadd.f32 %v5263_v21, %v2027_v9 }
 0x2c6   :  { %v1258_v58 = vsub.f32 %v4958_v27, %v1166_v7  ;;  %v5320_v40 = vpack.c.bf16 %v2036_v16, %v2033_v44  ;;  %4001 = vpow2.f32 %v1289_v8 }
 0x2c7   :  { %v1295_v41 = vmul.f32 1.442695, %v1260_v50  ;;  %v5322_v0 = vpack.c.bf16 %v2028_v19, %v2025_v34 }
 0x2c8   :  { %v1291_v43 = vmul.f32 1.442695, %v1258_v58 }
 0x2c9   :  { %4003 = vpow2.f32 %v1295_v41  ;;  %v1181_v60 = vpop.xlane.xlu0 %1180  ;;  %v3828_v63 = vpop.f32.mrb[80].mxu0 }
 0x2ca   :  { %v1263_v59 = vsub.f32 %v4964_v48, %v1181_v60  ;;  %v2049_v20 = vadd.f32 %v3828_v63, %v5263_v21  ;;  %v1184_v4 = vpop.xlane.xlu1 %1183  ;;  %v2040_v38 = vpop.f32.mrb[81].mxu0  ;;  %3853 = vmatpush3.bf16.xpose.msra.mxu1 %v2206_v1  ;;  %4005 = vpow2.f32 %v1291_v43 }
 0x2cb   :  { %v1264_v27 = vsub.f32 %v4970_v53, %v1184_v4  ;;  %v2041_v44 = vadd.f32 %v5263_v21, %v2040_v38  ;;  %v3829_v34 = vpop.f32.mrb[82].mxu0  ;;  %3966 = vmatprep.subr.msk.bf16.mxu1 %vm199_vm0, %v5300_v36 }
 0x2cc   :  { %v1301_v8 = vmul.f32 1.442695, %v1263_v59  ;;  %v2052_v52 = vadd.f32 %v3829_v34, %v5263_v21  ;;  %v2043_v17 = vpop.f32.mrb[83].mxu0 }
 0x2cd   :  { %v1303_v16 = vmul.f32 1.442695, %v1264_v27  ;;  %v2044_v48 = vadd.f32 %v5263_v21, %v2043_v17  ;;  %v1175_v9 = vpop.xlane.xlu0 %1174 }
 0x2ce   :  { %4007 = vpow2.f32 %v1301_v8  ;;  %v2128_v50 = vpack.c.bf16 %v2052_v52, %v2049_v20  ;;  %v1261_v7 = vsub.f32 %v4966_v49, %v1175_v9  ;;  %v1178_v19 = vpop.xlane.xlu1 %1177  ;;  %v6517_v20 = vpack.c.bf16 %v5123_v22, %v5115_v42 }
 0x2cf   :  { %v5334_v53 = vpop.eup %3999  ;;  %4009 = vpow2.f32 %v1303_v16  ;;  %v2127_v58 = vpack.c.bf16 %v2044_v48, %v2041_v44  ;;  %v1262_v41 = vsub.f32 %v4972_v13, %v1178_v19  ;;  %v2264_v49 = vsel %vm199_vm0, %v5300_v36, 0 }
 0x2d0   :  { %v1297_v43 = vmul.f32 1.442695, %v1261_v7  ;;  %v1359_v60 = vsel %vm199_vm0, %v5334_v53, 0.0  ;;  %v5339_v63 = vpop.eup %4001 }
 0x2d1   :  { %v1299_v1 = vmul.f32 1.442695, %v1262_v41  ;;  %v1193_v59 = vpop.xlane.xlu0 %1192  ;;  %1360 = vadd.xlane.f32.xlu0 %v1359_v60  ;;  %3855 = vmatmul.mubr.msk.bf16.vlgmr.msra.gmra.mrb[100].mxu1 %vm199_vm0, %v6517_v20  ;;  %v2386_v4 = vsel %vm199_vm0, %v2127_v58, 0  ;;  %v3832_v13 = vpop.f32.mrb[84].mxu0  ;;  %v1353_v52 = vsel %vm199_vm0, %v5339_v63, 0.0 }
 0x2d2   :  { %4011 = vpow2.f32 %v1297_v43  ;;  %v1267_v38 = vsub.f32 %v4980_v25, %v1193_v59  ;;  %3970 = vmatprep.subr.msk.bf16.mxu0 %vm199_vm0, %v2127_v58  ;;  %v1196_v27 = vpop.xlane.xlu1 %1195  ;;  %3859 = vmatpush3.bf16.xpose.msra.mxu1 %v2264_v49  ;;  %v2065_v44 = vadd.f32 %v3832_v13, %v5263_v21  ;;  %v2056_v34 = vpop.f32.mrb[85].mxu0  ;;  %v2389_v49 = vsel %vm199_vm0, %v2128_v50, 0 }
 0x2d3   :  { %v5351_v8 = vpop.eup %4003  ;;  %4013 = vpow2.f32 %v1299_v1  ;;  %v1268_v42 = vsub.f32 %v4986_v35, %v1196_v27  ;;  %3875 = vmatpush3.bf16.xpose.msra.mxu0 %v2386_v4  ;;  %3967 = vmatprep.subr.msk.bf16.mxu1 %vm199_vm0, %v5298_v62  ;;  %v2057_v22 = vadd.f32 %v5263_v21, %v2056_v34  ;;  %v3833_v36 = vpop.f32.mrb[86].mxu0  ;;  %v6518_v35 = vpack.c.bf16 %v5150_v33, %v5144_v45 }
 0x2d4   :  { %v1309_v25 = vmul.f32 1.442695, %v1267_v38  ;;  %v1362_v17 = vsel %vm199_vm0, %v5351_v8, 0.0  ;;  %3971 = vmatprep.subr.msk.bf16.mxu0 %vm199_vm0, %v2128_v50  ;;  %v2068_v16 = vadd.f32 %v3833_v36, %v5263_v21  ;;  %v2059_v48 = vpop.f32.mrb[87].mxu0  ;;  %v5367_v9 = vpop.eup %4005 }
 0x2d5   :  { %3862 = vmatprep.mubr.msk.bf16.mxu1 %vm199_vm0, %v6518_v35  ;;  %v1311_v7 = vmul.f32 1.442695, %v1268_v42  ;;  %v1187_v19 = vpop.xlane.xlu0 %1186  ;;  %1354 = vadd.xlane.f32.xlu0 %v1353_v52  ;;  %v2060_v58 = vadd.f32 %v5263_v21, %v2059_v48  ;;  %v1356_v20 = vsel %vm199_vm0, %v5367_v9, 0.0 }
 0x2d6   :  { %1363 = vadd.xlane.f32.xlu1 %v1362_v17  ;;  %4015 = vpow2.f32 %v1309_v25  ;;  %v1265_v41 = vsub.f32 %v4982_v24, %v1187_v19  ;;  %v1190_v43 = vpop.xlane.xlu1 %1189  ;;  %v5371_v60 = vpack.c.bf16 %v2068_v16, %v2065_v44 }
 0x2d7   :  { %4017 = vpow2.f32 %v1311_v7  ;;  %v1266_v1 = vsub.f32 %v4988_v47, %v1190_v43  ;;  %v5374_v33 = vpack.c.bf16 %v2060_v58, %v2057_v22  ;;  %v2267_v47 = vsel %vm199_vm0, %v5298_v62, 0 }
 0x2d8   :  { %v5376_v45 = vpop.eup %4007  ;;  %v1305_v59 = vmul.f32 1.442695, %v1265_v41 }
 0x2d9   :  { %v5381_v4 = vpop.eup %4009  ;;  %v1307_v13 = vmul.f32 1.442695, %v1266_v1  ;;  %v1205_v24 = vpop.xlane.xlu0 %1204  ;;  %v1371_v38 = vsel %vm199_vm0, %v5376_v45, 0.0 }
 0x2da   :  { %1357 = vadd.xlane.f32.xlu1 %v1356_v20  ;;  %v3836_v27 = vpop.f32.mrb[88].mxu0  ;;  %4019 = vpow2.f32 %v1305_v59  ;;  %v1271_v44 = vsub.f32 %v4996_v54, %v1205_v24  ;;  %v1208_v34 = vpop.xlane.xlu1 %1207  ;;  %1372 = vadd.xlane.f32.xlu0 %v1371_v38  ;;  %v1374_v54 = vsel %vm199_vm0, %v5381_v4, 0.0 }
 0x2db   :  { %3861 = vmatpush3.bf16.xpose.msra.mxu1 %v2267_v47  ;;  %v2081_v50 = vadd.f32 %v3836_v27, %v5263_v21  ;;  %v2072_v42 = vpop.f32.mrb[89].mxu0  ;;  %4021 = vpow2.f32 %v1307_v13  ;;  %v1272_v22 = vsub.f32 %v5002_v28, %v1208_v34  ;;  %3877 = vmatpush3.bf16.xpose.msra.mxu0 %v2389_v49  ;;  %v2325_v27 = vsel %vm199_vm0, %v5322_v0, 0 }
 0x2dc   :  { %3968 = vmatprep.subr.msk.bf16.mxu1 %vm199_vm0, %v5322_v0  ;;  %v2073_v36 = vadd.f32 %v5263_v21, %v2072_v42  ;;  %v3837_v62 = vpop.f32.mrb[90].mxu0  ;;  %v5393_v25 = vpop.eup %4011  ;;  %v1317_v52 = vmul.f32 1.442695, %v1271_v44  ;;  %v6520_v0 = vpack.c.bf16 %v5202_v30, %v5192_v61 }
 0x2dd   :  { %v2084_v17 = vadd.f32 %v3837_v62, %v5263_v21  ;;  %v2075_v16 = vpop.f32.mrb[91].mxu0  ;;  %v5398_v48 = vpop.eup %4013  ;;  %v1319_v35 = vmul.f32 1.442695, %v1272_v22  ;;  %v1365_v7 = vsel %vm199_vm0, %v5393_v25, 0.0 }
 0x2de   :  { %v1199_v28 = vpop.xlane.xlu0 %1198  ;;  %1375 = vadd.xlane.f32.xlu1 %v1374_v54  ;;  %v2076_v19 = vadd.f32 %v5263_v21, %v2075_v16  ;;  %4023 = vpow2.f32 %v1317_v52  ;;  %v1202_v41 = vpop.xlane.xlu1 %1201  ;;  %1366 = vadd.xlane.f32.xlu0 %v1365_v7  ;;  %v1368_v13 = vsel %vm199_vm0, %v5398_v48, 0.0 }
 0x2df   :  { %v1269_v58 = vsub.f32 %v4998_v57, %v1199_v28  ;;  %v5404_v43 = vpack.c.bf16 %v2084_v17, %v2081_v50  ;;  %4025 = vpow2.f32 %v1319_v35  ;;  %v1270_v1 = vsub.f32 %v5006_v14, %v1202_v41 }
 0x2e0   :  { %v2131_v59 = vpack.c.bf16 %v2076_v19, %v2073_v36  ;;  %v5407_v20 = vpop.eup %4015  ;;  %v6519_v57 = vpack.c.bf16 %v5147_v29, %v5139_v56  ;;  %v6522_v41 = vpack.c.bf16 %v5254_v26, %v5245_v3 }
 0x2e1   :  { %v1313_v49 = vmul.f32 1.442695, %v1269_v58  ;;  %v5411_v24 = vpop.eup %4017  ;;  %v1315_v38 = vmul.f32 1.442695, %v1270_v1  ;;  %v1383_v14 = vsel %vm199_vm0, %v5407_v20, 0.0  ;;  %v3840_v44 = vpop.f32.mrb[92].mxu0 }
 0x2e2   :  { %v1217_v47 = vpop.xlane.xlu0 %1216  ;;  %3863 = vmatmul.mubr.msk.bf16.vlgmr.msra.gmra.mrb[104].mxu1 %vm199_vm0, %v6519_v57  ;;  %1369 = vadd.xlane.f32.xlu1 %v1368_v13  ;;  %v1220_v50 = vpop.xlane.xlu1 %1219  ;;  %v2508_v42 = vsel %vm199_vm0, %v2131_v59, 0  ;;  %v2097_v29 = vadd.f32 %v3840_v44, %v5263_v21  ;;  %v1386_v54 = vsel %vm199_vm0, %v5411_v24, 0.0  ;;  %v2511_v26 = vsel %vm199_vm0, %v5404_v43, 0 }
 0x2e3   :  { %4027 = vpow2.f32 %v1313_v49  ;;  %v1275_v34 = vsub.f32 %v5012_v18, %v1217_v47  ;;  %1384 = vadd.xlane.f32.xlu0 %v1383_v14  ;;  %3867 = vmatpush3.bf16.xpose.msra.mxu1 %v2325_v27  ;;  %v2088_v56 = vpop.f32.mrb[93].mxu0  ;;  %v1276_v22 = vsub.f32 %v5018_v15, %v1220_v50  ;;  %v6521_v15 = vpack.c.bf16 %v5174_v12, %v5168_v10 }
 0x2e4   :  { %4029 = vpow2.f32 %v1315_v38  ;;  %3969 = vmatprep.subr.msk.bf16.mxu1 %vm199_vm0, %v5320_v40  ;;  %3879 = vmatmul.mubr.msk.bf16.vlgmr.msra.gmra.mrb[96].mxu0 %vm199_vm0, %v6520_v0  ;;  %v2089_v18 = vadd.f32 %v5263_v21, %v2088_v56  ;;  %v3841_v36 = vpop.f32.mrb[94].mxu0  ;;  %v5432_v62 = vpop.eup %4019  ;;  %v6523_v44 = vpack.c.bf16 %v5171_v11, %v5163_v6  ;;  %v2447_v50 = vsel %vm199_vm0, %v5374_v33, 0  ;;  %v6531_v0 = vld [vmem:[#allocation77_spill] sm:$0xff] }
 0x2e5   :  { %v1325_v52 = vmul.f32 1.442695, %v1275_v34  ;;  %3974 = vmatprep.subr.msk.bf16.mxu0 %vm199_vm0, %v2131_v59  ;;  %3870 = vmatprep.mubr.msk.bf16.mxu1 %vm199_vm0, %v6521_v15  ;;  %v2100_v30 = vadd.f32 %v3841_v36, %v5263_v21  ;;  %v2091_v61 = vpop.f32.mrb[95].mxu0  ;;  %v5442_v17 = vpop.eup %4021  ;;  %v1327_v16 = vmul.f32 1.442695, %v1276_v22  ;;  %v1377_v28 = vsel %vm199_vm0, %v5432_v62, 0.0 }
 0x2e6   :  { %v1211_v35 = vpop.xlane.xlu0 %1210  ;;  %1387 = vadd.xlane.f32.xlu1 %v1386_v54  ;;  %3891 = vmatpush3.bf16.xpose.msra.mxu0 %v2508_v42  ;;  %v2092_v7 = vadd.f32 %v5263_v21, %v2091_v61  ;;  %v1214_v12 = vpop.xlane.xlu1 %1213  ;;  %v6524_v42 = vpack.c.bf16 %v5226_v23, %v5220_v39  ;;  %v6526_v6 = vpack.c.bf16 %v5251_v55, %v5239_v37  ;;  %v2450_v37 = vsel %vm199_vm0, %v5371_v60, 0 }
 0x2e7   :  { %4031 = vpow2.f32 %v1325_v52  ;;  %v1273_v19 = vsub.f32 %v5014_v46, %v1211_v35  ;;  %1378 = vadd.xlane.f32.xlu0 %v1377_v28  ;;  %3975 = vmatprep.subr.msk.bf16.mxu0 %vm199_vm0, %v5404_v43  ;;  %v2134_v10 = vpack.c.bf16 %v2100_v30, %v2097_v29  ;;  %v1274_v58 = vsub.f32 %v5020_v31, %v1214_v12 }
 0x2e8   :  { %4033 = vpow2.f32 %v1327_v16  ;;  %3894 = vmatprep.mubr.msk.bf16.mxu0 %vm199_vm0, %v6522_v41  ;;  %v2133_v1 = vpack.c.bf16 %v2092_v7, %v2089_v18  ;;  %v5455_v59 = vpop.eup %4023  ;;  %v1380_v46 = vsel %vm199_vm0, %v5442_v17, 0.0  ;;  %v2328_v31 = vsel %vm199_vm0, %v5320_v40, 0  ;;  %v6532_v18 = vld [vmem:[#allocation75_spill] sm:$0xff] }
 0x2e9   :  { %v1321_v21 = vmul.f32 1.442695, %v1273_v19  ;;  %v5459_v49 = vpop.eup %4025  ;;  %v1323_v13 = vmul.f32 1.442695, %v1274_v58  ;;  %v1395_v38 = vsel %vm199_vm0, %v5455_v59, 0.0  ;;  %v6528_v55 = vpack.c.bf16 %v5223_v2, %v5215_v5 }
 0x2ea   :  { %1381 = vadd.xlane.f32.xlu1 %v1380_v46  ;;  %v1398_v47 = vsel %vm199_vm0, %v5459_v49, 0.0  ;;  %v2569_v39 = vsel %vm199_vm0, %v2133_v1, 0  ;;  %v6533_v36 = vpack.c.bf16 %v6531_v0, %v6532_v18  ;;  %v5531_v5 = vpop.xlane.xlu0 %1228  ;;  %v5533_v2 = vpop.xlane.xlu1 %1231  ;;  %v6535_v46 = vld [vmem:[#allocation39_spill] sm:$0xff]  ;;  %v6539_v18 = vld [vmem:[#allocation46_spill] sm:$0xff] }
 0x2eb   :  { %4035 = vpow2.f32 %v1321_v21  ;;  %1396 = vadd.xlane.f32.xlu0 %v1395_v38  ;;  %3869 = vmatpush3.bf16.xpose.msra.mxu1 %v2328_v31  ;;  %v6534_v21 = vld [vmem:[#allocation62_spill] sm:$0xff] }
 0x2ec   :  { %4037 = vpow2.f32 %v1323_v13  ;;  %3972 = vmatprep.subr.msk.bf16.mxu1 %vm199_vm0, %v5374_v33  ;;  %v1581_v13 = vadd.f32 %v6535_v46, %v6534_v21  ;;  %v6540_v46 = vld [vmem:[#allocation48_spill] sm:$0xff] }
 0x2ed   :  { %v5469_v3 = vpop.eup %4027 }
 0x2ee   :  { %v5473_v57 = vpop.eup %4029  ;;  %1399 = vadd.xlane.f32.xlu1 %v1398_v47  ;;  %v1389_v40 = vsel %vm199_vm0, %v5469_v3, 0.0  ;;  %3893 = vmatpush3.bf16.xpose.msra.mxu0 %v2511_v26  ;;  %v5535_v52 = vpop.xlane.xlu0 %1222 }
 0x2ef   :  { %1390 = vadd.xlane.f32.xlu0 %v1389_v40  ;;  %v1392_v43 = vsel %vm199_vm0, %v5473_v57, 0.0  ;;  %v5537_v54 = vpop.xlane.xlu1 %1225 }
 0x2f1   :  { %v5477_v14 = vpop.eup %4031 }
 0x2f2   :  { %v5481_v27 = vpop.eup %4033  ;;  %3871 = vmatmul.mubr.msk.bf16.vlgmr.msra.gmra.mrb[108].mxu1 %vm199_vm0, %v6523_v44  ;;  %1393 = vadd.xlane.f32.xlu1 %v1392_v43  ;;  %v1407_v34 = vsel %vm199_vm0, %v5477_v14, 0.0  ;;  %v6536_v44 = vld [vmem:[#allocation41_spill] sm:$0xff] }
 0x2f3   :  { %1408 = vadd.xlane.f32.xlu0 %v1407_v34  ;;  %3883 = vmatpush3.bf16.xpose.msra.mxu1 %v2447_v50  ;;  %v1410_v33 = vsel %vm199_vm0, %v5481_v27, 0.0  ;;  %v5541_v15 = vpop.xlane.xlu1 %1243  ;;  %v1573_v34 = vadd.f32 %v6534_v21, %v6536_v44 }
 0x2f4   :  { %3973 = vmatprep.subr.msk.bf16.mxu1 %vm199_vm0, %v5371_v60  ;;  %3886 = vmatprep.mubr.msk.bf16.mxu1 %vm199_vm0, %v6524_v42  ;;  %v2572_v60 = vsel %vm199_vm0, %v2134_v10, 0 }
 0x2f5   :  { %v5497_v11 = vpop.eup %4035  ;;  %3895 = vmatmul.mubr.msk.bf16.vlgmr.msra.gmra.mrb[100].mxu0 %vm199_vm0, %v6526_v6  ;;  %v6537_v6 = vld [vmem:[#allocation43_spill] sm:$0xff] }
 0x2f6   :  { %6525 = vst [vmem:[#allocation78_spill] sm:$0xff] %v5497_v11  ;;  %v5505_v29 = vpop.eup %4037  ;;  %1411 = vadd.xlane.f32.xlu1 %v1410_v33  ;;  %v1401_v56 = vsel %vm199_vm0, %v5497_v11, 0.0  ;;  %3910 = vmatprep.mubr.msk.bf16.mxu0 %vm199_vm0, %v4533_v51  ;;  %v6529_v51 = vld [vmem:[#allocation76_spill] sm:$0xff]  ;;  %v1584_v33 = vadd.f32 %v6537_v6, %v6534_v21 }
 0x2f7   :  { %6527 = vst [vmem:[#allocation79_spill] sm:$0xff] %v5505_v29  ;;  %1402 = vadd.xlane.f32.xlu0 %v1401_v56  ;;  %v1404_v23 = vsel %vm199_vm0, %v5505_v29, 0.0  ;;  %v6530_v22 = vpack.c.bf16 %v5279_v32, %v6529_v51  ;;  %v5539_v32 = vpop.xlane.xlu0 %1240  ;;  %v5545_v61 = vpop.xlane.xlu1 %1237  ;;  %v6582_v29 = vld [vmem:[#allocation15_spill] sm:$0xff] }
 0x2fa   :  { %1405 = vadd.xlane.f32.xlu1 %v1404_v23  ;;  %v3997_v23 = vld [vmem:[#allocation8 + $0x20] sm:$0xff]  }
 0x2fb   :  { %3885 = vmatpush3.bf16.xpose.msra.mxu1 %v2450_v37  ;;  %v5543_v30 = vpop.xlane.xlu0 %1234  ;;  %v5549_v35 = vpop.xlane.xlu1 %1255  ;;  %3906 = vmatprep.subr.bf16.mxu0 %v3997_v23 }
 0x2fc   :  { %3976 = vmatprep.subr.msk.bf16.mxu1 %vm199_vm0, %v2133_v1  ;;  %3907 = vmatpush3.bf16.msra.mxu0 %v3997_v23 }
 0x2ff   :  { %v5547_v16 = vpop.xlane.xlu0 %1252  ;;  %v5553_v7 = vpop.xlane.xlu1 %1249 }
 0x302   :  { %3887 = vmatmul.mubr.msk.bf16.vlgmr.msra.gmra.mrb[112].mxu1 %vm199_vm0, %v6528_v55 }
 0x303   :  { %3899 = vmatpush3.bf16.xpose.msra.mxu1 %v2569_v39  ;;  %3902 = vmatprep.mubr.msk.bf16.mxu1 %vm199_vm0, %v6530_v22  ;;  %v5551_v28 = vpop.xlane.xlu0 %1246  ;;  %v6538_v22 = vld [vmem:[#allocation45_spill] sm:$0xff] }
 0x304   :  { %3977 = vmatprep.subr.msk.bf16.mxu1 %vm199_vm0, %v2134_v10 }
 0x30b   :  { %3901 = vmatpush3.bf16.xpose.msra.mxu1 %v2572_v60  ;;  %v1576_v60 = vadd.f32 %v6534_v21, %v6538_v22 }
 0x312   :  { %3903 = vmatmul.mubr.msk.bf16.vlgmr.msra.gmra.mrb[116].mxu1 %vm199_vm0, %v6533_v36  ;;  %v1597_v36 = vadd.f32 %v6539_v18, %v6534_v21  ;;  %v6548_v18 = vld [vmem:[#allocation52_spill] sm:$0xff] }
 0x35e   :  { %v1361_v19 = vpop.xlane.xlu0 %1360 }
 0x35f   :  { %4039 = vrcp.f32 %v1361_v19 }
 0x362   :  { %v1355_v12 = vpop.xlane.xlu0 %1354 }
 0x363   :  { %v1364_v10 = vpop.xlane.xlu1 %1363  ;;  %4041 = vrcp.f32 %v1355_v12  ;;  %v3998_v12 = vld [vmem:[#allocation8 + $0x28] sm:$0xff]  }
 0x364   :  { %4043 = vrcp.f32 %v1364_v10  ;;  %3908 = vmatprep.subr.bf16.mxu0 %v3998_v12 }
 0x365   :  { %3909 = vmatpush3.bf16.msra.mxu0 %v3998_v12 }
 0x367   :  { %v1358_v58 = vpop.xlane.xlu1 %1357  ;;  %v1373_v41 = vpop.xlane.xlu0 %1372 }
 0x368   :  { %4045 = vrcp.f32 %v1358_v58 }
 0x369   :  { %4047 = vrcp.f32 %v1373_v41  ;;  %v4040_v1 = vpop.eup %4039 }
 0x36a   :  { %v1483_v31 = vmul.f32 %v4040_v1, %v5334_v53 }
 0x36b   :  { %v1376_v38 = vpop.xlane.xlu1 %1375  ;;  %v1367_v26 = vpop.xlane.xlu0 %1366 }
 0x36c   :  { %4049 = vrcp.f32 %v1376_v38  ;;  %v5558_v47 = vmul.f32 %v1581_v13, %v1483_v31  ;;  %v1600_v13 = vadd.f32 %v6540_v46, %v6534_v21  ;;  %v6541_v31 = vld [vmem:[#allocation47_spill] sm:$0xff] }
 0x36d   :  { %4051 = vrcp.f32 %v1367_v26  ;;  %v4042_v40 = vpop.eup %4041  ;;  %v1589_v26 = vadd.f32 %v6534_v21, %v6541_v31 }
 0x36e   :  { %v4044_v43 = vpop.eup %4043  ;;  %v1481_v42 = vmul.f32 %v4042_v40, %v5339_v63 }
 0x36f   :  { %v1370_v50 = vpop.xlane.xlu1 %1369  ;;  %v1484_v53 = vmul.f32 %v4044_v43, %v5351_v8 }
 0x370   :  { %4053 = vrcp.f32 %v1370_v50  ;;  %v1385_v56 = vpop.xlane.xlu0 %1384  ;;  %v5566_v37 = vmul.f32 %v1573_v34, %v1481_v42  ;;  %v6542_v42 = vld [vmem:[#allocation49_spill] sm:$0xff] }
 0x371   :  { %4055 = vrcp.f32 %v1385_v56  ;;  %v5568_v39 = vmul.f32 %v1584_v33, %v1484_v53  ;;  %v1592_v6 = vadd.f32 %v6534_v21, %v6542_v42  ;;  %v6544_v53 = vld [vmem:[#allocation50_spill] sm:$0xff] }
 0x372   :  { %v4046_v55 = vpop.eup %4045  ;;  %v1613_v23 = vadd.f32 %v6544_v53, %v6534_v21 }
 0x373   :  { %v4048_v51 = vpop.eup %4047  ;;  %v1388_v0 = vpop.xlane.xlu1 %1387  ;;  %v1482_v63 = vmul.f32 %v4046_v55, %v5367_v9  ;;  %v6545_v55 = vld [vmem:[#allocation21_spill] sm:$0xff] }
 0x374   :  { %4057 = vrcp.f32 %v1388_v0  ;;  %v1379_v8 = vpop.xlane.xlu0 %1378  ;;  %v1487_v19 = vmul.f32 %v4048_v51, %v5376_v45 }
 0x375   :  { %4059 = vrcp.f32 %v1379_v8  ;;  %v5576_v10 = vmul.f32 %v1576_v60, %v1482_v63 }
 0x376   :  { %v4050_v58 = vpop.eup %4049  ;;  %v5578_v41 = vmul.f32 %v1597_v36, %v1487_v19  ;;  %v6549_v19 = vld [vmem:[#allocation51_spill] sm:$0xff] }
 0x377   :  { %v4052_v1 = vpop.eup %4051  ;;  %v1382_v9 = vpop.xlane.xlu1 %1381  ;;  %v1488_v38 = vmul.f32 %v4050_v58, %v5381_v4  ;;  %v6543_v4 = vld [vmem:[#allocation20_spill] sm:$0xff]  ;;  %v1605_v12 = vadd.f32 %v6534_v21, %v6549_v19 }
 0x378   :  { %4061 = vrcp.f32 %v1382_v9  ;;  %v1397_v45 = vpop.xlane.xlu0 %1396  ;;  %v1485_v40 = vmul.f32 %v4052_v1, %v5393_v25  ;;  %3911 = vmatmul.mubr.msk.bf16.vlgmr.msra.gmra.mrb[104].mxu0 %vm199_vm0, %v6543_v4 }
 0x379   :  { %4063 = vrcp.f32 %v1397_v45  ;;  %v5586_v43 = vmul.f32 %v1600_v13, %v1488_v38  ;;  %3914 = vmatprep.mubr.msk.bf16.mxu0 %vm199_vm0, %v6545_v55  ;;  %v6552_v38 = vld [vmem:[#allocation53_spill] sm:$0xff]  ;;  %v6553_v45 = vld [vmem:[#allocation22_spill] sm:$0xff] }
 0x37a   :  { %v4054_v44 = vpop.eup %4053  ;;  %v5588_v34 = vmul.f32 %v1589_v26, %v1485_v40  ;;  %v1608_v31 = vadd.f32 %v6534_v21, %v6552_v38 }
 0x37b   :  { %v4056_v50 = vpop.eup %4055  ;;  %v1400_v33 = vpop.xlane.xlu1 %1399  ;;  %v1486_v56 = vmul.f32 %v4054_v44, %v5398_v48  ;;  %v1616_v48 = vadd.f32 %v6548_v18, %v6534_v21  ;;  %v6562_v18 = vld [vmem:[#allocation57_spill] sm:$0xff] }
 0x37c   :  { %4065 = vrcp.f32 %v1400_v33  ;;  %v1391_v25 = vpop.xlane.xlu0 %1390  ;;  %v1491_v51 = vmul.f32 %v4056_v50, %v5407_v20  ;;  %v6555_v50 = vld [vmem:[#allocation23_spill] sm:$0xff] }
 0x37d   :  { %4067 = vrcp.f32 %v1391_v25  ;;  %v5600_v22 = vmul.f32 %v1592_v6, %v1486_v56 }
 0x37e   :  { %v4058_v60 = vpop.eup %4057  ;;  %v5602_v0 = vmul.f32 %v1613_v23, %v1491_v51  ;;  %v6559_v23 = vld [vmem:[#allocation55_spill] sm:$0xff] }
 0x37f   :  { %6546 = vst [vmem:[#allocation76_spill] sm:$0xff] %v5600_v22  ;;  %v4060_v63 = vpop.eup %4059  ;;  %v1394_v36 = vpop.xlane.xlu1 %1393  ;;  %v1492_v8 = vmul.f32 %v4058_v60, %v5411_v24  ;;  %v1621_v25 = vadd.f32 %v6534_v21, %v6559_v23 }
 0x380   :  { %6547 = vst [vmem:[#allocation77_spill] sm:$0xff] %v5602_v0  ;;  %v1489_v58 = vmul.f32 %v4060_v63, %v5432_v62  ;;  %4069 = vrcp.f32 %v1394_v36  ;;  %v1409_v20 = vpop.xlane.xlu0 %1408  ;;  %3915 = vmatmul.mubr.msk.bf16.gmra.mrb[108].mxu0 %vm199_vm0, %v6553_v45  ;;  %v6554_v62 = vld [vmem:[#allocation54_spill] sm:$0xff] }
 0x381   :  { %4071 = vrcp.f32 %v1409_v20  ;;  %v5610_v1 = vmul.f32 %v1616_v48, %v1492_v8  ;;  %v1629_v40 = vadd.f32 %v6554_v62, %v6534_v21  ;;  %3918 = vmatprep.mubr.msk.bf16.mxu0 %vm199_vm0, %v6555_v50  ;;  %v1624_v48 = vadd.f32 %v6534_v21, %v6562_v18  ;;  %v6563_v8 = vld [vmem:[#allocation24_spill] sm:$0xff] }
 0x382   :  { %v4062_v46 = vpop.eup %4061  ;;  %v5612_v13 = vmul.f32 %v1605_v12, %v1489_v58  ;;  %v6565_v12 = vld [vmem:[#allocation25_spill] sm:$0xff]  ;;  %v6572_v50 = vld [vmem:[#allocation28_spill] sm:$0xff] }
 0x383   :  { %6550 = vst [vmem:[#allocation75_spill] sm:$0xff] %v5610_v1  ;;  %v4064_v9 = vpop.eup %4063  ;;  %v1490_v26 = vmul.f32 %v4062_v46, %v5442_v17  ;;  %v1412_v24 = vpop.xlane.xlu1 %1411  ;;  %v6558_v17 = vld [vmem:[#allocation56_spill] sm:$0xff] }
 0x384   :  { %6551 = vst [vmem:[#allocation62_spill] sm:$0xff] %v5612_v13  ;;  %v1495_v44 = vmul.f32 %v4064_v9, %v5455_v59  ;;  %4073 = vrcp.f32 %v1412_v24  ;;  %v1632_v56 = vadd.f32 %v6558_v17, %v6534_v21  ;;  %v6568_v9 = vld [vmem:[#allocation60_spill] sm:$0xff]  ;;  %v6571_v24 = vld [vmem:[#allocation27_spill] sm:$0xff]  ;;  %v6574_v17 = vld [vmem:[#allocation30_spill] sm:$0xff] }
 0x385   :  { %v5624_v42 = vmul.f32 %v1608_v31, %v1490_v26  ;;  %v1648_v38 = vadd.f32 %v6568_v9, %v6534_v21  ;;  %v6570_v26 = vld [vmem:[#allocation26_spill] sm:$0xff] }
 0x386   :  { %v4066_v6 = vpop.eup %4065  ;;  %v5626_v33 = vmul.f32 %v1629_v40, %v1495_v44 }
 0x387   :  { %6556 = vst [vmem:[#allocation39_spill] sm:$0xff] %v5624_v42  ;;  %v4068_v4 = vpop.eup %4067  ;;  %v1496_v53 = vmul.f32 %v4066_v6, %v5459_v49  ;;  %v6564_v49 = vld [vmem:[#allocation58_spill] sm:$0xff] }
 0x388   :  { %6557 = vst [vmem:[#allocation41_spill] sm:$0xff] %v5626_v33  ;;  %v1493_v59 = vmul.f32 %v4068_v4, %v5469_v3  ;;  %3919 = vmatmul.mubr.msk.bf16.gmra.mrb[112].mxu0 %vm199_vm0, %v6563_v8  ;;  %v1645_v19 = vadd.f32 %v6564_v49, %v6534_v21  ;;  %v6573_v4 = vld [vmem:[#allocation29_spill] sm:$0xff]  ;;  %v6578_v49 = vld [vmem:[#allocation34_spill] sm:$0xff] }
 0x389   :  { %v5634_v55 = vmul.f32 %v1632_v56, %v1496_v53  ;;  %3922 = vmatprep.mubr.msk.bf16.mxu0 %vm199_vm0, %v6565_v12  ;;  %v6575_v56 = vld [vmem:[#allocation31_spill] sm:$0xff]  ;;  %v6577_v8 = vld [vmem:[#allocation33_spill] sm:$0xff] }
 0x38a   :  { %v4070_v51 = vpop.eup %4069  ;;  %v5636_v60 = vmul.f32 %v1621_v25, %v1493_v59 }
 0x38b   :  { %6560 = vst [vmem:[#allocation43_spill] sm:$0xff] %v5634_v55  ;;  %v4072_v63 = vpop.eup %4071  ;;  %v1494_v36 = vmul.f32 %v4070_v51, %v5473_v57 }
 0x38c   :  { %6561 = vst [vmem:[#allocation45_spill] sm:$0xff] %v5636_v60  ;;  %v1499_v3 = vmul.f32 %v4072_v63, %v5477_v14  ;;  %v6580_v60 = vld [vmem:[#allocation16_spill] sm:$0xff] }
 0x38d   :  { %v5648_v58 = vmul.f32 %v1624_v48, %v1494_v36  ;;  %v6576_v48 = vld [vmem:[#allocation32_spill] sm:$0xff]  ;;  %v1277_v55 = vsub.f32 %v6580_v60, %v5535_v52  ;;  %v6584_v52 = vld [vmem:[#allocation35_spill] sm:$0xff] }
 0x38e   :  { %v4074_v20 = vpop.eup %4073  ;;  %v5650_v46 = vmul.f32 %v1645_v19, %v1499_v3  ;;  %v1281_v60 = vsub.f32 %v6584_v52, %v5543_v30 }
 0x38f   :  { %6566 = vst [vmem:[#allocation46_spill] sm:$0xff] %v5648_v58  ;;  %v1500_v57 = vmul.f32 %v4074_v20, %v5481_v27 }
 0x390   :  { %6567 = vst [vmem:[#allocation48_spill] sm:$0xff] %v5650_v46  ;;  %3923 = vmatmul.mubr.msk.bf16.gmra.mrb[116].mxu0 %vm199_vm0, %v6570_v26 }
 0x391   :  { %v5655_v31 = vmul.f32 %v1648_v38, %v1500_v57  ;;  %3926 = vmatprep.mubr.msk.bf16.mxu0 %vm199_vm0, %v6571_v24 }
 0x393   :  { %6569 = vst [vmem:[#allocation47_spill] sm:$0xff] %v5655_v31  ;;  %v1279_v31 = vsub.f32 %v6582_v29, %v5531_v5  ;;  %v6586_v5 = vld [vmem:[#allocation19_spill] sm:$0xff] }
 0x394   :  { %v5661_v45 = vpop.f32.mrb[96].mxu1 }
 0x395   :  { %v5663_v14 = vpop.f32.mrb[97].mxu1  ;;  %v2629_v62 = vsel %vm199_vm0, %v5661_v45, -inf  ;;  %v1333_v46 = vmul.f32 1.442695, %v1279_v31 }
 0x396   :  { %v5667_v40 = vpop.f32.mrb[98].mxu1  ;;  %2630 = vmax.xlane.f32.xlu1 %v2629_v62  ;;  %v2623_v44 = vsel %vm199_vm0, %v5663_v14, -inf }
 0x397   :  { %v2632_v27 = vsel %vm199_vm0, %v5667_v40, -inf  ;;  %v5671_v21 = vpop.f32.mrb[99].mxu1 }
 0x398   :  { %2633 = vmax.xlane.f32.xlu0 %v2632_v27  ;;  %3927 = vmatmul.mubr.msk.bf16.gmra.mrb[120].mxu0 %vm199_vm0, %v6572_v50  ;;  %v2626_v6 = vsel %vm199_vm0, %v5671_v21, -inf }
 0x399   :  { %3930 = vmatprep.mubr.msk.bf16.mxu0 %vm199_vm0, %v6573_v4 }
 0x39a   :  { %2624 = vmax.xlane.f32.xlu1 %v2623_v44 }
 0x39c   :  { %2627 = vmax.xlane.f32.xlu0 %v2626_v6 }
 0x3a0   :  { %3931 = vmatmul.mubr.msk.bf16.gmra.mrb[124].mxu0 %vm199_vm0, %v6574_v17 }
 0x3a1   :  { %3934 = vmatprep.mubr.msk.bf16.mxu0 %vm199_vm0, %v6575_v56 }
 0x3a4   :  { %v5685_v53 = vpop.f32.mrb[100].mxu1 }
 0x3a5   :  { %v5687_v23 = vpop.f32.mrb[101].mxu1  ;;  %v2641_v25 = vsel %vm199_vm0, %v5685_v53, -inf }
 0x3a6   :  { %v5691_v59 = vpop.f32.mrb[102].mxu1  ;;  %2642 = vmax.xlane.f32.xlu1 %v2641_v25  ;;  %v2635_v18 = vsel %vm199_vm0, %v5687_v23, -inf }
 0x3a7   :  { %v2644_v51 = vsel %vm199_vm0, %v5691_v59, -inf  ;;  %v5695_v63 = vpop.f32.mrb[103].mxu1 }
 0x3a8   :  { %2645 = vmax.xlane.f32.xlu0 %v2644_v51  ;;  %3935 = vmatmul.mubr.msk.bf16.gmra.mrb[128].mxu0 %vm199_vm0, %v6576_v48  ;;  %v2638_v36 = vsel %vm199_vm0, %v5695_v63, -inf }
 0x3a9   :  { %3938 = vmatprep.mubr.msk.bf16.mxu0 %vm199_vm0, %v6577_v8 }
 0x3aa   :  { %2636 = vmax.xlane.f32.xlu1 %v2635_v18 }
 0x3ac   :  { %2639 = vmax.xlane.f32.xlu0 %v2638_v36 }
 0x3b0   :  { %3939 = vmatmul.mubr.msk.bf16.gmra.mrb[132].mxu0 %vm199_vm0, %v6578_v49 }
 0x3b5   :  { %v5707_v19 = vpop.f32.mrb[104].mxu1 }
 0x3b6   :  { %v5709_v12 = vpop.f32.mrb[105].mxu1  ;;  %v2653_v3 = vsel %vm199_vm0, %v5707_v19, -inf }
 0x3b7   :  { %v5713_v20 = vpop.f32.mrb[106].mxu1  ;;  %2654 = vmax.xlane.f32.xlu1 %v2653_v3  ;;  %v5715_v9 = vpop.f32.mrb[96].mxu0  ;;  %v2647_v50 = vsel %vm199_vm0, %v5709_v12, -inf }
 0x3b8   :  { %v2656_v38 = vsel %vm199_vm0, %v5713_v20, -inf  ;;  %v5719_v57 = vpop.f32.mrb[97].mxu0  ;;  %v2677_v26 = vsel %vm199_vm0, %v5715_v9, -inf  ;;  %v5723_v24 = vpop.f32.mrb[107].mxu1 }
 0x3b9   :  { %2657 = vmax.xlane.f32.xlu0 %v2656_v38  ;;  %v5725_v62 = vpop.f32.mrb[98].mxu0  ;;  %v2650_v6 = vsel %vm199_vm0, %v5723_v24, -inf  ;;  %v2671_v4 = vsel %vm199_vm0, %v5719_v57, -inf }
 0x3ba   :  { %v2680_v27 = vsel %vm199_vm0, %v5725_v62, -inf  ;;  %v5729_v44 = vpop.f32.mrb[99].mxu0 }
 0x3bb   :  { %2678 = vmax.xlane.f32.xlu1 %v2677_v26  ;;  %v2674_v17 = vsel %vm199_vm0, %v5729_v44, -inf }
 0x3bd   :  { %2681 = vmax.xlane.f32.xlu0 %v2680_v27 }
 0x3bf   :  { %2648 = vmax.xlane.f32.xlu1 %v2647_v50 }
 0x3c1   :  { %2651 = vmax.xlane.f32.xlu0 %v2650_v6 }
 0x3c3   :  { %2672 = vmax.xlane.f32.xlu1 %v2671_v4 }
 0x3c5   :  { %2675 = vmax.xlane.f32.xlu0 %v2674_v17  ;;  %v5739_v56 = vpop.f32.mrb[108].mxu1 }
 0x3c6   :  { %v5741_v25 = vpop.f32.mrb[109].mxu1  ;;  %v2665_v51 = vsel %vm199_vm0, %v5739_v56, -inf }
 0x3c7   :  { %v5745_v18 = vpop.f32.mrb[110].mxu1  ;;  %2666 = vmax.xlane.f32.xlu1 %v2665_v51  ;;  %v2659_v50 = vsel %vm199_vm0, %v5741_v25, -inf }
 0x3c8   :  { %v5747_v48 = vpop.f32.mrb[100].mxu0  ;;  %v2668_v36 = vsel %vm199_vm0, %v5745_v18, -inf  ;;  %v5751_v8 = vpop.f32.mrb[111].mxu1 }
 0x3c9   :  { %2669 = vmax.xlane.f32.xlu0 %v2668_v36  ;;  %v5753_v49 = vpop.f32.mrb[101].mxu0  ;;  %v2701_v3 = vsel %vm199_vm0, %v5747_v48, -inf  ;;  %v2662_v6 = vsel %vm199_vm0, %v5751_v8, -inf }
 0x3ca   :  { %v5757_v38 = vpop.f32.mrb[102].mxu0  ;;  %v2695_v4 = vsel %vm199_vm0, %v5753_v49, -inf }
 0x3cb   :  { %2702 = vmax.xlane.f32.xlu1 %v2701_v3  ;;  %v2704_v26 = vsel %vm199_vm0, %v5757_v38, -inf  ;;  %v5761_v27 = vpop.f32.mrb[103].mxu0 }
 0x3cc   :  { %v2698_v17 = vsel %vm199_vm0, %v5761_v27, -inf }
 0x3cd   :  { %2705 = vmax.xlane.f32.xlu0 %v2704_v26 }
 0x3cf   :  { %2660 = vmax.xlane.f32.xlu1 %v2659_v50 }
 0x3d1   :  { %2663 = vmax.xlane.f32.xlu0 %v2662_v6 }
 0x3d3   :  { %2696 = vmax.xlane.f32.xlu1 %v2695_v4  ;;  %v6579_v4 = vld [vmem:[#allocation18_spill] sm:$0xff] }
 0x3d4   :  { %v1278_v58 = vsub.f32 %v6579_v4, %v5537_v54  ;;  %v1329_v54 = vmul.f32 1.442695, %v1277_v55  ;;  %v6583_v4 = vld [vmem:[#allocation37_spill] sm:$0xff]  ;;  %v6587_v55 = vld [vmem:[#allocation44_spill] sm:$0xff] }
 0x3d5   :  { %2699 = vmax.xlane.f32.xlu0 %v2698_v17  ;;  %v5771_v51 = vpop.f32.mrb[112].mxu1  ;;  %v1282_v11 = vsub.f32 %v6583_v4, %v5545_v61  ;;  %v1283_v61 = vsub.f32 %v6586_v5, %v5539_v32  ;;  %v1286_v31 = vsub.f32 %v6587_v55, %v5553_v7  ;;  %v6589_v7 = vld [vmem:[#allocation42_spill] sm:$0xff] }
 0x3d6   :  { %v5773_v36 = vpop.f32.mrb[113].mxu1  ;;  %v2689_v3 = vsel %vm199_vm0, %v5771_v51, -inf  ;;  %v1331_v13 = vmul.f32 1.442695, %v1278_v58 }
 0x3d7   :  { %v5777_v26 = vpop.f32.mrb[114].mxu1  ;;  %2690 = vmax.xlane.f32.xlu1 %v2689_v3  ;;  %v2683_v17 = vsel %vm199_vm0, %v5773_v36, -inf  ;;  %v6581_v3 = vld [vmem:[#allocation17_spill] sm:$0xff]  ;;  %v1339_v58 = vmul.f32 1.442695, %v1282_v11 }
 0x3d8   :  { %v2692_v50 = vsel %vm199_vm0, %v5777_v26, -inf  ;;  %v5781_v6 = vpop.f32.mrb[115].mxu1  ;;  %v1280_v42 = vsub.f32 %v6581_v3, %v5533_v2  ;;  %4075 = vpow2.f32 %v1331_v13  ;;  %v1337_v13 = vmul.f32 1.442695, %v1281_v60 }
 0x3d9   :  { %2693 = vmax.xlane.f32.xlu0 %v2692_v50  ;;  %v2686_v33 = vsel %vm199_vm0, %v5781_v6, -inf  ;;  %4077 = vpow2.f32 %v1329_v54  ;;  %v1341_v32 = vmul.f32 1.442695, %v1283_v61 }
 0x3da   :  { %v1335_v50 = vmul.f32 1.442695, %v1280_v42 }
 0x3db   :  { %2684 = vmax.xlane.f32.xlu1 %v2683_v17  ;;  %v6585_v17 = vld [vmem:[#allocation36_spill] sm:$0xff] }
 0x3dc   :  { %4079 = vpow2.f32 %v1335_v50  ;;  %v1284_v2 = vsub.f32 %v6585_v17, %v5541_v15  ;;  %v6588_v50 = vld [vmem:[#allocation40_spill] sm:$0xff]  ;;  %v1288_v17 = vsub.f32 %v6589_v7, %v5549_v35 }
 0x3dd   :  { %2687 = vmax.xlane.f32.xlu0 %v2686_v33  ;;  %4081 = vpow2.f32 %v1333_v46  ;;  %v1285_v4 = vsub.f32 %v6588_v50, %v5551_v28  ;;  %v6590_v28 = vld [vmem:[#allocation38_spill] sm:$0xff] }
 0x3de   :  { %v1343_v11 = vmul.f32 1.442695, %v1284_v2  ;;  %4083 = vpow2.f32 %v1339_v58  ;;  %v1347_v2 = vmul.f32 1.442695, %v1286_v31  ;;  %v1287_v5 = vsub.f32 %v6590_v28, %v5547_v16 }
 0x3df   :  { %4085 = vpow2.f32 %v1337_v13  ;;  %v1345_v61 = vmul.f32 1.442695, %v1285_v4 }
 0x3e0   :  { %4087 = vpow2.f32 %v1343_v11  ;;  %v1351_v11 = vmul.f32 1.442695, %v1288_v17  ;;  %v1349_v31 = vmul.f32 1.442695, %v1287_v5 }
 0x3e1   :  { %4089 = vpow2.f32 %v1341_v32 }
 0x3e2   :  { %v5819_v54 = vpop.eup %4075  ;;  %4091 = vpow2.f32 %v1347_v2 }
 0x3e3   :  { %v5825_v60 = vpop.eup %4077  ;;  %v1416_v58 = vsel %vm199_vm0, %v5819_v54, 0.0  ;;  %4093 = vpow2.f32 %v1345_v61 }
 0x3e4   :  { %v1413_v13 = vsel %vm199_vm0, %v5825_v60, 0.0  ;;  %4095 = vpow2.f32 %v1351_v11 }
 0x3e5   :  { %v5801_v33 = vpop.f32.mrb[116].mxu1  ;;  %4097 = vpow2.f32 %v1349_v31  ;;  %v5875_v31 = vpop.xlane.xlu1 %1405 }
 0x3e6   :  { %v5803_v3 = vpop.f32.mrb[117].mxu1  ;;  %v2713_v29 = vsel %vm199_vm0, %v5801_v33, -inf  ;;  %6591 = vst [vmem:[#allocation49_spill] sm:$0xff] %v5875_v31 }
 0x3e7   :  { %v5809_v42 = vpop.f32.mrb[118].mxu1  ;;  %2714 = vmax.xlane.f32.xlu1 %v2713_v29  ;;  %v2707_v46 = vsel %vm199_vm0, %v5803_v3, -inf  ;;  %v5831_v29 = vpop.eup %4079 }
 0x3e8   :  { %v2716_v30 = vsel %vm199_vm0, %v5809_v42, -inf  ;;  %v5813_v15 = vpop.f32.mrb[119].mxu1  ;;  %v1422_v35 = vsel %vm199_vm0, %v5831_v29, 0.0 }
 0x3e9   :  { %2717 = vmax.xlane.f32.xlu0 %v2716_v30  ;;  %v2710_v52 = vsel %vm199_vm0, %v5813_v15, -inf  ;;  %v5837_v30 = vpop.eup %4081 }
 0x3ea   :  { %v5841_v55 = vpop.eup %4083  ;;  %v1419_v16 = vsel %vm199_vm0, %v5837_v30, 0.0 }
 0x3eb   :  { %2708 = vmax.xlane.f32.xlu1 %v2707_v46  ;;  %v5845_v46 = vpop.eup %4085  ;;  %v1428_v32 = vsel %vm199_vm0, %v5841_v55, 0.0 }
 0x3ec   :  { %v5849_v50 = vpop.eup %4087  ;;  %v1425_v4 = vsel %vm199_vm0, %v5845_v46, 0.0 }
 0x3ed   :  { %2711 = vmax.xlane.f32.xlu0 %v2710_v52  ;;  %v5853_v52 = vpop.eup %4089  ;;  %v1434_v7 = vsel %vm199_vm0, %v5849_v50, 0.0 }
 0x3ee   :  { %v5857_v17 = vpop.eup %4091  ;;  %v1431_v2 = vsel %vm199_vm0, %v5853_v52, 0.0 }
 0x3ef   :  { %1417 = vadd.xlane.f32.xlu1 %v1416_v58  ;;  %v5861_v58 = vpop.eup %4093  ;;  %v1440_v28 = vsel %vm199_vm0, %v5857_v17, 0.0 }
 0x3f0   :  { %v5865_v5 = vpop.eup %4095  ;;  %v1437_v61 = vsel %vm199_vm0, %v5861_v58, 0.0 }
 0x3f1   :  { %1414 = vadd.xlane.f32.xlu0 %v1413_v13  ;;  %v5869_v13 = vpop.eup %4097  ;;  %v1446_v11 = vsel %vm199_vm0, %v5865_v5, 0.0 }
 0x3f3   :  { %1423 = vadd.xlane.f32.xlu1 %v1422_v35  ;;  %v1443_v35 = vsel %vm199_vm0, %v5869_v13, 0.0 }
 0x3f5   :  { %1420 = vadd.xlane.f32.xlu0 %v1419_v16  ;;  %v5877_v16 = vpop.xlane.xlu0 %1402 }
 0x3f6   :  { %6592 = vst [vmem:[#allocation20_spill] sm:$0xff] %v5877_v16 }
 0x3f7   :  { %1429 = vadd.xlane.f32.xlu1 %v1428_v32 }
 0x3f9   :  { %1426 = vadd.xlane.f32.xlu0 %v1425_v4 }
 0x3fb   :  { %1435 = vadd.xlane.f32.xlu1 %v1434_v7 }
 0x3fd   :  { %1432 = vadd.xlane.f32.xlu0 %v1431_v2 }
 0x3ff   :  { %1441 = vadd.xlane.f32.xlu1 %v1440_v28 }
 0x401   :  { %1438 = vadd.xlane.f32.xlu0 %v1437_v61 }
 0x403   :  { %1447 = vadd.xlane.f32.xlu1 %v1446_v11 }
 0x405   :  { %1444 = vadd.xlane.f32.xlu0 %v1443_v35 }
 0x423   :  { %v2631_v32 = vpop.xlane.xlu1 %2630 }
 0x424   :  { %v2721_v4 = vsub.f32 %v5661_v45, %v2631_v32 }
 0x425   :  { %v2634_v7 = vpop.xlane.xlu0 %2633 }
 0x426   :  { %v2755_v2 = vmul.f32 1.442695, %v2721_v4  ;;  %v2722_v28 = vsub.f32 %v5667_v40, %v2634_v7 }
 0x427   :  { %v2625_v61 = vpop.xlane.xlu1 %2624 }
 0x428   :  { %4099 = vpow2.f32 %v2755_v2  ;;  %v2757_v1 = vmul.f32 1.442695, %v2722_v28  ;;  %v2719_v11 = vsub.f32 %v5663_v14, %v2625_v61 }
 0x429   :  { %v2628_v0 = vpop.xlane.xlu0 %2627 }
 0x42a   :  { %4101 = vpow2.f32 %v2757_v1  ;;  %v2751_v22 = vmul.f32 1.442695, %v2719_v11  ;;  %v2720_v35 = vsub.f32 %v5671_v21, %v2628_v0 }
 0x42c   :  { %4103 = vpow2.f32 %v2751_v22  ;;  %v2753_v31 = vmul.f32 1.442695, %v2720_v35 }
 0x42e   :  { %4105 = vpow2.f32 %v2753_v31 }
 0x432   :  { %v5883_v16 = vpop.eup %4099 }
 0x433   :  { %v2643_v45 = vpop.xlane.xlu1 %2642  ;;  %v2821_v32 = vsel %vm199_vm0, %v5883_v16, 0.0 }
 0x434   :  { %v5887_v40 = vpop.eup %4101  ;;  %v2725_v4 = vsub.f32 %v5685_v53, %v2643_v45  ;;  %2822 = vadd.xlane.f32.xlu0 %v2821_v32 }
 0x435   :  { %v2646_v14 = vpop.xlane.xlu0 %2645  ;;  %v2824_v1 = vsel %vm199_vm0, %v5887_v40, 0.0 }
 0x436   :  { %v5892_v7 = vpop.eup %4103  ;;  %v2763_v22 = vmul.f32 1.442695, %v2725_v4  ;;  %v2726_v0 = vsub.f32 %v5691_v59, %v2646_v14  ;;  %2825 = vadd.xlane.f32.xlu1 %v2824_v1 }
 0x437   :  { %v2637_v21 = vpop.xlane.xlu1 %2636  ;;  %v2815_v31 = vsel %vm199_vm0, %v5892_v7, 0.0 }
 0x438   :  { %v5897_v2 = vpop.eup %4105  ;;  %4107 = vpow2.f32 %v2763_v22  ;;  %v2765_v28 = vmul.f32 1.442695, %v2726_v0  ;;  %v2723_v53 = vsub.f32 %v5687_v23, %v2637_v21  ;;  %2816 = vadd.xlane.f32.xlu0 %v2815_v31 }
 0x439   :  { %v2640_v61 = vpop.xlane.xlu0 %2639  ;;  %v2818_v11 = vsel %vm199_vm0, %v5897_v2, 0.0 }
 0x43a   :  { %4109 = vpow2.f32 %v2765_v28  ;;  %v2759_v35 = vmul.f32 1.442695, %v2723_v53  ;;  %v2724_v59 = vsub.f32 %v5695_v63, %v2640_v61  ;;  %2819 = vadd.xlane.f32.xlu1 %v2818_v11 }
 0x43c   :  { %4111 = vpow2.f32 %v2759_v35  ;;  %v2761_v45 = vmul.f32 1.442695, %v2724_v59 }
 0x43e   :  { %4113 = vpow2.f32 %v2761_v45 }
 0x442   :  { %v5903_v32 = vpop.eup %4107 }
 0x443   :  { %v2833_v14 = vsel %vm199_vm0, %v5903_v32, 0.0 }
 0x444   :  { %v2655_v4 = vpop.xlane.xlu1 %2654  ;;  %v5907_v23 = vpop.eup %4109  ;;  %2834 = vadd.xlane.f32.xlu0 %v2833_v14 }
 0x445   :  { %v2729_v1 = vsub.f32 %v5707_v19, %v2655_v4  ;;  %v2836_v0 = vsel %vm199_vm0, %v5907_v23, 0.0 }
 0x446   :  { %v2658_v22 = vpop.xlane.xlu0 %2657  ;;  %v5912_v63 = vpop.eup %4111  ;;  %2837 = vadd.xlane.f32.xlu1 %v2836_v0 }
 0x447   :  { %v2771_v21 = vmul.f32 1.442695, %v2729_v1  ;;  %v2730_v31 = vsub.f32 %v5713_v20, %v2658_v22  ;;  %v2827_v53 = vsel %vm199_vm0, %v5912_v63, 0.0 }
 0x448   :  { %v2679_v28 = vpop.xlane.xlu1 %2678  ;;  %v5917_v61 = vpop.eup %4113  ;;  %2828 = vadd.xlane.f32.xlu0 %v2827_v53 }
 0x449   :  { %4115 = vpow2.f32 %v2771_v21  ;;  %v2773_v11 = vmul.f32 1.442695, %v2730_v31  ;;  %v2737_v19 = vsub.f32 %v5715_v9, %v2679_v28  ;;  %v2830_v59 = vsel %vm199_vm0, %v5917_v61, 0.0 }
 0x44a   :  { %v2682_v35 = vpop.xlane.xlu0 %2681  ;;  %2831 = vadd.xlane.f32.xlu1 %v2830_v59 }
 0x44b   :  { %4117 = vpow2.f32 %v2773_v11  ;;  %v2787_v45 = vmul.f32 1.442695, %v2737_v19  ;;  %v2738_v20 = vsub.f32 %v5725_v62, %v2682_v35  ;;  %v5924_v0 = vpop.f32.mrb[104].mxu0 }
 0x44c   :  { %v2649_v4 = vpop.xlane.xlu1 %2648  ;;  %v5927_v28 = vpop.f32.mrb[105].mxu0 }
 0x44d   :  { %4119 = vpow2.f32 %v2787_v45  ;;  %v2789_v14 = vmul.f32 1.442695, %v2738_v20  ;;  %v2727_v1 = vsub.f32 %v5709_v12, %v2649_v4  ;;  %v5930_v11 = vpop.f32.mrb[106].mxu0 }
 0x44e   :  { %v2652_v22 = vpop.xlane.xlu0 %2651 }
 0x44f   :  { %4121 = vpow2.f32 %v2789_v14  ;;  %v2767_v9 = vmul.f32 1.442695, %v2727_v1  ;;  %v2728_v21 = vsub.f32 %v5723_v24, %v2652_v22 }
 0x450   :  { %v2673_v31 = vpop.xlane.xlu1 %2672 }
 0x451   :  { %4123 = vpow2.f32 %v2767_v9  ;;  %v2769_v53 = vmul.f32 1.442695, %v2728_v21  ;;  %v2735_v62 = vsub.f32 %v5719_v57, %v2673_v31  ;;  %v5940_v57 = vpop.f32.mrb[107].mxu0 }
 0x452   :  { %v2676_v19 = vpop.xlane.xlu0 %2675 }
 0x453   :  { %v5932_v35 = vpop.eup %4115  ;;  %4125 = vpow2.f32 %v2769_v53  ;;  %v2783_v12 = vmul.f32 1.442695, %v2735_v62  ;;  %v2736_v59 = vsub.f32 %v5729_v44, %v2676_v19 }
 0x454   :  { %v2667_v45 = vpop.xlane.xlu1 %2666  ;;  %v2845_v24 = vsel %vm199_vm0, %v5932_v35, 0.0 }
 0x455   :  { %v5937_v20 = vpop.eup %4117  ;;  %4127 = vpow2.f32 %v2783_v12  ;;  %v2785_v4 = vmul.f32 1.442695, %v2736_v59  ;;  %v2733_v14 = vsub.f32 %v5739_v56, %v2667_v45  ;;  %2846 = vadd.xlane.f32.xlu0 %v2845_v24 }
 0x456   :  { %v2670_v1 = vpop.xlane.xlu0 %2669  ;;  %v2848_v22 = vsel %vm199_vm0, %v5937_v20, 0.0 }
 0x457   :  { %v5944_v9 = vpop.eup %4119  ;;  %4129 = vpow2.f32 %v2785_v4  ;;  %v2779_v44 = vmul.f32 1.442695, %v2733_v14  ;;  %v2734_v21 = vsub.f32 %v5745_v18, %v2670_v1  ;;  %2849 = vadd.xlane.f32.xlu1 %v2848_v22 }
 0x458   :  { %v2703_v31 = vpop.xlane.xlu1 %2702  ;;  %v2869_v53 = vsel %vm199_vm0, %v5944_v9, 0.0 }
 0x459   :  { %v5949_v62 = vpop.eup %4121  ;;  %4131 = vpow2.f32 %v2779_v44  ;;  %v2781_v56 = vmul.f32 1.442695, %v2734_v21  ;;  %v2745_v19 = vsub.f32 %v5747_v48, %v2703_v31  ;;  %2870 = vadd.xlane.f32.xlu0 %v2869_v53  ;;  %v5964_v31 = vpop.f32.mrb[108].mxu0 }
 0x45a   :  { %v2706_v12 = vpop.xlane.xlu0 %2705  ;;  %v2872_v59 = vsel %vm199_vm0, %v5949_v62, 0.0 }
 0x45b   :  { %v5954_v45 = vpop.eup %4123  ;;  %4133 = vpow2.f32 %v2781_v56  ;;  %v2803_v18 = vmul.f32 1.442695, %v2745_v19  ;;  %v2746_v24 = vsub.f32 %v5757_v38, %v2706_v12  ;;  %2873 = vadd.xlane.f32.xlu1 %v2872_v59  ;;  %v5971_v59 = vpop.f32.mrb[109].mxu0 }
 0x45c   :  { %v2661_v4 = vpop.xlane.xlu1 %2660  ;;  %v2839_v14 = vsel %vm199_vm0, %v5954_v45, 0.0 }
 0x45d   :  { %v5959_v1 = vpop.eup %4125  ;;  %4135 = vpow2.f32 %v2803_v18  ;;  %v2805_v48 = vmul.f32 1.442695, %v2746_v24  ;;  %v2731_v22 = vsub.f32 %v5741_v25, %v2661_v4  ;;  %2840 = vadd.xlane.f32.xlu0 %v2839_v14  ;;  %v5976_v4 = vpop.f32.mrb[110].mxu0 }
 0x45e   :  { %v2664_v44 = vpop.xlane.xlu0 %2663  ;;  %v2842_v21 = vsel %vm199_vm0, %v5959_v1, 0.0 }
 0x45f   :  { %v5966_v53 = vpop.eup %4127  ;;  %4137 = vpow2.f32 %v2805_v48  ;;  %v2775_v38 = vmul.f32 1.442695, %v2731_v22  ;;  %v2732_v56 = vsub.f32 %v5751_v8, %v2664_v44  ;;  %2843 = vadd.xlane.f32.xlu1 %v2842_v21 }
 0x460   :  { %6593 = vst [vmem:[#allocation50_spill] sm:$0xff] %v5966_v53  ;;  %v2697_v19 = vpop.xlane.xlu1 %2696  ;;  %v2863_v12 = vsel %vm199_vm0, %v5966_v53, 0.0 }
 0x461   :  { %v5973_v25 = vpop.eup %4129  ;;  %4139 = vpow2.f32 %v2775_v38  ;;  %v2777_v18 = vmul.f32 1.442695, %v2732_v56  ;;  %v2743_v24 = vsub.f32 %v5753_v49, %v2697_v19  ;;  %2864 = vadd.xlane.f32.xlu0 %v2863_v12  ;;  %v5988_v12 = vpop.f32.mrb[111].mxu0 }
 0x462   :  { %6594 = vst [vmem:[#allocation21_spill] sm:$0xff] %v5973_v25  ;;  %v2700_v14 = vpop.xlane.xlu0 %2699  ;;  %v2866_v8 = vsel %vm199_vm0, %v5973_v25, 0.0 }
 0x463   :  { %v5980_v48 = vpop.eup %4131  ;;  %4141 = vpow2.f32 %v2777_v18  ;;  %v2799_v22 = vmul.f32 1.442695, %v2743_v24  ;;  %v2744_v44 = vsub.f32 %v5761_v27, %v2700_v14  ;;  %2867 = vadd.xlane.f32.xlu1 %v2866_v8 }
 0x464   :  { %6595 = vst [vmem:[#allocation52_spill] sm:$0xff] %v5980_v48  ;;  %v2691_v21 = vpop.xlane.xlu1 %2690  ;;  %v2857_v38 = vsel %vm199_vm0, %v5980_v48, 0.0 }
 0x465   :  { %v5985_v56 = vpop.eup %4133  ;;  %4143 = vpow2.f32 %v2799_v22  ;;  %v2801_v49 = vmul.f32 1.442695, %v2744_v44  ;;  %v2741_v19 = vsub.f32 %v5771_v51, %v2691_v21  ;;  %2858 = vadd.xlane.f32.xlu0 %v2857_v38 }
 0x466   :  { %6596 = vst [vmem:[#allocation51_spill] sm:$0xff] %v5985_v56  ;;  %v2694_v25 = vpop.xlane.xlu0 %2693  ;;  %v2860_v18 = vsel %vm199_vm0, %v5985_v56, 0.0 }
 0x467   :  { %v5992_v24 = vpop.eup %4135  ;;  %4145 = vpow2.f32 %v2801_v49  ;;  %v2795_v27 = vmul.f32 1.442695, %v2741_v19  ;;  %v2742_v14 = vsub.f32 %v5777_v26, %v2694_v25  ;;  %2861 = vadd.xlane.f32.xlu1 %v2860_v18  ;;  %v6005_v19 = vpop.f32.mrb[112].mxu0 }
 0x468   :  { %6597 = vst [vmem:[#allocation53_spill] sm:$0xff] %v5992_v24  ;;  %v2685_v8 = vpop.xlane.xlu1 %2684  ;;  %v2893_v22 = vsel %vm199_vm0, %v5992_v24, 0.0 }
 0x469   :  { %v5997_v44 = vpop.eup %4137  ;;  %4147 = vpow2.f32 %v2795_v27  ;;  %v2797_v51 = vmul.f32 1.442695, %v2742_v14  ;;  %v2739_v21 = vsub.f32 %v5773_v36, %v2685_v8  ;;  %2894 = vadd.xlane.f32.xlu0 %v2893_v22  ;;  %v6009_v27 = vpop.f32.mrb[113].mxu0 }
 0x46a   :  { %6598 = vst [vmem:[#allocation22_spill] sm:$0xff] %v5997_v44  ;;  %v2688_v38 = vpop.xlane.xlu0 %2687  ;;  %v2896_v56 = vsel %vm199_vm0, %v5997_v44, 0.0  ;;  %v6013_v8 = vpop.f32.mrb[114].mxu0 }
 0x46b   :  { %v6002_v49 = vpop.eup %4139  ;;  %4149 = vpow2.f32 %v2797_v51  ;;  %v2791_v26 = vmul.f32 1.442695, %v2739_v21  ;;  %v2740_v25 = vsub.f32 %v5781_v6, %v2688_v38  ;;  %2897 = vadd.xlane.f32.xlu1 %v2896_v56  ;;  %v6017_v51 = vpop.f32.mrb[115].mxu0 }
 0x46c   :  { %6599 = vst [vmem:[#allocation54_spill] sm:$0xff] %v6002_v49  ;;  %v2851_v18 = vsel %vm199_vm0, %v6002_v49, 0.0  ;;  %v6021_v56 = vpop.f32.mrb[116].mxu0 }
 0x46d   :  { %v6011_v36 = vpop.eup %4141  ;;  %4151 = vpow2.f32 %v2791_v26  ;;  %v2793_v14 = vmul.f32 1.442695, %v2740_v25  ;;  %2852 = vadd.xlane.f32.xlu0 %v2851_v18  ;;  %6602 = vst [vmem:[#allocation55_spill] sm:$0xff] %v6021_v56  ;;  %v6025_v38 = vpop.f32.mrb[117].mxu0 }
 0x46e   :  { %6600 = vst [vmem:[#allocation23_spill] sm:$0xff] %v6011_v36  ;;  %v2854_v22 = vsel %vm199_vm0, %v6011_v36, 0.0  ;;  %6603 = vst [vmem:[#allocation57_spill] sm:$0xff] %v6025_v38  ;;  %v6029_v25 = vpop.f32.mrb[118].mxu0 }
 0x46f   :  { %v6019_v6 = vpop.eup %4143  ;;  %4153 = vpow2.f32 %v2793_v14  ;;  %2855 = vadd.xlane.f32.xlu1 %v2854_v22  ;;  %6605 = vst [vmem:[#allocation58_spill] sm:$0xff] %v6029_v25  ;;  %v6033_v36 = vpop.f32.mrb[119].mxu0 }
 0x470   :  { %6601 = vst [vmem:[#allocation56_spill] sm:$0xff] %v6019_v6  ;;  %v2887_v21 = vsel %vm199_vm0, %v6019_v6, 0.0  ;;  %6606 = vst [vmem:[#allocation25_spill] sm:$0xff] %v6033_v36  ;;  %v6037_v14 = vpop.f32.mrb[120].mxu0 }
 0x471   :  { %v6027_v26 = vpop.eup %4145  ;;  %2888 = vadd.xlane.f32.xlu0 %v2887_v21  ;;  %v6041_v44 = vpop.f32.mrb[121].mxu0 }
 0x472   :  { %6604 = vst [vmem:[#allocation24_spill] sm:$0xff] %v6027_v26  ;;  %v2890_v18 = vsel %vm199_vm0, %v6027_v26, 0.0  ;;  %6608 = vst [vmem:[#allocation26_spill] sm:$0xff] %v6041_v44  ;;  %v6046_v24 = vpop.f32.mrb[122].mxu0 }
 0x473   :  { %v6035_v49 = vpop.eup %4147  ;;  %2891 = vadd.xlane.f32.xlu1 %v2890_v18 }
 0x474   :  { %6607 = vst [vmem:[#allocation60_spill] sm:$0xff] %v6035_v49  ;;  %v2715_v22 = vpop.xlane.xlu1 %2714  ;;  %v2881_v6 = vsel %vm199_vm0, %v6035_v49, 0.0 }
 0x475   :  { %v6043_v38 = vpop.eup %4149  ;;  %v2749_v21 = vsub.f32 %v5801_v33, %v2715_v22  ;;  %2882 = vadd.xlane.f32.xlu0 %v2881_v6 }
 0x476   :  { %6609 = vst [vmem:[#allocation27_spill] sm:$0xff] %v6043_v38  ;;  %v2718_v26 = vpop.xlane.xlu0 %2717  ;;  %v2884_v36 = vsel %vm199_vm0, %v6043_v38, 0.0 }
 0x477   :  { %v6050_v18 = vpop.eup %4151  ;;  %v2811_v48 = vmul.f32 1.442695, %v2749_v21  ;;  %v2750_v25 = vsub.f32 %v5809_v42, %v2718_v26  ;;  %2885 = vadd.xlane.f32.xlu1 %v2884_v36  ;;  %v6061_v26 = vpop.f32.mrb[123].mxu0 }
 0x478   :  { %6610 = vst [vmem:[#allocation28_spill] sm:$0xff] %v6050_v18  ;;  %v2709_v49 = vpop.xlane.xlu1 %2708  ;;  %v2875_v56 = vsel %vm199_vm0, %v6050_v18, 0.0 }
 0x479   :  { %v6055_v53 = vpop.eup %4153  ;;  %v2813_v33 = vmul.f32 1.442695, %v2750_v25  ;;  %v2747_v6 = vsub.f32 %v5803_v3, %v2709_v49  ;;  %2876 = vadd.xlane.f32.xlu0 %v2875_v56  ;;  %4155 = vpow2.f32 %v2811_v48  ;;  %v6063_v3 = vpop.f32.mrb[124].mxu0 }
 0x47a   :  { %6611 = vst [vmem:[#allocation29_spill] sm:$0xff] %v6055_v53  ;;  %v2712_v22 = vpop.xlane.xlu0 %2711  ;;  %v2878_v38 = vsel %vm199_vm0, %v6055_v53, 0.0  ;;  %6612 = vst [vmem:[#allocation30_spill] sm:$0xff] %v6063_v3  ;;  %v6065_v56 = vpop.f32.mrb[125].mxu0 }
 0x47b   :  { %v2807_v44 = vmul.f32 1.442695, %v2747_v6  ;;  %v2748_v21 = vsub.f32 %v5813_v15, %v2712_v22  ;;  %2879 = vadd.xlane.f32.xlu1 %v2878_v38  ;;  %4157 = vpow2.f32 %v2813_v33  ;;  %6613 = vst [vmem:[#allocation31_spill] sm:$0xff] %v6065_v56  ;;  %v6067_v48 = vpop.f32.mrb[126].mxu0 }
 0x47c   :  { %v1418_v42 = vpop.xlane.xlu1 %1417  ;;  %6614 = vst [vmem:[#allocation32_spill] sm:$0xff] %v6067_v48  ;;  %v6069_v38 = vpop.f32.mrb[127].mxu0 }
 0x47d   :  { %4159 = vpow2.f32 %v2807_v44  ;;  %v2809_v36 = vmul.f32 1.442695, %v2748_v21  ;;  %6615 = vst [vmem:[#allocation33_spill] sm:$0xff] %v6069_v38  ;;  %v6071_v44 = vpop.f32.mrb[128].mxu0 }
 0x47e   :  { %4161 = vrcp.f32 %v1418_v42  ;;  %v1415_v25 = vpop.xlane.xlu0 %1414  ;;  %6616 = vst [vmem:[#allocation34_spill] sm:$0xff] %v6071_v44  ;;  %v6073_v6 = vpop.f32.mrb[129].mxu0 }
 0x47f   :  { %4163 = vpow2.f32 %v2809_v36  ;;  %6617 = vst [vmem:[#allocation18_spill] sm:$0xff] %v6073_v6  ;;  %v6077_v21 = vpop.f32.mrb[130].mxu0  ;;  %v6623_v6 = vld [vmem:[#allocation66_spill] sm:$0xff] }
 0x480   :  { %4165 = vrcp.f32 %v1415_v25  ;;  %v1424_v49 = vpop.xlane.xlu1 %1423  ;;  %6619 = vst [vmem:[#allocation17_spill] sm:$0xff] %v6077_v21 }
 0x481   :  { %4167 = vrcp.f32 %v1424_v49 }
 0x482   :  { %v1421_v15 = vpop.xlane.xlu0 %1420 }
 0x483   :  { %4169 = vrcp.f32 %v1421_v15  ;;  %v6075_v22 = vpop.eup %4155 }
 0x484   :  { %v1430_v33 = vpop.xlane.xlu1 %1429  ;;  %6618 = vst [vmem:[#allocation16_spill] sm:$0xff] %v6075_v22 }
 0x485   :  { %4171 = vrcp.f32 %v1430_v33  ;;  %v6079_v42 = vpop.eup %4157 }
 0x486   :  { %6620 = vst [vmem:[#allocation15_spill] sm:$0xff] %v6079_v42  ;;  %v1427_v36 = vpop.xlane.xlu0 %1426 }
 0x487   :  { %v6081_v25 = vpop.eup %4159  ;;  %4173 = vrcp.f32 %v1427_v36 }
 0x488   :  { %6621 = vst [vmem:[#allocation37_spill] sm:$0xff] %v6081_v25  ;;  %v4162_v49 = vpop.eup %4161  ;;  %v1436_v53 = vpop.xlane.xlu1 %1435  ;;  %v2899_v15 = vsel %vm199_vm0, %v6081_v25, 0.0 }
 0x489   :  { %v6085_v18 = vpop.eup %4163  ;;  %v1502_v38 = vmul.f32 %v4162_v49, %v5819_v54  ;;  %4175 = vrcp.f32 %v1436_v53  ;;  %2900 = vadd.xlane.f32.xlu0 %v2899_v15  ;;  %v2905_v54 = vsel %vm199_vm0, %v6075_v22, 0.0  ;;  %v6625_v49 = vld [vmem:[#allocation64_spill] sm:$0xff] }
 0x48a   :  { %6622 = vst [vmem:[#allocation35_spill] sm:$0xff] %v6085_v18  ;;  %v4166_v33 = vpop.eup %4165  ;;  %v1433_v56 = vpop.xlane.xlu0 %1432  ;;  %v2902_v48 = vsel %vm199_vm0, %v6085_v18, 0.0 }
 0x48b   :  { %v4168_v3 = vpop.eup %4167  ;;  %v6091_v21 = vmul.f32 %v6623_v6, %v1502_v38  ;;  %v1501_v36 = vmul.f32 %v4166_v33, %v5825_v60  ;;  %4177 = vrcp.f32 %v1433_v56  ;;  %2903 = vadd.xlane.f32.xlu1 %v2902_v48  ;;  %v6100_v18 = vpop.f32.mrb[131].mxu0  ;;  %v6627_v38 = vld [vmem:[#allocation65_spill] sm:$0xff]  ;;  %v6111_v48 = vld [vmem:[%s6350_s4 + $0x1] ss:$0 sm:$0xff] }
 0x48c   :  { %v1504_v25 = vmul.f32 %v4168_v3, %v5831_v29  ;;  %v1442_v44 = vpop.xlane.xlu1 %1441  ;;  %v2908_v29 = vsel %vm199_vm0, %v6079_v42, 0.0 }
 0x48d   :  { %6624 = vst [vmem:[#allocation36_spill] sm:$0xff] %v6091_v21  ;;  %v4170_v53 = vpop.eup %4169  ;;  %v6098_v15 = vmul.f32 %v6625_v49, %v1501_v36  ;;  %4179 = vrcp.f32 %v1442_v44  ;;  %2906 = vadd.xlane.f32.xlu0 %v2905_v54  ;;  %v6628_v44 = vld [vmem:[#allocation70_spill] sm:$0xff]  ;;  %v6629_v36 = vld [vmem:[#allocation63_spill] sm:$0xff]  ;;  %v6630_v49 = vld [vmem:[#allocation68_spill] sm:$0xff] }
 0x48e   :  { %v6103_v6 = vmul.f32 %v6627_v38, %v1504_v25  ;;  %v1503_v60 = vmul.f32 %v4170_v53, %v5837_v30  ;;  %v1439_v56 = vpop.xlane.xlu0 %1438  ;;  %v1672_v33 = vadd.f32 %v6111_v48, %v6628_v44  ;;  %v1669_v38 = vadd.f32 %v6111_v48, %v6630_v49  ;;  %v6631_v21 = vld [vmem:[#allocation69_spill] sm:$0xff] }
 0x48f   :  { %6626 = vst [vmem:[#allocation19_spill] sm:$0xff] %v6098_v15  ;;  %v4172_v3 = vpop.eup %4171  ;;  %4181 = vrcp.f32 %v1439_v56  ;;  %2909 = vadd.xlane.f32.xlu1 %v2908_v29  ;;  %v1680_v44 = vadd.f32 %v6111_v48, %v6631_v21 }
 0x490   :  { %v6116_v25 = vmul.f32 %v6629_v36, %v1503_v60  ;;  %v1448_v54 = vpop.xlane.xlu1 %1447  ;;  %v1506_v30 = vmul.f32 %v4172_v3, %v5841_v55  ;;  %v6632_v3 = vld [vmem:[#allocation67_spill] sm:$0xff] }
 0x491   :  { %v4174_v53 = vpop.eup %4173  ;;  %4183 = vrcp.f32 %v1448_v54  ;;  %v1677_v54 = vadd.f32 %v6111_v48, %v6632_v3 }
 0x492   :  { %v1445_v56 = vpop.xlane.xlu0 %1444  ;;  %v1505_v29 = vmul.f32 %v4174_v53, %v5845_v46  ;;  %v6122_v42 = vmul.f32 %v1672_v33, %v1506_v30 }
 0x493   :  { %v4176_v22 = vpop.eup %4175  ;;  %4185 = vrcp.f32 %v1445_v56 }
 0x494   :  { %v6126_v60 = vmul.f32 %v1669_v38, %v1505_v29  ;;  %v1508_v36 = vmul.f32 %v4176_v22, %v5849_v50  ;;  %v6633_v38 = vld [vmem:[#allocation74_spill] sm:$0xff]  ;;  %v6634_v22 = vld [vmem:[#allocation72_spill] sm:$0xff] }
 0x495   :  { %v4178_v55 = vpop.eup %4177 }
 0x496   :  { %v1507_v49 = vmul.f32 %v4178_v55, %v5853_v52  ;;  %v6132_v15 = vmul.f32 %v1680_v44, %v1508_v36  ;;  %v6635_v36 = vld [vmem:[#allocation73_spill] sm:$0xff] }
 0x497   :  { %v4180_v46 = vpop.eup %4179 }
 0x498   :  { %v6134_v33 = vmul.f32 %v1677_v54, %v1507_v49  ;;  %v1510_v30 = vmul.f32 %v4180_v46, %v5857_v17  ;;  %v6637_v54 = vld [vmem:[#allocation71_spill] sm:$0xff]  ;;  %v6152_v49 = vpop.f32.mrb[132].mxu0 }
 0x499   :  { %v4182_v53 = vpop.eup %4181 }
 0x49a   :  { %v1509_v21 = vmul.f32 %v4182_v53, %v5861_v58  ;;  %v6139_v56 = vmul.f32 %v6633_v38, %v1510_v30  ;;  %v6154_v58 = vpop.f32.mrb[133].mxu0  ;;  %v6163_v38 = vld [vmem:[%s6351_s5 + $0x2] ss:$0 sm:$0xff]  ;;  %s4382_s5 = smov [#allocation10]  }
 0x49b   :  { %v4184_v50 = vpop.eup %4183  ;;  %v6156_v46 = vpop.f32.mrb[134].mxu0  ;;  %s3262_s12 = sshll.u32 %s4382_s5, 4  ;;  %s3263_s12 = int_to_ptr.vmem [resolvable:$true] %s3262_s12 }
 0x49c   :  { %v6142_v29 = vmul.f32 %v6634_v22, %v1509_v21  ;;  %v1512_v3 = vmul.f32 %v4184_v50, %v5865_v5  ;;  %v6158_v30 = vpop.f32.mrb[135].mxu0  ;;  %v3043_v50 = vadd.f32 %v5924_v0, %v6163_v38  ;;  %s4344_s13 = scalar_lea.vmem %s3263_s12, 4096  ;;  %p4349_p5 = scmp.lt.s32.totalorder %s3263_s12, %s3263_s12 }
 0x49d   :  { %v4186_v52 = vpop.eup %4185  ;;  %p4345_p4 = scmp.ne.s32.totalorder %s3263_s12, %s4344_s13  ;;  %p4350_p6 = scmp.lt.s32.totalorder %s4344_s13, %s4344_s13 }
 0x49e   :  { %v1511_v44 = vmul.f32 %v4186_v52, %v5869_v13  ;;  %v6147_v55 = vmul.f32 %v6635_v36, %v1512_v3  ;;  %v3046_v52 = vadd.f32 %v5930_v11, %v6163_v38 }
 0x49f   :  { %p4351_p7 = por %p4350_p6, %p4349_p5 }
 0x4a0   :  { %6636 = vst [vmem:[#allocation44_spill] sm:$0xff] %v6147_v55  ;;  %v6150_v17 = vmul.f32 %v6637_v54, %v1511_v44  ;;  %v3035_v54 = vadd.f32 %v6163_v38, %v5927_v28 }
 0x4a1   :  { %p4352_p8 = pnand %p4351_p7, %p4345_p4 }
 0x4c1   :  { %v2823_v53 = vpop.xlane.xlu0 %2822 }
 0x4c2   :  { %4187 = vrcp.f32 %v2823_v53 }
 0x4c3   :  { %v2826_v5 = vpop.xlane.xlu1 %2825 }
 0x4c4   :  { %4189 = vrcp.f32 %v2826_v5 }
 0x4c5   :  { %v2817_v21 = vpop.xlane.xlu0 %2816 }
 0x4c6   :  { %4191 = vrcp.f32 %v2817_v21 }
 0x4c7   :  { %v2820_v13 = vpop.xlane.xlu1 %2819 }
 0x4c8   :  { %4193 = vrcp.f32 %v2820_v13 }
 0x4cc   :  { %v4188_v22 = vpop.eup %4187 }
 0x4cd   :  { %v2945_v3 = vmul.f32 %v4188_v22, %v5883_v16  ;;  %v3038_v16 = vadd.f32 %v6163_v38, %v5940_v57 }
 0x4ce   :  { %v4190_v44 = vpop.eup %4189 }
 0x4cf   :  { %v3163_v36 = vmul.f32 %v3043_v50, %v2945_v3  ;;  %v2946_v53 = vmul.f32 %v4190_v44, %v5887_v40 }
 0x4d0   :  { %v4192_v5 = vpop.eup %4191 }
 0x4d1   :  { %v3195_v21 = vadd.f32 %v3163_v36, %v5558_v47  ;;  %v2943_v13 = vmul.f32 %v4192_v5, %v5892_v7  ;;  %v3164_v55 = vmul.f32 %v3046_v52, %v2946_v53  ;;  %v2835_v0 = vpop.xlane.xlu0 %2834 }
 0x4d2   :  { %v4194_v22 = vpop.eup %4193  ;;  %4195 = vrcp.f32 %v2835_v0 }
 0x4d3   :  { %3227 = vst.msk [vmem:[#allocation10 + $0x10] sm:$0xff] %vm199_vm0, %v3195_v21  ;;  %v3161_v11 = vmul.f32 %v3035_v54, %v2943_v13  ;;  %v3196_v50 = vadd.f32 %v3164_v55, %v5568_v39  ;;  %v2944_v28 = vmul.f32 %v4194_v22, %v5897_v2  ;;  %v2838_v40 = vpop.xlane.xlu1 %2837  ;;  %v3059_v39 = vadd.f32 %v5964_v31, %v6163_v38 }
 0x4d4   :  { %4197 = vrcp.f32 %v2838_v40  ;;  %v3051_v54 = vadd.f32 %v6163_v38, %v5971_v59 }
 0x4d5   :  { %v3193_v47 = vadd.f32 %v3161_v11, %v5566_v37  ;;  %3228 = vst.msk [vmem:[#allocation10 + $0x18] sm:$0xff] %vm199_vm0, %v3196_v50  ;;  %v3162_v7 = vmul.f32 %v3038_v16, %v2944_v28  ;;  %v2829_v3 = vpop.xlane.xlu0 %2828  ;;  %v3062_v37 = vadd.f32 %v5976_v4, %v6163_v38  ;;  %v6639_v28 = vld [vmem:[#allocation20_spill] sm:$0xff] }
 0x4d6   :  { %4199 = vrcp.f32 %v2829_v3  ;;  %v3078_v3 = vadd.f32 %v6013_v8, %v6163_v38  ;;  %v3110_v8 = vadd.f32 %v6046_v24, %v6163_v38  ;;  %v3070_v24 = vadd.f32 %v6163_v38, %v6017_v51 }
 0x4d7   :  { %3225 = vst.msk [vmem:[#allocation10] sm:$0xff] %vm199_vm0, %v3193_v47  ;;  %v3194_v57 = vadd.f32 %v3162_v7, %v5576_v10  ;;  %v2832_v52 = vpop.xlane.xlu1 %2831 }
 0x4d8   :  { %4201 = vrcp.f32 %v2832_v52 }
 0x4d9   :  { %3226 = vst.msk [vmem:[#allocation10 + $0x8] sm:$0xff] %vm199_vm0, %v3194_v57 }
 0x4dc   :  { %v4196_v2 = vpop.eup %4195 }
 0x4dd   :  { %v2949_v55 = vmul.f32 %v4196_v2, %v5903_v32  ;;  %v3054_v32 = vadd.f32 %v6163_v38, %v5988_v12  ;;  %v6638_v12 = vld [vmem:[#allocation76_spill] sm:$0xff] }
 0x4de   :  { %v4198_v44 = vpop.eup %4197 }
 0x4df   :  { %v3167_v36 = vmul.f32 %v3059_v39, %v2949_v55  ;;  %v2950_v10 = vmul.f32 %v4198_v44, %v5907_v23 }
 0x4e0   :  { %v4200_v53 = vpop.eup %4199 }
 0x4e1   :  { %v3199_v5 = vadd.f32 %v3167_v36, %v5578_v41  ;;  %v2947_v21 = vmul.f32 %v4200_v53, %v5912_v63  ;;  %v3168_v13 = vmul.f32 %v3062_v37, %v2950_v10  ;;  %v3107_v37 = vadd.f32 %v6037_v14, %v6163_v38  ;;  %v6642_v14 = vld [vmem:[#allocation75_spill] sm:$0xff] }
 0x4e2   :  { %v2847_v31 = vpop.xlane.xlu0 %2846  ;;  %v4202_v0 = vpop.eup %4201 }
 0x4e3   :  { %4203 = vrcp.f32 %v2847_v31  ;;  %3231 = vst.msk [vmem:[#allocation10 + $0x30] sm:$0xff] %vm199_vm0, %v3199_v5  ;;  %v3165_v4 = vmul.f32 %v3051_v54, %v2947_v21  ;;  %v3200_v16 = vadd.f32 %v3168_v13, %v5586_v43  ;;  %v2948_v59 = vmul.f32 %v4202_v0, %v5917_v61  ;;  %v6640_v61 = vld [vmem:[#allocation49_spill] sm:$0xff] }
 0x4e4   :  { %v2850_v23 = vpop.xlane.xlu1 %2849 }
 0x4e5   :  { %4205 = vrcp.f32 %v2850_v23  ;;  %v3197_v41 = vadd.f32 %v3165_v4, %v5588_v34  ;;  %3232 = vst.msk [vmem:[#allocation10 + $0x38] sm:$0xff] %vm199_vm0, %v3200_v16  ;;  %v3166_v63 = vmul.f32 %v3054_v32, %v2948_v59  ;;  %v3075_v34 = vadd.f32 %v6005_v19, %v6163_v38  ;;  %v6641_v19 = vld [vmem:[#allocation77_spill] sm:$0xff]  ;;  %v6643_v16 = vld [vmem:[#allocation48_spill] sm:$0xff] }
 0x4e6   :  { %v2871_v22 = vpop.xlane.xlu0 %2870 }
 0x4e7   :  { %4207 = vrcp.f32 %v2871_v22  ;;  %3229 = vst.msk [vmem:[#allocation10 + $0x20] sm:$0xff] %vm199_vm0, %v3197_v41  ;;  %v3198_v11 = vadd.f32 %v3166_v63, %v6638_v12  ;;  %v6644_v63 = vld [vmem:[#allocation78_spill] sm:$0xff] }
 0x4e8   :  { %v2874_v50 = vpop.xlane.xlu1 %2873 }
 0x4e9   :  { %4209 = vrcp.f32 %v2874_v50  ;;  %3230 = vst.msk [vmem:[#allocation10 + $0x28] sm:$0xff] %vm199_vm0, %v3198_v11  ;;  %v6645_v11 = vld [vmem:[#allocation26_spill] sm:$0xff]  ;;  %v6646_v50 = vld [vmem:[#allocation47_spill] sm:$0xff] }
 0x4ea   :  { %4211 = vrcp.f32 %v6639_v28  ;;  %v2841_v43 = vpop.xlane.xlu0 %2840 }
 0x4eb   :  { %4213 = vrcp.f32 %v2841_v43 }
 0x4ec   :  { %4215 = vrcp.f32 %v6640_v61  ;;  %v2844_v40 = vpop.xlane.xlu1 %2843  ;;  %v6647_v61 = vld [vmem:[#allocation59_spill] sm:$0xff] }
 0x4ed   :  { %v4204_v47 = vpop.eup %4203  ;;  %4217 = vrcp.f32 %v2844_v40  ;;  %v6648_v40 = vld [vmem:[#allocation79_spill] sm:$0xff] }
 0x4ee   :  { %v2953_v7 = vmul.f32 %v4204_v47, %v5932_v35  ;;  %v2865_v57 = vpop.xlane.xlu0 %2864 }
 0x4ef   :  { %v4206_v52 = vpop.eup %4205  ;;  %4219 = vrcp.f32 %v2865_v57 }
 0x4f0   :  { %v3171_v39 = vmul.f32 %v3075_v34, %v2953_v7  ;;  %v2954_v2 = vmul.f32 %v4206_v52, %v5937_v20  ;;  %v2868_v55 = vpop.xlane.xlu1 %2867  ;;  %v3067_v20 = vadd.f32 %v6163_v38, %v6009_v27  ;;  %v1637_v34 = vadd.f32 %v6111_v48, %v6647_v61  ;;  %v6649_v7 = vld [vmem:[#allocation62_spill] sm:$0xff] }
 0x4f1   :  { %v4208_v44 = vpop.eup %4207  ;;  %4221 = vrcp.f32 %v2868_v55  ;;  %v6650_v52 = vld [vmem:[#allocation50_spill] sm:$0xff] }
 0x4f2   :  { %v3203_v36 = vadd.f32 %v3171_v39, %v6641_v19  ;;  %v3172_v54 = vmul.f32 %v3078_v3, %v2954_v2  ;;  %v2961_v35 = vmul.f32 %v4208_v44, %v5944_v9  ;;  %v2859_v10 = vpop.xlane.xlu0 %2858  ;;  %v3102_v2 = vadd.f32 %v6163_v38, %v6061_v26  ;;  %v6655_v26 = vld [vmem:[#allocation58_spill] sm:$0xff] }
 0x4f3   :  { %v4210_v53 = vpop.eup %4209  ;;  %4223 = vrcp.f32 %v2859_v10 }
 0x4f4   :  { %v4212_v5 = vpop.eup %4211  ;;  %3235 = vst.msk [vmem:[#allocation10 + $0x50] sm:$0xff] %vm199_vm0, %v3203_v36  ;;  %v3204_v21 = vadd.f32 %v3172_v54, %v6642_v14  ;;  %v3179_v13 = vmul.f32 %v3107_v37, %v2961_v35  ;;  %v2962_v31 = vmul.f32 %v4210_v53, %v5949_v62  ;;  %v2862_v32 = vpop.xlane.xlu1 %2861  ;;  %v6651_v37 = vld [vmem:[#allocation61_spill] sm:$0xff]  ;;  %v6652_v36 = vld [vmem:[#allocation39_spill] sm:$0xff] }
 0x4f5   :  { %v4214_v0 = vpop.eup %4213  ;;  %4225 = vrcp.f32 %v2862_v32  ;;  %v1497_v22 = vmul.f32 %v4212_v5, %v6644_v63  ;;  %v1640_v44 = vadd.f32 %v6111_v48, %v6651_v37  ;;  %v6653_v35 = vld [vmem:[#allocation55_spill] sm:$0xff]  ;;  %v6654_v53 = vld [vmem:[#allocation21_spill] sm:$0xff]  ;;  %v3094_v48 = vadd.f32 %v6655_v26, %v6163_v38 }
 0x4f6   :  { %v4216_v9 = vpop.eup %4215  ;;  %v2951_v4 = vmul.f32 %v4214_v0, %v5954_v45  ;;  %3236 = vst.msk [vmem:[#allocation10 + $0x58] sm:$0xff] %vm199_vm0, %v3204_v21  ;;  %v3211_v59 = vadd.f32 %v3179_v13, %v6643_v16  ;;  %v3180_v23 = vmul.f32 %v3110_v8, %v2962_v31  ;;  %v2895_v27 = vpop.xlane.xlu0 %2894  ;;  %v3099_v45 = vadd.f32 %v6163_v38, %v6645_v11  ;;  %v6656_v31 = vld [vmem:[#allocation52_spill] sm:$0xff]  ;;  %v6657_v16 = vld [vmem:[#allocation51_spill] sm:$0xff] }
 0x4f7   :  { %v4218_v41 = vpop.eup %4217  ;;  %4227 = vrcp.f32 %v2895_v27  ;;  %v1498_v47 = vmul.f32 %v4216_v9, %v6648_v40  ;;  %v1715_v19 = vmul.f32 %v1637_v34, %v1497_v22  ;;  %v3091_v10 = vadd.f32 %v6653_v35, %v6163_v38  ;;  %v6662_v34 = vld [vmem:[#allocation57_spill] sm:$0xff] }
 0x4f8   :  { %v3169_v62 = vmul.f32 %v3067_v20, %v2951_v4  ;;  %v2952_v12 = vmul.f32 %v4218_v41, %v5959_v1  ;;  %3243 = vst.msk [vmem:[#allocation10 + $0x90] sm:$0xff] %vm199_vm0, %v3211_v59  ;;  %v3212_v28 = vadd.f32 %v3180_v23, %v6646_v50  ;;  %v2898_v43 = vpop.xlane.xlu1 %2897  ;;  %v6658_v41 = vld [vmem:[#allocation34_spill] sm:$0xff]  ;;  %v3083_v40 = vadd.f32 %v6163_v38, %v6662_v34 }
 0x4f9   :  { %v4220_v51 = vpop.eup %4219  ;;  %4229 = vrcp.f32 %v2898_v43  ;;  %v1716_v21 = vmul.f32 %v1640_v44, %v1498_v47  ;;  %v3139_v63 = vadd.f32 %v6658_v41, %v6163_v38  ;;  %v6661_v43 = vld [vmem:[#allocation17_spill] sm:$0xff]  ;;  %v6663_v47 = vld [vmem:[#allocation43_spill] sm:$0xff] }
 0x4fa   :  { %v3201_v3 = vadd.f32 %v3169_v62, %v6649_v7  ;;  %v3170_v57 = vmul.f32 %v3070_v24, %v2952_v12  ;;  %v2959_v1 = vmul.f32 %v4220_v51, %v6650_v52  ;;  %3244 = vst.msk [vmem:[#allocation10 + $0x98] sm:$0xff] %vm199_vm0, %v3212_v28  ;;  %v2853_v39 = vpop.xlane.xlu0 %2852  ;;  %v6659_v62 = vld [vmem:[#allocation41_spill] sm:$0xff]  ;;  %v3142_v51 = vadd.f32 %v6661_v43, %v6163_v38 }
 0x4fb   :  { %v4222_v55 = vpop.eup %4221  ;;  %4231 = vrcp.f32 %v2853_v39 }
 0x4fc   :  { %3233 = vst.msk [vmem:[#allocation10 + $0x40] sm:$0xff] %vm199_vm0, %v3201_v3  ;;  %v3202_v54 = vadd.f32 %v3170_v57, %v6652_v36  ;;  %v3177_v8 = vmul.f32 %v3099_v45, %v2959_v1  ;;  %v2960_v5 = vmul.f32 %v4222_v55, %v6654_v53  ;;  %v2856_v20 = vpop.xlane.xlu1 %2855  ;;  %v6660_v45 = vld [vmem:[#allocation53_spill] sm:$0xff]  ;;  %v6664_v57 = vld [vmem:[#allocation22_spill] sm:$0xff] }
 0x4fd   :  { %v4224_v14 = vpop.eup %4223  ;;  %4233 = vrcp.f32 %v2856_v20 }
 0x4fe   :  { %3234 = vst.msk [vmem:[#allocation10 + $0x48] sm:$0xff] %vm199_vm0, %v3202_v54  ;;  %v3209_v13 = vadd.f32 %v3177_v8, %v1715_v19  ;;  %v2957_v32 = vmul.f32 %v4224_v14, %v6656_v31  ;;  %v3178_v0 = vmul.f32 %v3102_v2, %v2960_v5  ;;  %v2889_v9 = vpop.xlane.xlu0 %2888  ;;  %v6665_v2 = vld [vmem:[#allocation54_spill] sm:$0xff]  ;;  %v6666_v54 = vld [vmem:[#allocation25_spill] sm:$0xff]  ;;  %v6667_v8 = vld [vmem:[#allocation23_spill] sm:$0xff] }
 0x4ff   :  { %v4226_v4 = vpop.eup %4225  ;;  %4235 = vrcp.f32 %v2889_v9  ;;  %v3086_v35 = vadd.f32 %v6163_v38, %v6666_v54  ;;  %v6668_v5 = vld [vmem:[#allocation18_spill] sm:$0xff]  ;;  %v6670_v31 = vld [vmem:[#allocation56_spill] sm:$0xff] }
 0x500   :  { %3241 = vst.msk [vmem:[#allocation10 + $0x80] sm:$0xff] %vm199_vm0, %v3209_v13  ;;  %v3175_v24 = vmul.f32 %v3091_v10, %v2957_v32  ;;  %v2958_v59 = vmul.f32 %v4226_v4, %v6657_v16  ;;  %v3210_v23 = vadd.f32 %v3178_v0, %v1716_v21  ;;  %v2892_v27 = vpop.xlane.xlu1 %2891  ;;  %v3131_v20 = vadd.f32 %v6163_v38, %v6668_v5  ;;  %v6671_v4 = vld [vmem:[#allocation46_spill] sm:$0xff]  ;;  %v6683_v5 = vld [vmem:[#allocation37_spill] sm:$0xff] }
 0x501   :  { %v4228_v22 = vpop.eup %4227  ;;  %4237 = vrcp.f32 %v2892_v27  ;;  %v3134_v0 = vadd.f32 %v6163_v38, %v6100_v18  ;;  %v6675_v18 = vld [vmem:[#allocation60_spill] sm:$0xff] }
 0x502   :  { %v3207_v12 = vadd.f32 %v3175_v24, %v6659_v62  ;;  %v3176_v11 = vmul.f32 %v3094_v48, %v2958_v59  ;;  %3242 = vst.msk [vmem:[#allocation10 + $0x88] sm:$0xff] %vm199_vm0, %v3210_v23  ;;  %v2969_v50 = vmul.f32 %v4228_v22, %v6660_v45  ;;  %v2883_v28 = vpop.xlane.xlu0 %2882  ;;  %v6673_v23 = vld [vmem:[#allocation24_spill] sm:$0xff] }
 0x503   :  { %v4230_v61 = vpop.eup %4229  ;;  %4239 = vrcp.f32 %v2883_v28 }
 0x504   :  { %3239 = vst.msk [vmem:[#allocation10 + $0x70] sm:$0xff] %vm199_vm0, %v3207_v12  ;;  %v3208_v7 = vadd.f32 %v3176_v11, %v6663_v47  ;;  %v3187_v3 = vmul.f32 %v3139_v63, %v2969_v50  ;;  %v2970_v52 = vmul.f32 %v4230_v61, %v6664_v57  ;;  %v2886_v1 = vpop.xlane.xlu1 %2885  ;;  %v6674_v63 = vld [vmem:[#allocation32_spill] sm:$0xff]  ;;  %v6676_v50 = vld [vmem:[#allocation31_spill] sm:$0xff]  ;;  %v6678_v47 = vld [vmem:[#allocation33_spill] sm:$0xff] }
 0x505   :  { %v4232_v39 = vpop.eup %4231  ;;  %4241 = vrcp.f32 %v2886_v1  ;;  %v3126_v22 = vadd.f32 %v6674_v63, %v6163_v38  ;;  %v3115_v28 = vadd.f32 %v6163_v38, %v6676_v50  ;;  %v6679_v57 = vld [vmem:[#allocation28_spill] sm:$0xff] }
 0x506   :  { %3240 = vst.msk [vmem:[#allocation10 + $0x78] sm:$0xff] %vm199_vm0, %v3208_v7  ;;  %v2955_v55 = vmul.f32 %v4232_v39, %v6665_v2  ;;  %v3219_v37 = vadd.f32 %v3187_v3, %v6134_v33  ;;  %v3188_v44 = vmul.f32 %v3142_v51, %v2970_v52  ;;  %v2877_v19 = vpop.xlane.xlu0 %2876  ;;  %v6669_v33 = vld [vmem:[#allocation45_spill] sm:$0xff]  ;;  %v6677_v51 = vld [vmem:[#allocation27_spill] sm:$0xff]  ;;  %v3118_v7 = vadd.f32 %v6163_v38, %v6678_v47 }
 0x507   :  { %v4234_v36 = vpop.eup %4233  ;;  %4243 = vrcp.f32 %v2877_v19 }
 0x508   :  { %v3173_v10 = vmul.f32 %v3083_v40, %v2955_v55  ;;  %v2956_v53 = vmul.f32 %v4234_v36, %v6667_v8  ;;  %3251 = vst.msk [vmem:[#allocation10 + $0xd0] sm:$0xff] %vm199_vm0, %v3219_v37  ;;  %v3220_v14 = vadd.f32 %v3188_v44, %v6132_v15  ;;  %v2880_v21 = vpop.xlane.xlu1 %2879  ;;  %v6672_v15 = vld [vmem:[#allocation30_spill] sm:$0xff]  ;;  %v6680_v55 = vld [vmem:[#allocation29_spill] sm:$0xff]  ;;  %v3147_v8 = vadd.f32 %v6163_v38, %v6154_v58 }
 0x509   :  { %v4236_v26 = vpop.eup %4235  ;;  %4245 = vrcp.f32 %v2880_v21  ;;  %v3123_v16 = vadd.f32 %v6672_v15, %v6163_v38  ;;  %v6686_v15 = vld [vmem:[#allocation15_spill] sm:$0xff] }
 0x50a   :  { %v3205_v48 = vadd.f32 %v3173_v10, %v6669_v33  ;;  %v3174_v13 = vmul.f32 %v3086_v35, %v2956_v53  ;;  %v2967_v32 = vmul.f32 %v4236_v26, %v6670_v31  ;;  %3252 = vst.msk [vmem:[#allocation10 + $0xd8] sm:$0xff] %vm199_vm0, %v3220_v14  ;;  %v3150_v14 = vadd.f32 %v6163_v38, %v6158_v30 }
 0x50b   :  { %v4238_v9 = vpop.eup %4237  ;;  %v3155_v26 = vadd.f32 %v6152_v49, %v6163_v38  ;;  %v3158_v30 = vadd.f32 %v6156_v46, %v6163_v38 }
 0x50c   :  { %3237 = vst.msk [vmem:[#allocation10 + $0x60] sm:$0xff] %vm199_vm0, %v3205_v48  ;;  %v3206_v24 = vadd.f32 %v3174_v13, %v6671_v4  ;;  %v3185_v59 = vmul.f32 %v3131_v20, %v2967_v32  ;;  %v2968_v27 = vmul.f32 %v4238_v9, %v6673_v23  ;;  %v6684_v48 = vld [vmem:[#allocation35_spill] sm:$0xff]  ;;  %v6685_v32 = vld [vmem:[#allocation16_spill] sm:$0xff] }
 0x50d   :  { %v4240_v41 = vpop.eup %4239 }
 0x50e   :  { %3238 = vst.msk [vmem:[#allocation10 + $0x68] sm:$0xff] %vm199_vm0, %v3206_v24  ;;  %v3217_v62 = vadd.f32 %v3185_v59, %v6126_v60  ;;  %v2965_v12 = vmul.f32 %v4240_v41, %v6675_v18  ;;  %v3186_v11 = vmul.f32 %v3134_v0, %v2968_v27 }
 0x50f   :  { %v4242_v45 = vpop.eup %4241 }
 0x510   :  { %3249 = vst.msk [vmem:[#allocation10 + $0xc0] sm:$0xff] %vm199_vm0, %v3217_v62  ;;  %v3183_v43 = vmul.f32 %v3123_v16, %v2965_v12  ;;  %v2966_v61 = vmul.f32 %v4242_v45, %v6677_v51  ;;  %v3218_v34 = vadd.f32 %v3186_v11, %v6122_v42  ;;  %v6681_v42 = vld [vmem:[#allocation19_spill] sm:$0xff] }
 0x511   :  { %v4244_v40 = vpop.eup %4243 }
 0x512   :  { %v3215_v60 = vadd.f32 %v3183_v43, %v6116_v25  ;;  %v3184_v3 = vmul.f32 %v3126_v22, %v2966_v61  ;;  %v2963_v52 = vmul.f32 %v4244_v40, %v6679_v57  ;;  %3250 = vst.msk [vmem:[#allocation10 + $0xc8] sm:$0xff] %vm199_vm0, %v3218_v34  ;;  %v6682_v25 = vld [vmem:[#allocation36_spill] sm:$0xff] }
 0x513   :  { %v4246_v1 = vpop.eup %4245 }
 0x514   :  { %3247 = vst.msk [vmem:[#allocation10 + $0xb0] sm:$0xff] %vm199_vm0, %v3215_v60  ;;  %v3216_v39 = vadd.f32 %v3184_v3, %v6103_v6  ;;  %v3181_v2 = vmul.f32 %v3115_v28, %v2963_v52  ;;  %v2964_v37 = vmul.f32 %v4246_v1, %v6680_v55 }
 0x516   :  { %3248 = vst.msk [vmem:[#allocation10 + $0xb8] sm:$0xff] %vm199_vm0, %v3216_v39  ;;  %v3213_v44 = vadd.f32 %v3181_v2, %v6681_v42  ;;  %v3182_v19 = vmul.f32 %v3118_v7, %v2964_v37  ;;  %v2901_v36 = vpop.xlane.xlu0 %2900 }
 0x517   :  { %4247 = vrcp.f32 %v2901_v36 }
 0x518   :  { %3245 = vst.msk [vmem:[#allocation10 + $0xa0] sm:$0xff] %vm199_vm0, %v3213_v44  ;;  %v3214_v54 = vadd.f32 %v3182_v19, %v6682_v25  ;;  %v2904_v35 = vpop.xlane.xlu1 %2903 }
 0x519   :  { %4249 = vrcp.f32 %v2904_v35 }
 0x51a   :  { %3246 = vst.msk [vmem:[#allocation10 + $0xa8] sm:$0xff] %vm199_vm0, %v3214_v54  ;;  %v2907_v10 = vpop.xlane.xlu0 %2906 }
 0x51b   :  { %4251 = vrcp.f32 %v2907_v10 }
 0x51c   :  { %v2910_v6 = vpop.xlane.xlu1 %2909 }
 0x51d   :  { %4253 = vrcp.f32 %v2910_v6 }
 0x521   :  { %v4248_v53 = vpop.eup %4247 }
 0x522   :  { %v2971_v20 = vmul.f32 %v4248_v53, %v6683_v5 }
 0x523   :  { %v4250_v21 = vpop.eup %4249 }
 0x524   :  { %v3189_v33 = vmul.f32 %v3147_v8, %v2971_v20  ;;  %v2972_v13 = vmul.f32 %v4250_v21, %v6684_v48 }
 0x525   :  { %v4252_v31 = vpop.eup %4251 }
 0x526   :  { %v2973_v0 = vmul.f32 %v4252_v31, %v6685_v32  ;;  %v3221_v9 = vadd.f32 %v3189_v33, %v6142_v29  ;;  %v3190_v4 = vmul.f32 %v3150_v14, %v2972_v13  ;;  %v6687_v29 = vld [vmem:[#allocation44_spill] sm:$0xff] }
 0x527   :  { %v4254_v58 = vpop.eup %4253 }
 0x528   :  { %v3191_v24 = vmul.f32 %v3155_v26, %v2973_v0  ;;  %3253 = vst.msk [vmem:[#allocation10 + $0xe0] sm:$0xff] %vm199_vm0, %v3221_v9  ;;  %v2974_v16 = vmul.f32 %v4254_v58, %v6686_v15  ;;  %v3222_v49 = vadd.f32 %v3190_v4, %v6139_v56 }
 0x52a   :  { %v3223_v59 = vadd.f32 %v3191_v24, %v6150_v17  ;;  %v3192_v23 = vmul.f32 %v3158_v30, %v2974_v16  ;;  %3254 = vst.msk [vmem:[#allocation10 + $0xe8] sm:$0xff] %vm199_vm0, %v3222_v49 }
 0x52c   :  { %3255 = vst.msk [vmem:[#allocation10 + $0xf0] sm:$0xff] %vm199_vm0, %v3223_v59  ;;  %v3224_v27 = vadd.f32 %v3192_v23, %v6687_v29 }
 0x52e   :  { %3256 = vst.msk [vmem:[#allocation10 + $0xf8] sm:$0xff] %vm199_vm0, %v3224_v27 }
 0x52f   :  { %4355 = shalt.err (!%p4352_p8)
}
 0x530   :  { %s4356_s16 = scalar_lea.hbm %s6352_s6, 4096 }
 0x531   :  { %p4357_p9 = scmp.ne.s32.totalorder %s6352_s6, %s4356_s16  ;;  %p4360_p10 = scmp.lt.u32.totalorder %s4356_s16, %s6352_s6 }
 0x533   :  { %p4362_p11 = pnand %p4360_p10, %p4357_p9 }
 0x535   :  { %4365 = shalt.err (!%p4362_p11)
}
 0x536   :  { %3268 = dma.vmem_to_hbm [thread:$0]  %s3263_s12, 4096, %s6352_s6, [#allocation4], %s4376_s9, %s4376_s9, %s4377_s10  }
 0x537   :  { %4372 = dma.done.wait [#allocation4], 4096  }
 0x538   :  { %4373 = vsyncadd [#allocation4], 4294963200 }
 0x539   :  { %3272 = vsyncpa [#allocation3], 1 }
 0x53a   :  { %3273 = vsyncpa [#allocation6], 1 }
 0x53b   :  { %3274 = vsyncpa [#allocation9], 1 }
 0x53c   :  { %3275 = vsyncpa [#allocation4], 1 }

</bundles_post_ra>
